<compile_context>
chip_gen: v6e
topology: v6e:2x2x1
jax: 0.10.0
libtpu: 0.0.40
codegen_flags: <defaults>
</compile_context>

<pallas_src>
import functools

import jax
import jax.numpy as jnp
from jax.experimental import pallas as pl
from jax.experimental.pallas import tpu as pltpu


# ----------------------------------------------------------------------------
# helpers
# ----------------------------------------------------------------------------
def _tile(dim, pref):
    """Largest power-of-two tile <= pref (>=128) dividing `dim`, else full dim."""
    t = pref
    while t >= 128:
        if dim % t == 0:
            return t
        t //= 2
    return dim


# ----------------------------------------------------------------------------
# Tiled linear: o = act(x @ w + b), bf16 operands, f32 accumulation
# ----------------------------------------------------------------------------
def _linear_kernel(x_ref, w_ref, b_ref, o_ref, acc_ref, *, act):
    k = pl.program_id(2)

    @pl.when(k == 0)
    def _():
        acc_ref[...] = jnp.zeros_like(acc_ref)

    acc_ref[...] += jnp.dot(x_ref[...], w_ref[...],
                            preferred_element_type=jnp.float32)

    @pl.when(k == pl.num_programs(2) - 1)
    def _():
        y = acc_ref[...] + b_ref[...]
        if act == "gelu":
            # tanh-approx GELU (see TODO at top of file)
            y = 0.5 * y * (1.0 + jnp.tanh(
                0.7978845608028654 * (y + 0.044715 * y * y * y)))
        o_ref[...] = y.astype(o_ref.dtype)


def linear(x, w, b, act=None, *, tm=512, tn=512, tk=512):
    M, K = x.shape
    _, N = w.shape
    tm, tn, tk = _tile(M, tm), _tile(N, tn), _tile(K, tk)
    return pl.pallas_call(
        functools.partial(_linear_kernel, act=act),
        out_shape=jax.ShapeDtypeStruct((M, N), jnp.bfloat16),
        grid=(M // tm, N // tn, K // tk),
        in_specs=[
            pl.BlockSpec((tm, tk), lambda i, j, k: (i, k)),
            pl.BlockSpec((tk, tn), lambda i, j, k: (k, j)),
            pl.BlockSpec((1, tn), lambda i, j, k: (0, j)),
        ],
        out_specs=pl.BlockSpec((tm, tn), lambda i, j, k: (i, j)),
        scratch_shapes=[pltpu.VMEM((tm, tn), jnp.float32)],
        compiler_params=pltpu.CompilerParams(
            dimension_semantics=("parallel", "parallel", "arbitrary")),
    )(x, w, b.reshape(1, N))


# ----------------------------------------------------------------------------
# Tiled linear fused with residual add + LayerNorm epilogue
#   o = LayerNorm((x @ w + b) + res)   (N = hidden, kept whole for LN)
# ----------------------------------------------------------------------------
def _linear_res_ln_kernel(x_ref, w_ref, b_ref, res_ref, g_ref, bt_ref,
                          o_ref, acc_ref, *, eps):
    k = pl.program_id(1)

    @pl.when(k == 0)
    def _():
        acc_ref[...] = jnp.zeros_like(acc_ref)

    acc_ref[...] += jnp.dot(x_ref[...], w_ref[...],
                            preferred_element_type=jnp.float32)

    @pl.when(k == pl.num_programs(1) - 1)
    def _():
        y = acc_ref[...] + b_ref[...] + res_ref[...].astype(jnp.float32)
        mu = jnp.mean(y, axis=-1, keepdims=True)
        yc = y - mu
        var = jnp.mean(yc * yc, axis=-1, keepdims=True)
        inv = jax.lax.rsqrt(var + eps)
        o_ref[...] = (yc * inv * g_ref[...] + bt_ref[...]).astype(o_ref.dtype)


def linear_res_ln(x, w, b, res, gamma, beta, eps=1e-12, *, tm=512, tk=512):
    M, K = x.shape
    _, N = w.shape
    tm, tk = _tile(M, tm), _tile(K, tk)
    return pl.pallas_call(
        functools.partial(_linear_res_ln_kernel, eps=eps),
        out_shape=jax.ShapeDtypeStruct((M, N), jnp.bfloat16),
        grid=(M // tm, K // tk),
        in_specs=[
            pl.BlockSpec((tm, tk), lambda i, k: (i, k)),
            pl.BlockSpec((tk, N), lambda i, k: (k, 0)),
            pl.BlockSpec((1, N), lambda i, k: (0, 0)),
            pl.BlockSpec((tm, N), lambda i, k: (i, 0)),
            pl.BlockSpec((1, N), lambda i, k: (0, 0)),
            pl.BlockSpec((1, N), lambda i, k: (0, 0)),
        ],
        out_specs=pl.BlockSpec((tm, N), lambda i, k: (i, 0)),
        scratch_shapes=[pltpu.VMEM((tm, N), jnp.float32)],
        compiler_params=pltpu.CompilerParams(
            dimension_semantics=("parallel", "arbitrary")),
    )(x, w, b.reshape(1, N), res, gamma.reshape(1, N), beta.reshape(1, N))


# ----------------------------------------------------------------------------
# Plain LayerNorm (embeddings)
# ----------------------------------------------------------------------------
def _ln_kernel(x_ref, g_ref, b_ref, o_ref, *, eps):
    x = x_ref[...].astype(jnp.float32)
    mu = jnp.mean(x, axis=-1, keepdims=True)
    xc = x - mu
    var = jnp.mean(xc * xc, axis=-1, keepdims=True)
    inv = jax.lax.rsqrt(var + eps)
    o_ref[...] = (xc * inv * g_ref[...] + b_ref[...]).astype(o_ref.dtype)


def layernorm(x, gamma, beta, eps=1e-12, *, tm=1024):
    M, H = x.shape
    tm = _tile(M, tm)
    return pl.pallas_call(
        functools.partial(_ln_kernel, eps=eps),
        out_shape=jax.ShapeDtypeStruct((M, H), jnp.bfloat16),
        grid=(M // tm,),
        in_specs=[
            pl.BlockSpec((tm, H), lambda i: (i, 0)),
            pl.BlockSpec((1, H), lambda i: (0, 0)),
            pl.BlockSpec((1, H), lambda i: (0, 0)),
        ],
        out_specs=pl.BlockSpec((tm, H), lambda i: (i, 0)),
        compiler_params=pltpu.CompilerParams(dimension_semantics=("parallel",)),
    )(x, gamma.reshape(1, H), beta.reshape(1, H))


# ----------------------------------------------------------------------------
# Attention: grid = (batch, query tiles).  Each step reads a lane-dense
# [1, tq, H] q block and the full [1, S, 2H] k|v block (DMA'd once per batch
# element), computes per-head softmax(q k^T / sqrt(dh) + bias) v, and writes
# ONE lane-dense [tq, H] output store (per-head contexts concatenated).
# ----------------------------------------------------------------------------
def _attn_kernel(q_ref, kv_ref, bias_ref, o_ref, *, num_heads, dh, scale):
    H = num_heads * dh
    q_all = q_ref[0] * scale        # [tq, H]; 1/sqrt(dh) folded into q once
    kv = kv_ref[0]                  # [S, 2H] bf16 (k | v)
    bias = bias_ref[0]              # [1, S]  f32 additive mask
    ctx = []
    for h in range(num_heads):
        q = q_all[:, h * dh:(h + 1) * dh]                 # [tq, Dh]
        k = kv[:, h * dh:(h + 1) * dh]                    # [S,  Dh]
        v = kv[:, H + h * dh:H + (h + 1) * dh]            # [S,  Dh]
        s = jnp.dot(q, k.T, preferred_element_type=jnp.float32) + bias
        m = jnp.max(s, axis=-1, keepdims=True)
        p = jnp.exp(s - m)
        p = p * pl.reciprocal(jnp.sum(p, axis=-1, keepdims=True), approx=True)
        ctx.append(jnp.dot(p.astype(kv.dtype), v,
                           preferred_element_type=jnp.float32))   # [tq, Dh]
    # single full-width store (no masked dh-wide column writes)
    o_ref[0] = jnp.concatenate(ctx, axis=-1).astype(o_ref.dtype)


def attention(q, kv, bias, num_heads, *, tq=256):
    B, S, H = q.shape
    dh = H // num_heads
    scale = 1.0 / float(dh) ** 0.5
    tq = tq if S % tq == 0 else S
    nq = S // tq
    return pl.pallas_call(
        functools.partial(_attn_kernel, num_heads=num_heads, dh=dh, scale=scale),
        out_shape=jax.ShapeDtypeStruct((B, S, H), jnp.bfloat16),
        grid=(B, nq),
        in_specs=[
            pl.BlockSpec((1, tq, H), lambda b, i: (b, i, 0)),
            pl.BlockSpec((1, S, 2 * H), lambda b, i: (b, 0, 0)),
            pl.BlockSpec((1, 1, S), lambda b, i: (b, 0, 0)),
        ],
        out_specs=pl.BlockSpec((1, tq, H), lambda b, i: (b, i, 0)),
        compiler_params=pltpu.CompilerParams(
            dimension_semantics=("parallel", "parallel"),
            vmem_limit_bytes=64 * 1024 * 1024),
    )(q, kv, bias)


# ----------------------------------------------------------------------------
# Pooler (tanh dense on [CLS]) + classifier, fused, kept in f32
# ----------------------------------------------------------------------------
def _pooler_cls_kernel(x_ref, wp_ref, bp_ref, wc_ref, bc_ref, o_ref):
    x = x_ref[...].astype(jnp.float32)
    h = jnp.dot(x, wp_ref[...], preferred_element_type=jnp.float32) + bp_ref[...]
    h = jnp.tanh(h)
    y = jnp.dot(h, wc_ref[...], preferred_element_type=jnp.float32) + bc_ref[...]
    o_ref[...] = y.astype(o_ref.dtype)


def pooler_classifier(cls, wp, bp, wc, bc):
    B, H = cls.shape
    C = wc.shape[1]
    return pl.pallas_call(
        _pooler_cls_kernel,
        out_shape=jax.ShapeDtypeStruct((B, C), jnp.float32),
        grid=(1,),
        in_specs=[
            pl.BlockSpec((B, H), lambda i: (0, 0)),
            pl.BlockSpec((H, H), lambda i: (0, 0)),
            pl.BlockSpec((1, H), lambda i: (0, 0)),
            pl.BlockSpec((H, C), lambda i: (0, 0)),
            pl.BlockSpec((1, C), lambda i: (0, 0)),
        ],
        out_specs=pl.BlockSpec((B, C), lambda i: (0, 0)),
    )(cls, wp, bp.reshape(1, H), wc, bc.reshape(1, C))


# ----------------------------------------------------------------------------
# Model forward (glue in plain JAX: embedding gather, free reshapes)
# ----------------------------------------------------------------------------
def kmer_bert_forward(params, input_ids, attention_mask, *, num_heads):
    B, S = input_ids.shape
    H = params["word_emb"].shape[1]
    M = B * S

    # --- BertEmbeddings: word + position + token_type(0), then LayerNorm ---
    tok = jnp.take(params["word_emb"], input_ids, axis=0)          # [B,S,H] f32
    pos = params["pos_emb"][:S][None, :, :]                        # [1,S,H]
    typ = params["type_emb"][0][None, None, :]                     # [1,1,H]
    emb = (tok + pos + typ).reshape(M, H)
    hidden = layernorm(emb, params["emb_ln_g"], params["emb_ln_b"])  # bf16

    # --- extended attention mask: (1 - mask) * finfo.min, additive ---
    neg = jnp.finfo(jnp.float32).min
    bias = ((1.0 - attention_mask.astype(jnp.float32)) * neg).reshape(B, 1, S)

    # --- BertEncoder layers ---
    for lyr in params["layers"]:
        q = linear(hidden, lyr["q_w"], lyr["q_b"])                 # [M,H]  bf16
        kv = linear(hidden, lyr["kv_w"], lyr["kv_b"])              # [M,2H] bf16
        ctx = attention(q.reshape(B, S, H), kv.reshape(B, S, 2 * H),
                        bias, num_heads)                           # [B,S,H]
        hidden = linear_res_ln(ctx.reshape(M, H), lyr["ao_w"], lyr["ao_b"],
                               hidden, lyr["ao_ln_g"], lyr["ao_ln_b"])
        inter = linear(hidden, lyr["i_w"], lyr["i_b"], act="gelu") # [M,4H]
        hidden = linear_res_ln(inter, lyr["o_w"], lyr["o_b"],
                               hidden, lyr["o_ln_g"], lyr["o_ln_b"])

    # --- BertPooler (first token) + classifier, fused ---
    cls = hidden.reshape(B, S, H)[:, 0, :]                         # [B,H] bf16
    logits = pooler_classifier(cls, params["pool_w"], params["pool_b"],
                               params["cls_w"], params["cls_b"])
    return {"logits": logits}


# ----------------------------------------------------------------------------
# Deterministic parameter init (BERT-style: N(0, 0.02), LN=1/0, biases=0)
# Encoder matmul weights stored [in, out] in bf16; pooler/classifier in f32.
# Q weight separate; K|V fused into one [H, 2H] weight.
# ----------------------------------------------------------------------------
def init_params(key, *, vocab_size, hidden, num_layers, num_heads, num_classes,
                max_pos=512, type_vocab=2):
    del num_heads
    inter = 4 * hidden
    keys = iter(jax.random.split(key, 8 + 6 * num_layers))

    def nrm(shape, dtype=jnp.float32):
        return (0.02 * jax.random.normal(next(keys), shape, jnp.float32)
                ).astype(dtype)

    zeros = lambda n: jnp.zeros((n,), jnp.float32)
    ones = lambda n: jnp.ones((n,), jnp.float32)

    p = {
        "word_emb": nrm((vocab_size, hidden)).at[0].set(0.0),  # pad_token_id=0
        "pos_emb": nrm((max_pos, hidden)),
        "type_emb": nrm((type_vocab, hidden)),
        "emb_ln_g": ones(hidden), "emb_ln_b": zeros(hidden),
        "pool_w": nrm((hidden, hidden)), "pool_b": zeros(hidden),
        "cls_w": nrm((hidden, num_classes)), "cls_b": zeros(num_classes),
        "layers": [],
    }
    for _ in range(num_layers):
        p["layers"].append({
            "q_w": nrm((hidden, hidden), jnp.bfloat16), "q_b": zeros(hidden),
            "kv_w": nrm((hidden, 2 * hidden), jnp.bfloat16),
            "kv_b": zeros(2 * hidden),
            "ao_w": nrm((hidden, hidden), jnp.bfloat16), "ao_b": zeros(hidden),
            "ao_ln_g": ones(hidden), "ao_ln_b": zeros(hidden),
            "i_w": nrm((hidden, inter), jnp.bfloat16), "i_b": zeros(inter),
            "o_w": nrm((inter, hidden), jnp.bfloat16), "o_b": zeros(hidden),
            "o_ln_g": ones(hidden), "o_ln_b": zeros(hidden),
        })
    return p


# ----------------------------------------------------------------------------
if __name__ == "__main__":
    # small config consistent with the module: heads=12 -> hidden multiple of 12
    VOCAB, HIDDEN, LAYERS, HEADS, CLASSES = 64, 96, 2, 12, 2
    B, S = 2, 8

    key = jax.random.PRNGKey(0)
    pkey, ikey = jax.random.split(key)
    params = init_params(pkey, vocab_size=VOCAB, hidden=HIDDEN,
                         num_layers=LAYERS, num_heads=HEADS,
                         num_classes=CLASSES)

    input_ids = jax.random.randint(ikey, (B, S), 1, VOCAB, dtype=jnp.int32)
    attention_mask = jnp.array(
        [[1, 1, 1, 1, 1, 1, 1, 1],
         [1, 1, 1, 1, 1, 1, 0, 0]], dtype=jnp.int32)

    fwd = jax.jit(functools.partial(kmer_bert_forward, num_heads=HEADS))
    out = fwd(params, input_ids, attention_mask)
    jax.block_until_ready(out)

    assert out["logits"].shape == (B, CLASSES)
    assert out["logits"].dtype == jnp.float32
    print("KERNEL_OK")
</pallas_src>

<mosaic_0001>
module attributes {stable_mosaic.version = 11 : i64} {
  func.func @_linear_kernel(%arg0: i32, %arg1: i32, %arg2: i32, %arg3: memref<16x96xbf16, #tpu.memory_space<vmem>>, %arg4: memref<96x96xbf16, #tpu.memory_space<vmem>>, %arg5: memref<1x96xf32, #tpu.memory_space<vmem>>, %arg6: memref<16x96xbf16, #tpu.memory_space<vmem>>, %arg7: memref<16x96xf32, #tpu.memory_space<vmem>>) attributes {dimension_semantics = [#tpu.dimension_semantics<parallel>, #tpu.dimension_semantics<parallel>, #tpu.dimension_semantics<arbitrary>], iteration_bounds = array<i64: 1, 1, 1>, scalar_prefetch = 0 : i64, scratch_operands = 1 : i64, tpu.core_type = #tpu.core_type<tc>, window_params = [{transform_indices = @transform_0, window_bounds = array<i64: 16, 96>}, {transform_indices = @transform_1, window_bounds = array<i64: 96, 96>}, {transform_indices = @transform_2, window_bounds = array<i64: 1, 96>}, {transform_indices = @transform_3, window_bounds = array<i64: 16, 96>}]} {
    %c0_i32 = arith.constant 0 : i32
    %0 = arith.cmpi eq, %arg2, %c0_i32 : i32
    %1 = arith.extui %0 : i1 to i32
    %c0_i32_0 = arith.constant 0 : i32
    %2 = arith.cmpi ne, %1, %c0_i32_0 : i32
    scf.if %2 {
      %cst_10 = arith.constant 0.000000e+00 : f32
      %12 = vector.broadcast %cst_10 : f32 to vector<16x96xf32>
      %c0_11 = arith.constant 0 : index
      %c0_12 = arith.constant 0 : index
      %13 = vector.load %arg7[%c0_11, %c0_12] : memref<16x96xf32, #tpu.memory_space<vmem>>, vector<16x96xf32>
      tpu.vector_store %arg7[%c0_11, %c0_12], %12 {strides = array<i32>} : memref<16x96xf32, #tpu.memory_space<vmem>>, vector<16x96xf32>,
    } else {
    }
    %c0 = arith.constant 0 : index
    %c0_1 = arith.constant 0 : index
    %3 = vector.load %arg7[%c0, %c0_1] : memref<16x96xf32, #tpu.memory_space<vmem>>, vector<16x96xf32>
    %c0_2 = arith.constant 0 : index
    %c0_3 = arith.constant 0 : index
    %4 = vector.load %arg3[%c0_2, %c0_3] : memref<16x96xbf16, #tpu.memory_space<vmem>>, vector<16x96xbf16>
    %c0_4 = arith.constant 0 : index
    %c0_5 = arith.constant 0 : index
    %5 = vector.load %arg4[%c0_4, %c0_5] : memref<96x96xbf16, #tpu.memory_space<vmem>>, vector<96x96xbf16>
    %cst = arith.constant dense<0.000000e+00> : vector<16x96xf32>
    %6 = tpu.matmul %4, %5, %cst {dimension_numbers = #tpu.dot_dimension_numbers<[1], [0], [0], [1], [0, 0, 1, 1], [], []>} : vector<16x96xbf16>, vector<96x96xbf16>, vector<16x96xf32> -> vector<16x96xf32>
    %7 = arith.addf %3, %6 : vector<16x96xf32>
    %c0_6 = arith.constant 0 : index
    %c0_7 = arith.constant 0 : index
    %8 = vector.load %arg7[%c0_6, %c0_7] : memref<16x96xf32, #tpu.memory_space<vmem>>, vector<16x96xf32>
    tpu.vector_store %arg7[%c0_6, %c0_7], %7 {strides = array<i32>} : memref<16x96xf32, #tpu.memory_space<vmem>>, vector<16x96xf32>,
    %c0_i32_8 = arith.constant 0 : i32
    %9 = arith.cmpi eq, %arg2, %c0_i32_8 : i32
    %10 = arith.extui %9 : i1 to i32
    %c0_i32_9 = arith.constant 0 : i32
    %11 = arith.cmpi ne, %10, %c0_i32_9 : i32
    scf.if %11 {
      %c0_10 = arith.constant 0 : index
      %c0_11 = arith.constant 0 : index
      %12 = vector.load %arg7[%c0_10, %c0_11] : memref<16x96xf32, #tpu.memory_space<vmem>>, vector<16x96xf32>
      %c0_12 = arith.constant 0 : index
      %c0_13 = arith.constant 0 : index
      %13 = vector.load %arg5[%c0_12, %c0_13] : memref<1x96xf32, #tpu.memory_space<vmem>>, vector<1x96xf32>
      %14 = vector.broadcast %13 : vector<1x96xf32> to vector<16x96xf32>
      %15 = arith.addf %12, %14 : vector<16x96xf32>
      %16 = arith.truncf %15 : vector<16x96xf32> to vector<16x96xbf16>
      %c0_14 = arith.constant 0 : index
      %c0_15 = arith.constant 0 : index
      %17 = vector.load %arg6[%c0_14, %c0_15] : memref<16x96xbf16, #tpu.memory_space<vmem>>, vector<16x96xbf16>
      tpu.vector_store %arg6[%c0_14, %c0_15], %16 {strides = array<i32>} : memref<16x96xbf16, #tpu.memory_space<vmem>>, vector<16x96xbf16>,
    } else {
    }
    return
  }
  func.func @transform_0(%arg0: i32, %arg1: i32, %arg2: i32) -> (i32, i32) {
    %c0_i32 = arith.constant 0 : i32
    return %arg0, %arg2 : i32, i32
  }
  func.func @transform_1(%arg0: i32, %arg1: i32, %arg2: i32) -> (i32, i32) {
    %c0_i32 = arith.constant 0 : i32
    return %arg2, %arg1 : i32, i32
  }
  func.func @transform_2(%arg0: i32, %arg1: i32, %arg2: i32) -> (i32, i32) {
    %c0_i32 = arith.constant 0 : i32
    %c0_i32_0 = arith.constant 0 : i32
    return %c0_i32, %arg1 : i32, i32
  }
  func.func @transform_3(%arg0: i32, %arg1: i32, %arg2: i32) -> (i32, i32) {
    %c0_i32 = arith.constant 0 : i32
    return %arg0, %arg1 : i32, i32
  }
}

module attributes {stable_mosaic.version = 11 : i64} {
  func.func @_linear_kernel(%arg0: i32, %arg1: i32, %arg2: i32, %arg3: memref<16x96xbf16, #tpu.memory_space<vmem>>, %arg4: memref<96x192xbf16, #tpu.memory_space<vmem>>, %arg5: memref<1x192xf32, #tpu.memory_space<vmem>>, %arg6: memref<16x192xbf16, #tpu.memory_space<vmem>>, %arg7: memref<16x192xf32, #tpu.memory_space<vmem>>) attributes {dimension_semantics = [#tpu.dimension_semantics<parallel>, #tpu.dimension_semantics<parallel>, #tpu.dimension_semantics<arbitrary>], iteration_bounds = array<i64: 1, 1, 1>, scalar_prefetch = 0 : i64, scratch_operands = 1 : i64, tpu.core_type = #tpu.core_type<tc>, window_params = [{transform_indices = @transform_0, window_bounds = array<i64: 16, 96>}, {transform_indices = @transform_1, window_bounds = array<i64: 96, 192>}, {transform_indices = @transform_2, window_bounds = array<i64: 1, 192>}, {transform_indices = @transform_3, window_bounds = array<i64: 16, 192>}]} {
    %c0_i32 = arith.constant 0 : i32
    %0 = arith.cmpi eq, %arg2, %c0_i32 : i32
    %1 = arith.extui %0 : i1 to i32
    %c0_i32_0 = arith.constant 0 : i32
    %2 = arith.cmpi ne, %1, %c0_i32_0 : i32
    scf.if %2 {
      %cst_10 = arith.constant 0.000000e+00 : f32
      %12 = vector.broadcast %cst_10 : f32 to vector<16x192xf32>
      %c0_11 = arith.constant 0 : index
      %c0_12 = arith.constant 0 : index
      %13 = vector.load %arg7[%c0_11, %c0_12] : memref<16x192xf32, #tpu.memory_space<vmem>>, vector<16x192xf32>
      tpu.vector_store %arg7[%c0_11, %c0_12], %12 {strides = array<i32>} : memref<16x192xf32, #tpu.memory_space<vmem>>, vector<16x192xf32>,
    } else {
    }
    %c0 = arith.constant 0 : index
    %c0_1 = arith.constant 0 : index
    %3 = vector.load %arg7[%c0, %c0_1] : memref<16x192xf32, #tpu.memory_space<vmem>>, vector<16x192xf32>
    %c0_2 = arith.constant 0 : index
    %c0_3 = arith.constant 0 : index
    %4 = vector.load %arg3[%c0_2, %c0_3] : memref<16x96xbf16, #tpu.memory_space<vmem>>, vector<16x96xbf16>
    %c0_4 = arith.constant 0 : index
    %c0_5 = arith.constant 0 : index
    %5 = vector.load %arg4[%c0_4, %c0_5] : memref<96x192xbf16, #tpu.memory_space<vmem>>, vector<96x192xbf16>
    %cst = arith.constant dense<0.000000e+00> : vector<16x192xf32>
    %6 = tpu.matmul %4, %5, %cst {dimension_numbers = #tpu.dot_dimension_numbers<[1], [0], [0], [1], [0, 0, 1, 1], [], []>} : vector<16x96xbf16>, vector<96x192xbf16>, vector<16x192xf32> -> vector<16x192xf32>
    %7 = arith.addf %3, %6 : vector<16x192xf32>
    %c0_6 = arith.constant 0 : index
    %c0_7 = arith.constant 0 : index
    %8 = vector.load %arg7[%c0_6, %c0_7] : memref<16x192xf32, #tpu.memory_space<vmem>>, vector<16x192xf32>
    tpu.vector_store %arg7[%c0_6, %c0_7], %7 {strides = array<i32>} : memref<16x192xf32, #tpu.memory_space<vmem>>, vector<16x192xf32>,
    %c0_i32_8 = arith.constant 0 : i32
    %9 = arith.cmpi eq, %arg2, %c0_i32_8 : i32
    %10 = arith.extui %9 : i1 to i32
    %c0_i32_9 = arith.constant 0 : i32
    %11 = arith.cmpi ne, %10, %c0_i32_9 : i32
    scf.if %11 {
      %c0_10 = arith.constant 0 : index
      %c0_11 = arith.constant 0 : index
      %12 = vector.load %arg7[%c0_10, %c0_11] : memref<16x192xf32, #tpu.memory_space<vmem>>, vector<16x192xf32>
      %c0_12 = arith.constant 0 : index
      %c0_13 = arith.constant 0 : index
      %13 = vector.load %arg5[%c0_12, %c0_13] : memref<1x192xf32, #tpu.memory_space<vmem>>, vector<1x192xf32>
      %14 = vector.broadcast %13 : vector<1x192xf32> to vector<16x192xf32>
      %15 = arith.addf %12, %14 : vector<16x192xf32>
      %16 = arith.truncf %15 : vector<16x192xf32> to vector<16x192xbf16>
      %c0_14 = arith.constant 0 : index
      %c0_15 = arith.constant 0 : index
      %17 = vector.load %arg6[%c0_14, %c0_15] : memref<16x192xbf16, #tpu.memory_space<vmem>>, vector<16x192xbf16>
      tpu.vector_store %arg6[%c0_14, %c0_15], %16 {strides = array<i32>} : memref<16x192xbf16, #tpu.memory_space<vmem>>, vector<16x192xbf16>,
    } else {
    }
    return
  }
  func.func @transform_0(%arg0: i32, %arg1: i32, %arg2: i32) -> (i32, i32) {
    %c0_i32 = arith.constant 0 : i32
    return %arg0, %arg2 : i32, i32
  }
  func.func @transform_1(%arg0: i32, %arg1: i32, %arg2: i32) -> (i32, i32) {
    %c0_i32 = arith.constant 0 : i32
    return %arg2, %arg1 : i32, i32
  }
  func.func @transform_2(%arg0: i32, %arg1: i32, %arg2: i32) -> (i32, i32) {
    %c0_i32 = arith.constant 0 : i32
    %c0_i32_0 = arith.constant 0 : i32
    return %c0_i32, %arg1 : i32, i32
  }
  func.func @transform_3(%arg0: i32, %arg1: i32, %arg2: i32) -> (i32, i32) {
    %c0_i32 = arith.constant 0 : i32
    return %arg0, %arg1 : i32, i32
  }
}

module attributes {stable_mosaic.version = 11 : i64} {
  func.func @_ln_kernel(%arg0: i32, %arg1: memref<16x96xf32, #tpu.memory_space<vmem>>, %arg2: memref<1x96xf32, #tpu.memory_space<vmem>>, %arg3: memref<1x96xf32, #tpu.memory_space<vmem>>, %arg4: memref<16x96xbf16, #tpu.memory_space<vmem>>) attributes {dimension_semantics = [#tpu.dimension_semantics<parallel>], iteration_bounds = array<i64: 1>, scalar_prefetch = 0 : i64, scratch_operands = 0 : i64, tpu.core_type = #tpu.core_type<tc>, window_params = [{transform_indices = @transform_0, window_bounds = array<i64: 16, 96>}, {pipeline_mode = #tpu.pipeline_mode<synchronous>, transform_indices = @transform_1, window_bounds = array<i64: 1, 96>}, {pipeline_mode = #tpu.pipeline_mode<synchronous>, transform_indices = @transform_2, window_bounds = array<i64: 1, 96>}, {transform_indices = @transform_3, window_bounds = array<i64: 16, 96>}]} {
    %c0 = arith.constant 0 : index
    %c0_0 = arith.constant 0 : index
    %0 = vector.load %arg1[%c0, %c0_0] : memref<16x96xf32, #tpu.memory_space<vmem>>, vector<16x96xf32>
    %cst = arith.constant dense<0.000000e+00> : vector<16xf32>
    %1 = vector.multi_reduction <add>, %0, %cst [1] : vector<16x96xf32> to vector<16xf32>
    %2 = vector.shape_cast %1 : vector<16xf32> to vector<16x1xf32>
    %cst_1 = arith.constant 9.600000e+01 : f32
    %3 = vector.broadcast %cst_1 : f32 to vector<16x1xf32>
    %4 = arith.divf %2, %3 : vector<16x1xf32>
    %5 = vector.broadcast %4 : vector<16x1xf32> to vector<16x96xf32>
    %6 = arith.subf %0, %5 : vector<16x96xf32>
    %7 = arith.mulf %6, %6 : vector<16x96xf32>
    %cst_2 = arith.constant dense<0.000000e+00> : vector<16xf32>
    %8 = vector.multi_reduction <add>, %7, %cst_2 [1] : vector<16x96xf32> to vector<16xf32>
    %9 = vector.shape_cast %8 : vector<16xf32> to vector<16x1xf32>
    %cst_3 = arith.constant 9.600000e+01 : f32
    %10 = vector.broadcast %cst_3 : f32 to vector<16x1xf32>
    %11 = arith.divf %9, %10 : vector<16x1xf32>
    %cst_4 = arith.constant 9.99999996E-13 : f32
    %12 = vector.broadcast %cst_4 : f32 to vector<16x1xf32>
    %13 = arith.addf %11, %12 : vector<16x1xf32>
    %14 = math.rsqrt %13 : vector<16x1xf32>
    %15 = vector.broadcast %14 : vector<16x1xf32> to vector<16x96xf32>
    %16 = arith.mulf %6, %15 : vector<16x96xf32>
    %c0_5 = arith.constant 0 : index
    %c0_6 = arith.constant 0 : index
    %17 = vector.load %arg2[%c0_5, %c0_6] : memref<1x96xf32, #tpu.memory_space<vmem>>, vector<1x96xf32>
    %18 = vector.broadcast %17 : vector<1x96xf32> to vector<16x96xf32>
    %19 = arith.mulf %16, %18 : vector<16x96xf32>
    %c0_7 = arith.constant 0 : index
    %c0_8 = arith.constant 0 : index
    %20 = vector.load %arg3[%c0_7, %c0_8] : memref<1x96xf32, #tpu.memory_space<vmem>>, vector<1x96xf32>
    %21 = vector.broadcast %20 : vector<1x96xf32> to vector<16x96xf32>
    %22 = arith.addf %19, %21 : vector<16x96xf32>
    %23 = arith.truncf %22 : vector<16x96xf32> to vector<16x96xbf16>
    %c0_9 = arith.constant 0 : index
    %c0_10 = arith.constant 0 : index
    %24 = vector.load %arg4[%c0_9, %c0_10] : memref<16x96xbf16, #tpu.memory_space<vmem>>, vector<16x96xbf16>
    tpu.vector_store %arg4[%c0_9, %c0_10], %23 {strides = array<i32>} : memref<16x96xbf16, #tpu.memory_space<vmem>>, vector<16x96xbf16>,
    return
  }
  func.func @transform_0(%arg0: i32) -> (i32, i32) {
    %c0_i32 = arith.constant 0 : i32
    %c0_i32_0 = arith.constant 0 : i32
    return %arg0, %c0_i32 : i32, i32
  }
  func.func @transform_1(%arg0: i32) -> (i32, i32) {
    %c0_i32 = arith.constant 0 : i32
    %c0_i32_0 = arith.constant 0 : i32
    %c0_i32_1 = arith.constant 0 : i32
    return %c0_i32, %c0_i32_0 : i32, i32
  }
  func.func @transform_2(%arg0: i32) -> (i32, i32) {
    %c0_i32 = arith.constant 0 : i32
    %c0_i32_0 = arith.constant 0 : i32
    %c0_i32_1 = arith.constant 0 : i32
    return %c0_i32, %c0_i32_0 : i32, i32
  }
  func.func @transform_3(%arg0: i32) -> (i32, i32) {
    %c0_i32 = arith.constant 0 : i32
    %c0_i32_0 = arith.constant 0 : i32
    return %arg0, %c0_i32 : i32, i32
  }
}

module attributes {stable_mosaic.version = 11 : i64} {
  func.func @_attn_kernel(%arg0: i32, %arg1: i32, %arg2: memref<1x8x96xbf16, #tpu.memory_space<vmem>>, %arg3: memref<1x8x192xbf16, #tpu.memory_space<vmem>>, %arg4: memref<1x1x8xf32, #tpu.memory_space<vmem>>, %arg5: memref<1x8x96xbf16, #tpu.memory_space<vmem>>) attributes {dimension_semantics = [#tpu.dimension_semantics<parallel>, #tpu.dimension_semantics<parallel>], iteration_bounds = array<i64: 2, 1>, scalar_prefetch = 0 : i64, scratch_operands = 0 : i64, tpu.core_type = #tpu.core_type<tc>, window_params = [{transform_indices = @transform_0, window_bounds = array<i64: 1, 8, 96>}, {transform_indices = @transform_1, window_bounds = array<i64: 1, 8, 192>}, {transform_indices = @transform_2, window_bounds = array<i64: 1, 1, 8>}, {transform_indices = @transform_3, window_bounds = array<i64: 1, 8, 96>}]} {
    %c0 = arith.constant 0 : index
    %c0_0 = arith.constant 0 : index
    %c0_1 = arith.constant 0 : index
    %0 = vector.load %arg2[%c0, %c0_0, %c0_1] : memref<1x8x96xbf16, #tpu.memory_space<vmem>>, vector<1x8x96xbf16>
    %1 = vector.shape_cast %0 : vector<1x8x96xbf16> to vector<8x96xbf16>
    %cst = arith.constant 3.535160e-01 : bf16
    %2 = vector.broadcast %cst : bf16 to vector<8x96xbf16>
    %3 = arith.mulf %1, %2 : vector<8x96xbf16>
    %c0_2 = arith.constant 0 : index
    %c0_3 = arith.constant 0 : index
    %c0_4 = arith.constant 0 : index
    %4 = vector.load %arg3[%c0_2, %c0_3, %c0_4] : memref<1x8x192xbf16, #tpu.memory_space<vmem>>, vector<1x8x192xbf16>
    %5 = vector.shape_cast %4 : vector<1x8x192xbf16> to vector<8x192xbf16>
    %c0_5 = arith.constant 0 : index
    %c0_6 = arith.constant 0 : index
    %c0_7 = arith.constant 0 : index
    %6 = vector.load %arg4[%c0_5, %c0_6, %c0_7] : memref<1x1x8xf32, #tpu.memory_space<vmem>>, vector<1x1x8xf32>
    %7 = vector.shape_cast %6 : vector<1x1x8xf32> to vector<1x8xf32>
    %8 = vector.extract_strided_slice %3 {offsets = [0, 0], sizes = [8, 8], strides = [1, 1]} : vector<8x96xbf16> to vector<8x8xbf16>
    %9 = vector.extract_strided_slice %5 {offsets = [0, 0], sizes = [8, 8], strides = [1, 1]} : vector<8x192xbf16> to vector<8x8xbf16>
    %10 = vector.extract_strided_slice %5 {offsets = [0, 96], sizes = [8, 8], strides = [1, 1]} : vector<8x192xbf16> to vector<8x8xbf16>
    %11 = tpu.transpose %9, [1, 0] : vector<8x8xbf16> -> vector<8x8xbf16>
    %cst_8 = arith.constant dense<0.000000e+00> : vector<8x8xf32>
    %12 = tpu.matmul %8, %11, %cst_8 {dimension_numbers = #tpu.dot_dimension_numbers<[1], [0], [0], [1], [0, 0, 1, 1], [], []>} : vector<8x8xbf16>, vector<8x8xbf16>, vector<8x8xf32> -> vector<8x8xf32>
    %13 = vector.broadcast %7 : vector<1x8xf32> to vector<8x8xf32>
    %14 = arith.addf %12, %13 : vector<8x8xf32>
    %cst_9 = arith.constant dense<0xFF800000> : vector<8xf32>
    %15 = vector.multi_reduction <maximumf>, %14, %cst_9 [1] : vector<8x8xf32> to vector<8xf32>
    %16 = vector.shape_cast %15 : vector<8xf32> to vector<8x1xf32>
    %17 = vector.broadcast %16 : vector<8x1xf32> to vector<8x8xf32>
    %18 = arith.subf %14, %17 : vector<8x8xf32>
    %19 = math.exp %18 : vector<8x8xf32>
    %cst_10 = arith.constant dense<0.000000e+00> : vector<8xf32>
    %20 = vector.multi_reduction <add>, %19, %cst_10 [1] : vector<8x8xf32> to vector<8xf32>
    %21 = vector.shape_cast %20 : vector<8xf32> to vector<8x1xf32>
    %22 = tpu.reciprocal %21 {approx = true} : vector<8x1xf32> -> vector<8x1xf32>
    %23 = vector.broadcast %22 : vector<8x1xf32> to vector<8x8xf32>
    %24 = arith.mulf %19, %23 : vector<8x8xf32>
    %25 = arith.truncf %24 : vector<8x8xf32> to vector<8x8xbf16>
    %cst_11 = arith.constant dense<0.000000e+00> : vector<8x8xf32>
    %26 = tpu.matmul %25, %10, %cst_11 {dimension_numbers = #tpu.dot_dimension_numbers<[1], [0], [0], [1], [0, 0, 1, 1], [], []>} : vector<8x8xbf16>, vector<8x8xbf16>, vector<8x8xf32> -> vector<8x8xf32>
    %27 = vector.extract_strided_slice %3 {offsets = [0, 8], sizes = [8, 8], strides = [1, 1]} : vector<8x96xbf16> to vector<8x8xbf16>
    %28 = vector.extract_strided_slice %5 {offsets = [0, 8], sizes = [8, 8], strides = [1, 1]} : vector<8x192xbf16> to vector<8x8xbf16>
    %29 = vector.extract_strided_slice %5 {offsets = [0, 104], sizes = [8, 8], strides = [1, 1]} : vector<8x192xbf16> to vector<8x8xbf16>
    %30 = tpu.transpose %28, [1, 0] : vector<8x8xbf16> -> vector<8x8xbf16>
    %cst_12 = arith.constant dense<0.000000e+00> : vector<8x8xf32>
    %31 = tpu.matmul %27, %30, %cst_12 {dimension_numbers = #tpu.dot_dimension_numbers<[1], [0], [0], [1], [0, 0, 1, 1], [], []>} : vector<8x8xbf16>, vector<8x8xbf16>, vector<8x8xf32> -> vector<8x8xf32>
    %32 = vector.broadcast %7 : vector<1x8xf32> to vector<8x8xf32>
    %33 = arith.addf %31, %32 : vector<8x8xf32>
    %cst_13 = arith.constant dense<0xFF800000> : vector<8xf32>
    %34 = vector.multi_reduction <maximumf>, %33, %cst_13 [1] : vector<8x8xf32> to vector<8xf32>
    %35 = vector.shape_cast %34 : vector<8xf32> to vector<8x1xf32>
    %36 = vector.broadcast %35 : vector<8x1xf32> to vector<8x8xf32>
    %37 = arith.subf %33, %36 : vector<8x8xf32>
    %38 = math.exp %37 : vector<8x8xf32>
    %cst_14 = arith.constant dense<0.000000e+00> : vector<8xf32>
    %39 = vector.multi_reduction <add>, %38, %cst_14 [1] : vector<8x8xf32> to vector<8xf32>
    %40 = vector.shape_cast %39 : vector<8xf32> to vector<8x1xf32>
    %41 = tpu.reciprocal %40 {approx = true} : vector<8x1xf32> -> vector<8x1xf32>
    %42 = vector.broadcast %41 : vector<8x1xf32> to vector<8x8xf32>
    %43 = arith.mulf %38, %42 : vector<8x8xf32>
    %44 = arith.truncf %43 : vector<8x8xf32> to vector<8x8xbf16>
    %cst_15 = arith.constant dense<0.000000e+00> : vector<8x8xf32>
    %45 = tpu.matmul %44, %29, %cst_15 {dimension_numbers = #tpu.dot_dimension_numbers<[1], [0], [0], [1], [0, 0, 1, 1], [], []>} : vector<8x8xbf16>, vector<8x8xbf16>, vector<8x8xf32> -> vector<8x8xf32>
    %46 = vector.extract_strided_slice %3 {offsets = [0, 16], sizes = [8, 8], strides = [1, 1]} : vector<8x96xbf16> to vector<8x8xbf16>
    %47 = vector.extract_strided_slice %5 {offsets = [0, 16], sizes = [8, 8], strides = [1, 1]} : vector<8x192xbf16> to vector<8x8xbf16>
    %48 = vector.extract_strided_slice %5 {offsets = [0, 112], sizes = [8, 8], strides = [1, 1]} : vector<8x192xbf16> to vector<8x8xbf16>
    %49 = tpu.transpose %47, [1, 0] : vector<8x8xbf16> -> vector<8x8xbf16>
    %cst_16 = arith.constant dense<0.000000e+00> : vector<8x8xf32>
    %50 = tpu.matmul %46, %49, %cst_16 {dimension_numbers = #tpu.dot_dimension_numbers<[1], [0], [0], [1], [0, 0, 1, 1], [], []>} : vector<8x8xbf16>, vector<8x8xbf16>, vector<8x8xf32> -> vector<8x8xf32>
    %51 = vector.broadcast %7 : vector<1x8xf32> to vector<8x8xf32>
    %52 = arith.addf %50, %51 : vector<8x8xf32>
    %cst_17 = arith.constant dense<0xFF800000> : vector<8xf32>
    %53 = vector.multi_reduction <maximumf>, %52, %cst_17 [1] : vector<8x8xf32> to vector<8xf32>
    %54 = vector.shape_cast %53 : vector<8xf32> to vector<8x1xf32>
    %55 = vector.broadcast %54 : vector<8x1xf32> to vector<8x8xf32>
    %56 = arith.subf %52, %55 : vector<8x8xf32>
    %57 = math.exp %56 : vector<8x8xf32>
    %cst_18 = arith.constant dense<0.000000e+00> : vector<8xf32>
    %58 = vector.multi_reduction <add>, %57, %cst_18 [1] : vector<8x8xf32> to vector<8xf32>
    %59 = vector.shape_cast %58 : vector<8xf32> to vector<8x1xf32>
    %60 = tpu.reciprocal %59 {approx = true} : vector<8x1xf32> -> vector<8x1xf32>
    %61 = vector.broadcast %60 : vector<8x1xf32> to vector<8x8xf32>
    %62 = arith.mulf %57, %61 : vector<8x8xf32>
    %63 = arith.truncf %62 : vector<8x8xf32> to vector<8x8xbf16>
    %cst_19 = arith.constant dense<0.000000e+00> : vector<8x8xf32>
    %64 = tpu.matmul %63, %48, %cst_19 {dimension_numbers = #tpu.dot_dimension_numbers<[1], [0], [0], [1], [0, 0, 1, 1], [], []>} : vector<8x8xbf16>, vector<8x8xbf16>, vector<8x8xf32> -> vector<8x8xf32>
    %65 = vector.extract_strided_slice %3 {offsets = [0, 24], sizes = [8, 8], strides = [1, 1]} : vector<8x96xbf16> to vector<8x8xbf16>
    %66 = vector.extract_strided_slice %5 {offsets = [0, 24], sizes = [8, 8], strides = [1, 1]} : vector<8x192xbf16> to vector<8x8xbf16>
    %67 = vector.extract_strided_slice %5 {offsets = [0, 120], sizes = [8, 8], strides = [1, 1]} : vector<8x192xbf16> to vector<8x8xbf16>
    %68 = tpu.transpose %66, [1, 0] : vector<8x8xbf16> -> vector<8x8xbf16>
    %cst_20 = arith.constant dense<0.000000e+00> : vector<8x8xf32>
    %69 = tpu.matmul %65, %68, %cst_20 {dimension_numbers = #tpu.dot_dimension_numbers<[1], [0], [0], [1], [0, 0, 1, 1], [], []>} : vector<8x8xbf16>, vector<8x8xbf16>, vector<8x8xf32> -> vector<8x8xf32>
    %70 = vector.broadcast %7 : vector<1x8xf32> to vector<8x8xf32>
    %71 = arith.addf %69, %70 : vector<8x8xf32>
    %cst_21 = arith.constant dense<0xFF800000> : vector<8xf32>
    %72 = vector.multi_reduction <maximumf>, %71, %cst_21 [1] : vector<8x8xf32> to vector<8xf32>
    %73 = vector.shape_cast %72 : vector<8xf32> to vector<8x1xf32>
    %74 = vector.broadcast %73 : vector<8x1xf32> to vector<8x8xf32>
    %75 = arith.subf %71, %74 : vector<8x8xf32>
    %76 = math.exp %75 : vector<8x8xf32>
    %cst_22 = arith.constant dense<0.000000e+00> : vector<8xf32>
    %77 = vector.multi_reduction <add>, %76, %cst_22 [1] : vector<8x8xf32> to vector<8xf32>
    %78 = vector.shape_cast %77 : vector<8xf32> to vector<8x1xf32>
    %79 = tpu.reciprocal %78 {approx = true} : vector<8x1xf32> -> vector<8x1xf32>
    %80 = vector.broadcast %79 : vector<8x1xf32> to vector<8x8xf32>
    %81 = arith.mulf %76, %80 : vector<8x8xf32>
    %82 = arith.truncf %81 : vector<8x8xf32> to vector<8x8xbf16>
    %cst_23 = arith.constant dense<0.000000e+00> : vector<8x8xf32>
    %83 = tpu.matmul %82, %67, %cst_23 {dimension_numbers = #tpu.dot_dimension_numbers<[1], [0], [0], [1], [0, 0, 1, 1], [], []>} : vector<8x8xbf16>, vector<8x8xbf16>, vector<8x8xf32> -> vector<8x8xf32>
    %84 = vector.extract_strided_slice %3 {offsets = [0, 32], sizes = [8, 8], strides = [1, 1]} : vector<8x96xbf16> to vector<8x8xbf16>
    %85 = vector.extract_strided_slice %5 {offsets = [0, 32], sizes = [8, 8], strides = [1, 1]} : vector<8x192xbf16> to vector<8x8xbf16>
    %86 = vector.extract_strided_slice %5 {offsets = [0, 128], sizes = [8, 8], strides = [1, 1]} : vector<8x192xbf16> to vector<8x8xbf16>
    %87 = tpu.transpose %85, [1, 0] : vector<8x8xbf16> -> vector<8x8xbf16>
    %cst_24 = arith.constant dense<0.000000e+00> : vector<8x8xf32>
    %88 = tpu.matmul %84, %87, %cst_24 {dimension_numbers = #tpu.dot_dimension_numbers<[1], [0], [0], [1], [0, 0, 1, 1], [], []>} : vector<8x8xbf16>, vector<8x8xbf16>, vector<8x8xf32> -> vector<8x8xf32>
    %89 = vector.broadcast %7 : vector<1x8xf32> to vector<8x8xf32>
    %90 = arith.addf %88, %89 : vector<8x8xf32>
    %cst_25 = arith.constant dense<0xFF800000> : vector<8xf32>
    %91 = vector.multi_reduction <maximumf>, %90, %cst_25 [1] : vector<8x8xf32> to vector<8xf32>
    %92 = vector.shape_cast %91 : vector<8xf32> to vector<8x1xf32>
    %93 = vector.broadcast %92 : vector<8x1xf32> to vector<8x8xf32>
    %94 = arith.subf %90, %93 : vector<8x8xf32>
    %95 = math.exp %94 : vector<8x8xf32>
    %cst_26 = arith.constant dense<0.000000e+00> : vector<8xf32>
    %96 = vector.multi_reduction <add>, %95, %cst_26 [1] : vector<8x8xf32> to vector<8xf32>
    %97 = vector.shape_cast %96 : vector<8xf32> to vector<8x1xf32>
    %98 = tpu.reciprocal %97 {approx = true} : vector<8x1xf32> -> vector<8x1xf32>
    %99 = vector.broadcast %98 : vector<8x1xf32> to vector<8x8xf32>
    %100 = arith.mulf %95, %99 : vector<8x8xf32>
    %101 = arith.truncf %100 : vector<8x8xf32> to vector<8x8xbf16>
    %cst_27 = arith.constant dense<0.000000e+00> : vector<8x8xf32>
    %102 = tpu.matmul %101, %86, %cst_27 {dimension_numbers = #tpu.dot_dimension_numbers<[1], [0], [0], [1], [0, 0, 1, 1], [], []>} : vector<8x8xbf16>, vector<8x8xbf16>, vector<8x8xf32> -> vector<8x8xf32>
    %103 = vector.extract_strided_slice %3 {offsets = [0, 40], sizes = [8, 8], strides = [1, 1]} : vector<8x96xbf16> to vector<8x8xbf16>
    %104 = vector.extract_strided_slice %5 {offsets = [0, 40], sizes = [8, 8], strides = [1, 1]} : vector<8x192xbf16> to vector<8x8xbf16>
    %105 = vector.extract_strided_slice %5 {offsets = [0, 136], sizes = [8, 8], strides = [1, 1]} : vector<8x192xbf16> to vector<8x8xbf16>
    %106 = tpu.transpose %104, [1, 0] : vector<8x8xbf16> -> vector<8x8xbf16>
    %cst_28 = arith.constant dense<0.000000e+00> : vector<8x8xf32>
    %107 = tpu.matmul %103, %106, %cst_28 {dimension_numbers = #tpu.dot_dimension_numbers<[1], [0], [0], [1], [0, 0, 1, 1], [], []>} : vector<8x8xbf16>, vector<8x8xbf16>, vector<8x8xf32> -> vector<8x8xf32>
    %108 = vector.broadcast %7 : vector<1x8xf32> to vector<8x8xf32>
    %109 = arith.addf %107, %108 : vector<8x8xf32>
    %cst_29 = arith.constant dense<0xFF800000> : vector<8xf32>
    %110 = vector.multi_reduction <maximumf>, %109, %cst_29 [1] : vector<8x8xf32> to vector<8xf32>
    %111 = vector.shape_cast %110 : vector<8xf32> to vector<8x1xf32>
    %112 = vector.broadcast %111 : vector<8x1xf32> to vector<8x8xf32>
    %113 = arith.subf %109, %112 : vector<8x8xf32>
    %114 = math.exp %113 : vector<8x8xf32>
    %cst_30 = arith.constant dense<0.000000e+00> : vector<8xf32>
    %115 = vector.multi_reduction <add>, %114, %cst_30 [1] : vector<8x8xf32> to vector<8xf32>
    %116 = vector.shape_cast %115 : vector<8xf32> to vector<8x1xf32>
    %117 = tpu.reciprocal %116 {approx = true} : vector<8x1xf32> -> vector<8x1xf32>
    %118 = vector.broadcast %117 : vector<8x1xf32> to vector<8x8xf32>
    %119 = arith.mulf %114, %118 : vector<8x8xf32>
    %120 = arith.truncf %119 : vector<8x8xf32> to vector<8x8xbf16>
    %cst_31 = arith.constant dense<0.000000e+00> : vector<8x8xf32>
    %121 = tpu.matmul %120, %105, %cst_31 {dimension_numbers = #tpu.dot_dimension_numbers<[1], [0], [0], [1], [0, 0, 1, 1], [], []>} : vector<8x8xbf16>, vector<8x8xbf16>, vector<8x8xf32> -> vector<8x8xf32>
    %122 = vector.extract_strided_slice %3 {offsets = [0, 48], sizes = [8, 8], strides = [1, 1]} : vector<8x96xbf16> to vector<8x8xbf16>
    %123 = vector.extract_strided_slice %5 {offsets = [0, 48], sizes = [8, 8], strides = [1, 1]} : vector<8x192xbf16> to vector<8x8xbf16>
    %124 = vector.extract_strided_slice %5 {offsets = [0, 144], sizes = [8, 8], strides = [1, 1]} : vector<8x192xbf16> to vector<8x8xbf16>
    %125 = tpu.transpose %123, [1, 0] : vector<8x8xbf16> -> vector<8x8xbf16>
    %cst_32 = arith.constant dense<0.000000e+00> : vector<8x8xf32>
    %126 = tpu.matmul %122, %125, %cst_32 {dimension_numbers = #tpu.dot_dimension_numbers<[1], [0], [0], [1], [0, 0, 1, 1], [], []>} : vector<8x8xbf16>, vector<8x8xbf16>, vector<8x8xf32> -> vector<8x8xf32>
    %127 = vector.broadcast %7 : vector<1x8xf32> to vector<8x8xf32>
    %128 = arith.addf %126, %127 : vector<8x8xf32>
    %cst_33 = arith.constant dense<0xFF800000> : vector<8xf32>
    %129 = vector.multi_reduction <maximumf>, %128, %cst_33 [1] : vector<8x8xf32> to vector<8xf32>
    %130 = vector.shape_cast %129 : vector<8xf32> to vector<8x1xf32>
    %131 = vector.broadcast %130 : vector<8x1xf32> to vector<8x8xf32>
    %132 = arith.subf %128, %131 : vector<8x8xf32>
    %133 = math.exp %132 : vector<8x8xf32>
    %cst_34 = arith.constant dense<0.000000e+00> : vector<8xf32>
    %134 = vector.multi_reduction <add>, %133, %cst_34 [1] : vector<8x8xf32> to vector<8xf32>
    %135 = vector.shape_cast %134 : vector<8xf32> to vector<8x1xf32>
    %136 = tpu.reciprocal %135 {approx = true} : vector<8x1xf32> -> vector<8x1xf32>
    %137 = vector.broadcast %136 : vector<8x1xf32> to vector<8x8xf32>
    %138 = arith.mulf %133, %137 : vector<8x8xf32>
    %139 = arith.truncf %138 : vector<8x8xf32> to vector<8x8xbf16>
    %cst_35 = arith.constant dense<0.000000e+00> : vector<8x8xf32>
    %140 = tpu.matmul %139, %124, %cst_35 {dimension_numbers = #tpu.dot_dimension_numbers<[1], [0], [0], [1], [0, 0, 1, 1], [], []>} : vector<8x8xbf16>, vector<8x8xbf16>, vector<8x8xf32> -> vector<8x8xf32>
    %141 = vector.extract_strided_slice %3 {offsets = [0, 56], sizes = [8, 8], strides = [1, 1]} : vector<8x96xbf16> to vector<8x8xbf16>
    %142 = vector.extract_strided_slice %5 {offsets = [0, 56], sizes = [8, 8], strides = [1, 1]} : vector<8x192xbf16> to vector<8x8xbf16>
    %143 = vector.extract_strided_slice %5 {offsets = [0, 152], sizes = [8, 8], strides = [1, 1]} : vector<8x192xbf16> to vector<8x8xbf16>
    %144 = tpu.transpose %142, [1, 0] : vector<8x8xbf16> -> vector<8x8xbf16>
    %cst_36 = arith.constant dense<0.000000e+00> : vector<8x8xf32>
    %145 = tpu.matmul %141, %144, %cst_36 {dimension_numbers = #tpu.dot_dimension_numbers<[1], [0], [0], [1], [0, 0, 1, 1], [], []>} : vector<8x8xbf16>, vector<8x8xbf16>, vector<8x8xf32> -> vector<8x8xf32>
    %146 = vector.broadcast %7 : vector<1x8xf32> to vector<8x8xf32>
    %147 = arith.addf %145, %146 : vector<8x8xf32>
    %cst_37 = arith.constant dense<0xFF800000> : vector<8xf32>
    %148 = vector.multi_reduction <maximumf>, %147, %cst_37 [1] : vector<8x8xf32> to vector<8xf32>
    %149 = vector.shape_cast %148 : vector<8xf32> to vector<8x1xf32>
    %150 = vector.broadcast %149 : vector<8x1xf32> to vector<8x8xf32>
    %151 = arith.subf %147, %150 : vector<8x8xf32>
    %152 = math.exp %151 : vector<8x8xf32>
    %cst_38 = arith.constant dense<0.000000e+00> : vector<8xf32>
    %153 = vector.multi_reduction <add>, %152, %cst_38 [1] : vector<8x8xf32> to vector<8xf32>
    %154 = vector.shape_cast %153 : vector<8xf32> to vector<8x1xf32>
    %155 = tpu.reciprocal %154 {approx = true} : vector<8x1xf32> -> vector<8x1xf32>
    %156 = vector.broadcast %155 : vector<8x1xf32> to vector<8x8xf32>
    %157 = arith.mulf %152, %156 : vector<8x8xf32>
    %158 = arith.truncf %157 : vector<8x8xf32> to vector<8x8xbf16>
    %cst_39 = arith.constant dense<0.000000e+00> : vector<8x8xf32>
    %159 = tpu.matmul %158, %143, %cst_39 {dimension_numbers = #tpu.dot_dimension_numbers<[1], [0], [0], [1], [0, 0, 1, 1], [], []>} : vector<8x8xbf16>, vector<8x8xbf16>, vector<8x8xf32> -> vector<8x8xf32>
    %160 = vector.extract_strided_slice %3 {offsets = [0, 64], sizes = [8, 8], strides = [1, 1]} : vector<8x96xbf16> to vector<8x8xbf16>
    %161 = vector.extract_strided_slice %5 {offsets = [0, 64], sizes = [8, 8], strides = [1, 1]} : vector<8x192xbf16> to vector<8x8xbf16>
    %162 = vector.extract_strided_slice %5 {offsets = [0, 160], sizes = [8, 8], strides = [1, 1]} : vector<8x192xbf16> to vector<8x8xbf16>
    %163 = tpu.transpose %161, [1, 0] : vector<8x8xbf16> -> vector<8x8xbf16>
    %cst_40 = arith.constant dense<0.000000e+00> : vector<8x8xf32>
    %164 = tpu.matmul %160, %163, %cst_40 {dimension_numbers = #tpu.dot_dimension_numbers<[1], [0], [0], [1], [0, 0, 1, 1], [], []>} : vector<8x8xbf16>, vector<8x8xbf16>, vector<8x8xf32> -> vector<8x8xf32>
    %165 = vector.broadcast %7 : vector<1x8xf32> to vector<8x8xf32>
    %166 = arith.addf %164, %165 : vector<8x8xf32>
    %cst_41 = arith.constant dense<0xFF800000> : vector<8xf32>
    %167 = vector.multi_reduction <maximumf>, %166, %cst_41 [1] : vector<8x8xf32> to vector<8xf32>
    %168 = vector.shape_cast %167 : vector<8xf32> to vector<8x1xf32>
    %169 = vector.broadcast %168 : vector<8x1xf32> to vector<8x8xf32>
    %170 = arith.subf %166, %169 : vector<8x8xf32>
    %171 = math.exp %170 : vector<8x8xf32>
    %cst_42 = arith.constant dense<0.000000e+00> : vector<8xf32>
    %172 = vector.multi_reduction <add>, %171, %cst_42 [1] : vector<8x8xf32> to vector<8xf32>
    %173 = vector.shape_cast %172 : vector<8xf32> to vector<8x1xf32>
    %174 = tpu.reciprocal %173 {approx = true} : vector<8x1xf32> -> vector<8x1xf32>
    %175 = vector.broadcast %174 : vector<8x1xf32> to vector<8x8xf32>
    %176 = arith.mulf %171, %175 : vector<8x8xf32>
    %177 = arith.truncf %176 : vector<8x8xf32> to vector<8x8xbf16>
    %cst_43 = arith.constant dense<0.000000e+00> : vector<8x8xf32>
    %178 = tpu.matmul %177, %162, %cst_43 {dimension_numbers = #tpu.dot_dimension_numbers<[1], [0], [0], [1], [0, 0, 1, 1], [], []>} : vector<8x8xbf16>, vector<8x8xbf16>, vector<8x8xf32> -> vector<8x8xf32>
    %179 = vector.extract_strided_slice %3 {offsets = [0, 72], sizes = [8, 8], strides = [1, 1]} : vector<8x96xbf16> to vector<8x8xbf16>
    %180 = vector.extract_strided_slice %5 {offsets = [0, 72], sizes = [8, 8], strides = [1, 1]} : vector<8x192xbf16> to vector<8x8xbf16>
    %181 = vector.extract_strided_slice %5 {offsets = [0, 168], sizes = [8, 8], strides = [1, 1]} : vector<8x192xbf16> to vector<8x8xbf16>
    %182 = tpu.transpose %180, [1, 0] : vector<8x8xbf16> -> vector<8x8xbf16>
    %cst_44 = arith.constant dense<0.000000e+00> : vector<8x8xf32>
    %183 = tpu.matmul %179, %182, %cst_44 {dimension_numbers = #tpu.dot_dimension_numbers<[1], [0], [0], [1], [0, 0, 1, 1], [], []>} : vector<8x8xbf16>, vector<8x8xbf16>, vector<8x8xf32> -> vector<8x8xf32>
    %184 = vector.broadcast %7 : vector<1x8xf32> to vector<8x8xf32>
    %185 = arith.addf %183, %184 : vector<8x8xf32>
    %cst_45 = arith.constant dense<0xFF800000> : vector<8xf32>
    %186 = vector.multi_reduction <maximumf>, %185, %cst_45 [1] : vector<8x8xf32> to vector<8xf32>
    %187 = vector.shape_cast %186 : vector<8xf32> to vector<8x1xf32>
    %188 = vector.broadcast %187 : vector<8x1xf32> to vector<8x8xf32>
    %189 = arith.subf %185, %188 : vector<8x8xf32>
    %190 = math.exp %189 : vector<8x8xf32>
    %cst_46 = arith.constant dense<0.000000e+00> : vector<8xf32>
    %191 = vector.multi_reduction <add>, %190, %cst_46 [1] : vector<8x8xf32> to vector<8xf32>
    %192 = vector.shape_cast %191 : vector<8xf32> to vector<8x1xf32>
    %193 = tpu.reciprocal %192 {approx = true} : vector<8x1xf32> -> vector<8x1xf32>
    %194 = vector.broadcast %193 : vector<8x1xf32> to vector<8x8xf32>
    %195 = arith.mulf %190, %194 : vector<8x8xf32>
    %196 = arith.truncf %195 : vector<8x8xf32> to vector<8x8xbf16>
    %cst_47 = arith.constant dense<0.000000e+00> : vector<8x8xf32>
    %197 = tpu.matmul %196, %181, %cst_47 {dimension_numbers = #tpu.dot_dimension_numbers<[1], [0], [0], [1], [0, 0, 1, 1], [], []>} : vector<8x8xbf16>, vector<8x8xbf16>, vector<8x8xf32> -> vector<8x8xf32>
    %198 = vector.extract_strided_slice %3 {offsets = [0, 80], sizes = [8, 8], strides = [1, 1]} : vector<8x96xbf16> to vector<8x8xbf16>
    %199 = vector.extract_strided_slice %5 {offsets = [0, 80], sizes = [8, 8], strides = [1, 1]} : vector<8x192xbf16> to vector<8x8xbf16>
    %200 = vector.extract_strided_slice %5 {offsets = [0, 176], sizes = [8, 8], strides = [1, 1]} : vector<8x192xbf16> to vector<8x8xbf16>
    %201 = tpu.transpose %199, [1, 0] : vector<8x8xbf16> -> vector<8x8xbf16>
    %cst_48 = arith.constant dense<0.000000e+00> : vector<8x8xf32>
    %202 = tpu.matmul %198, %201, %cst_48 {dimension_numbers = #tpu.dot_dimension_numbers<[1], [0], [0], [1], [0, 0, 1, 1], [], []>} : vector<8x8xbf16>, vector<8x8xbf16>, vector<8x8xf32> -> vector<8x8xf32>
    %203 = vector.broadcast %7 : vector<1x8xf32> to vector<8x8xf32>
    %204 = arith.addf %202, %203 : vector<8x8xf32>
    %cst_49 = arith.constant dense<0xFF800000> : vector<8xf32>
    %205 = vector.multi_reduction <maximumf>, %204, %cst_49 [1] : vector<8x8xf32> to vector<8xf32>
    %206 = vector.shape_cast %205 : vector<8xf32> to vector<8x1xf32>
    %207 = vector.broadcast %206 : vector<8x1xf32> to vector<8x8xf32>
    %208 = arith.subf %204, %207 : vector<8x8xf32>
    %209 = math.exp %208 : vector<8x8xf32>
    %cst_50 = arith.constant dense<0.000000e+00> : vector<8xf32>
    %210 = vector.multi_reduction <add>, %209, %cst_50 [1] : vector<8x8xf32> to vector<8xf32>
    %211 = vector.shape_cast %210 : vector<8xf32> to vector<8x1xf32>
    %212 = tpu.reciprocal %211 {approx = true} : vector<8x1xf32> -> vector<8x1xf32>
    %213 = vector.broadcast %212 : vector<8x1xf32> to vector<8x8xf32>
    %214 = arith.mulf %209, %213 : vector<8x8xf32>
    %215 = arith.truncf %214 : vector<8x8xf32> to vector<8x8xbf16>
    %cst_51 = arith.constant dense<0.000000e+00> : vector<8x8xf32>
    %216 = tpu.matmul %215, %200, %cst_51 {dimension_numbers = #tpu.dot_dimension_numbers<[1], [0], [0], [1], [0, 0, 1, 1], [], []>} : vector<8x8xbf16>, vector<8x8xbf16>, vector<8x8xf32> -> vector<8x8xf32>
    %217 = vector.extract_strided_slice %3 {offsets = [0, 88], sizes = [8, 8], strides = [1, 1]} : vector<8x96xbf16> to vector<8x8xbf16>
    %218 = vector.extract_strided_slice %5 {offsets = [0, 88], sizes = [8, 8], strides = [1, 1]} : vector<8x192xbf16> to vector<8x8xbf16>
    %219 = vector.extract_strided_slice %5 {offsets = [0, 184], sizes = [8, 8], strides = [1, 1]} : vector<8x192xbf16> to vector<8x8xbf16>
    %220 = tpu.transpose %218, [1, 0] : vector<8x8xbf16> -> vector<8x8xbf16>
    %cst_52 = arith.constant dense<0.000000e+00> : vector<8x8xf32>
    %221 = tpu.matmul %217, %220, %cst_52 {dimension_numbers = #tpu.dot_dimension_numbers<[1], [0], [0], [1], [0, 0, 1, 1], [], []>} : vector<8x8xbf16>, vector<8x8xbf16>, vector<8x8xf32> -> vector<8x8xf32>
    %222 = vector.broadcast %7 : vector<1x8xf32> to vector<8x8xf32>
    %223 = arith.addf %221, %222 : vector<8x8xf32>
    %cst_53 = arith.constant dense<0xFF800000> : vector<8xf32>
    %224 = vector.multi_reduction <maximumf>, %223, %cst_53 [1] : vector<8x8xf32> to vector<8xf32>
    %225 = vector.shape_cast %224 : vector<8xf32> to vector<8x1xf32>
    %226 = vector.broadcast %225 : vector<8x1xf32> to vector<8x8xf32>
    %227 = arith.subf %223, %226 : vector<8x8xf32>
    %228 = math.exp %227 : vector<8x8xf32>
    %cst_54 = arith.constant dense<0.000000e+00> : vector<8xf32>
    %229 = vector.multi_reduction <add>, %228, %cst_54 [1] : vector<8x8xf32> to vector<8xf32>
    %230 = vector.shape_cast %229 : vector<8xf32> to vector<8x1xf32>
    %231 = tpu.reciprocal %230 {approx = true} : vector<8x1xf32> -> vector<8x1xf32>
    %232 = vector.broadcast %231 : vector<8x1xf32> to vector<8x8xf32>
    %233 = arith.mulf %228, %232 : vector<8x8xf32>
    %234 = arith.truncf %233 : vector<8x8xf32> to vector<8x8xbf16>
    %cst_55 = arith.constant dense<0.000000e+00> : vector<8x8xf32>
    %235 = tpu.matmul %234, %219, %cst_55 {dimension_numbers = #tpu.dot_dimension_numbers<[1], [0], [0], [1], [0, 0, 1, 1], [], []>} : vector<8x8xbf16>, vector<8x8xbf16>, vector<8x8xf32> -> vector<8x8xf32>
    %236 = tpu.concatenate %26, %45, %64, %83, %102, %121, %140, %159, %178, %197, %216, %235 in 1 : vector<8x8xf32>, vector<8x8xf32>, vector<8x8xf32>, vector<8x8xf32>, vector<8x8xf32>, vector<8x8xf32>, vector<8x8xf32>, vector<8x8xf32>, vector<8x8xf32>, vector<8x8xf32>, vector<8x8xf32>, vector<8x8xf32> -> vector<8x96xf32>
    %237 = arith.truncf %236 : vector<8x96xf32> to vector<8x96xbf16>
    %c0_56 = arith.constant 0 : index
    %c0_57 = arith.constant 0 : index
    %c0_58 = arith.constant 0 : index
    %238 = vector.load %arg5[%c0_56, %c0_57, %c0_58] : memref<1x8x96xbf16, #tpu.memory_space<vmem>>, vector<1x8x96xbf16>
    %239 = vector.shape_cast %238 : vector<1x8x96xbf16> to vector<8x96xbf16>
    %240 = vector.shape_cast %237 : vector<8x96xbf16> to vector<1x8x96xbf16>
    tpu.vector_store %arg5[%c0_56, %c0_57, %c0_58], %240 {strides = array<i32>} : memref<1x8x96xbf16, #tpu.memory_space<vmem>>, vector<1x8x96xbf16>,
    return
  }
  func.func @transform_0(%arg0: i32, %arg1: i32) -> (i32, i32, i32) {
    %c0_i32 = arith.constant 0 : i32
    %c0_i32_0 = arith.constant 0 : i32
    return %arg0, %arg1, %c0_i32 : i32, i32, i32
  }
  func.func @transform_1(%arg0: i32, %arg1: i32) -> (i32, i32, i32) {
    %c0_i32 = arith.constant 0 : i32
    %c0_i32_0 = arith.constant 0 : i32
    %c0_i32_1 = arith.constant 0 : i32
    return %arg0, %c0_i32, %c0_i32_0 : i32, i32, i32
  }
  func.func @transform_2(%arg0: i32, %arg1: i32) -> (i32, i32, i32) {
    %c0_i32 = arith.constant 0 : i32
    %c0_i32_0 = arith.constant 0 : i32
    %c0_i32_1 = arith.constant 0 : i32
    return %arg0, %c0_i32, %c0_i32_0 : i32, i32, i32
  }
  func.func @transform_3(%arg0: i32, %arg1: i32) -> (i32, i32, i32) {
    %c0_i32 = arith.constant 0 : i32
    %c0_i32_0 = arith.constant 0 : i32
    return %arg0, %arg1, %c0_i32 : i32, i32, i32
  }
}

module attributes {stable_mosaic.version = 11 : i64} {
  func.func @_linear_res_ln_kernel(%arg0: i32, %arg1: i32, %arg2: memref<16x96xbf16, #tpu.memory_space<vmem>>, %arg3: memref<96x96xbf16, #tpu.memory_space<vmem>>, %arg4: memref<1x96xf32, #tpu.memory_space<vmem>>, %arg5: memref<16x96xbf16, #tpu.memory_space<vmem>>, %arg6: memref<1x96xf32, #tpu.memory_space<vmem>>, %arg7: memref<1x96xf32, #tpu.memory_space<vmem>>, %arg8: memref<16x96xbf16, #tpu.memory_space<vmem>>, %arg9: memref<16x96xf32, #tpu.memory_space<vmem>>) attributes {dimension_semantics = [#tpu.dimension_semantics<parallel>, #tpu.dimension_semantics<arbitrary>], iteration_bounds = array<i64: 1, 1>, scalar_prefetch = 0 : i64, scratch_operands = 1 : i64, tpu.core_type = #tpu.core_type<tc>, window_params = [{transform_indices = @transform_0, window_bounds = array<i64: 16, 96>}, {transform_indices = @transform_1, window_bounds = array<i64: 96, 96>}, {pipeline_mode = #tpu.pipeline_mode<synchronous>, transform_indices = @transform_2, window_bounds = array<i64: 1, 96>}, {transform_indices = @transform_3, window_bounds = array<i64: 16, 96>}, {pipeline_mode = #tpu.pipeline_mode<synchronous>, transform_indices = @transform_4, window_bounds = array<i64: 1, 96>}, {pipeline_mode = #tpu.pipeline_mode<synchronous>, transform_indices = @transform_5, window_bounds = array<i64: 1, 96>}, {transform_indices = @transform_6, window_bounds = array<i64: 16, 96>}]} {
    %c0_i32 = arith.constant 0 : i32
    %0 = arith.cmpi eq, %arg1, %c0_i32 : i32
    %1 = arith.extui %0 : i1 to i32
    %c0_i32_0 = arith.constant 0 : i32
    %2 = arith.cmpi ne, %1, %c0_i32_0 : i32
    scf.if %2 {
      %cst_10 = arith.constant 0.000000e+00 : f32
      %12 = vector.broadcast %cst_10 : f32 to vector<16x96xf32>
      %c0_11 = arith.constant 0 : index
      %c0_12 = arith.constant 0 : index
      %13 = vector.load %arg9[%c0_11, %c0_12] : memref<16x96xf32, #tpu.memory_space<vmem>>, vector<16x96xf32>
      tpu.vector_store %arg9[%c0_11, %c0_12], %12 {strides = array<i32>} : memref<16x96xf32, #tpu.memory_space<vmem>>, vector<16x96xf32>,
    } else {
    }
    %c0 = arith.constant 0 : index
    %c0_1 = arith.constant 0 : index
    %3 = vector.load %arg9[%c0, %c0_1] : memref<16x96xf32, #tpu.memory_space<vmem>>, vector<16x96xf32>
    %c0_2 = arith.constant 0 : index
    %c0_3 = arith.constant 0 : index
    %4 = vector.load %arg2[%c0_2, %c0_3] : memref<16x96xbf16, #tpu.memory_space<vmem>>, vector<16x96xbf16>
    %c0_4 = arith.constant 0 : index
    %c0_5 = arith.constant 0 : index
    %5 = vector.load %arg3[%c0_4, %c0_5] : memref<96x96xbf16, #tpu.memory_space<vmem>>, vector<96x96xbf16>
    %cst = arith.constant dense<0.000000e+00> : vector<16x96xf32>
    %6 = tpu.matmul %4, %5, %cst {dimension_numbers = #tpu.dot_dimension_numbers<[1], [0], [0], [1], [0, 0, 1, 1], [], []>} : vector<16x96xbf16>, vector<96x96xbf16>, vector<16x96xf32> -> vector<16x96xf32>
    %7 = arith.addf %3, %6 : vector<16x96xf32>
    %c0_6 = arith.constant 0 : index
    %c0_7 = arith.constant 0 : index
    %8 = vector.load %arg9[%c0_6, %c0_7] : memref<16x96xf32, #tpu.memory_space<vmem>>, vector<16x96xf32>
    tpu.vector_store %arg9[%c0_6, %c0_7], %7 {strides = array<i32>} : memref<16x96xf32, #tpu.memory_space<vmem>>, vector<16x96xf32>,
    %c0_i32_8 = arith.constant 0 : i32
    %9 = arith.cmpi eq, %arg1, %c0_i32_8 : i32
    %10 = arith.extui %9 : i1 to i32
    %c0_i32_9 = arith.constant 0 : i32
    %11 = arith.cmpi ne, %10, %c0_i32_9 : i32
    scf.if %11 {
      %c0_10 = arith.constant 0 : index
      %c0_11 = arith.constant 0 : index
      %12 = vector.load %arg9[%c0_10, %c0_11] : memref<16x96xf32, #tpu.memory_space<vmem>>, vector<16x96xf32>
      %c0_12 = arith.constant 0 : index
      %c0_13 = arith.constant 0 : index
      %13 = vector.load %arg4[%c0_12, %c0_13] : memref<1x96xf32, #tpu.memory_space<vmem>>, vector<1x96xf32>
      %14 = vector.broadcast %13 : vector<1x96xf32> to vector<16x96xf32>
      %15 = arith.addf %12, %14 : vector<16x96xf32>
      %c0_14 = arith.constant 0 : index
      %c0_15 = arith.constant 0 : index
      %16 = vector.load %arg5[%c0_14, %c0_15] : memref<16x96xbf16, #tpu.memory_space<vmem>>, vector<16x96xbf16>
      %17 = arith.extf %16 : vector<16x96xbf16> to vector<16x96xf32>
      %18 = arith.addf %15, %17 : vector<16x96xf32>
      %cst_16 = arith.constant dense<0.000000e+00> : vector<16xf32>
      %19 = vector.multi_reduction <add>, %18, %cst_16 [1] : vector<16x96xf32> to vector<16xf32>
      %20 = vector.shape_cast %19 : vector<16xf32> to vector<16x1xf32>
      %cst_17 = arith.constant 9.600000e+01 : f32
      %21 = vector.broadcast %cst_17 : f32 to vector<16x1xf32>
      %22 = arith.divf %20, %21 : vector<16x1xf32>
      %23 = vector.broadcast %22 : vector<16x1xf32> to vector<16x96xf32>
      %24 = arith.subf %18, %23 : vector<16x96xf32>
      %25 = arith.mulf %24, %24 : vector<16x96xf32>
      %cst_18 = arith.constant dense<0.000000e+00> : vector<16xf32>
      %26 = vector.multi_reduction <add>, %25, %cst_18 [1] : vector<16x96xf32> to vector<16xf32>
      %27 = vector.shape_cast %26 : vector<16xf32> to vector<16x1xf32>
      %cst_19 = arith.constant 9.600000e+01 : f32
      %28 = vector.broadcast %cst_19 : f32 to vector<16x1xf32>
      %29 = arith.divf %27, %28 : vector<16x1xf32>
      %cst_20 = arith.constant 9.99999996E-13 : f32
      %30 = vector.broadcast %cst_20 : f32 to vector<16x1xf32>
      %31 = arith.addf %29, %30 : vector<16x1xf32>
      %32 = math.rsqrt %31 : vector<16x1xf32>
      %33 = vector.broadcast %32 : vector<16x1xf32> to vector<16x96xf32>
      %34 = arith.mulf %24, %33 : vector<16x96xf32>
      %c0_21 = arith.constant 0 : index
      %c0_22 = arith.constant 0 : index
      %35 = vector.load %arg6[%c0_21, %c0_22] : memref<1x96xf32, #tpu.memory_space<vmem>>, vector<1x96xf32>
      %36 = vector.broadcast %35 : vector<1x96xf32> to vector<16x96xf32>
      %37 = arith.mulf %34, %36 : vector<16x96xf32>
      %c0_23 = arith.constant 0 : index
      %c0_24 = arith.constant 0 : index
      %38 = vector.load %arg7[%c0_23, %c0_24] : memref<1x96xf32, #tpu.memory_space<vmem>>, vector<1x96xf32>
      %39 = vector.broadcast %38 : vector<1x96xf32> to vector<16x96xf32>
      %40 = arith.addf %37, %39 : vector<16x96xf32>
      %41 = arith.truncf %40 : vector<16x96xf32> to vector<16x96xbf16>
      %c0_25 = arith.constant 0 : index
      %c0_26 = arith.constant 0 : index
      %42 = vector.load %arg8[%c0_25, %c0_26] : memref<16x96xbf16, #tpu.memory_space<vmem>>, vector<16x96xbf16>
      tpu.vector_store %arg8[%c0_25, %c0_26], %41 {strides = array<i32>} : memref<16x96xbf16, #tpu.memory_space<vmem>>, vector<16x96xbf16>,
    } else {
    }
    return
  }
  func.func @transform_0(%arg0: i32, %arg1: i32) -> (i32, i32) {
    %c0_i32 = arith.constant 0 : i32
    return %arg0, %arg1 : i32, i32
  }
  func.func @transform_1(%arg0: i32, %arg1: i32) -> (i32, i32) {
    %c0_i32 = arith.constant 0 : i32
    %c0_i32_0 = arith.constant 0 : i32
    return %arg1, %c0_i32 : i32, i32
  }
  func.func @transform_2(%arg0: i32, %arg1: i32) -> (i32, i32) {
    %c0_i32 = arith.constant 0 : i32
    %c0_i32_0 = arith.constant 0 : i32
    %c0_i32_1 = arith.constant 0 : i32
    return %c0_i32, %c0_i32_0 : i32, i32
  }
  func.func @transform_3(%arg0: i32, %arg1: i32) -> (i32, i32) {
    %c0_i32 = arith.constant 0 : i32
    %c0_i32_0 = arith.constant 0 : i32
    return %arg0, %c0_i32 : i32, i32
  }
  func.func @transform_4(%arg0: i32, %arg1: i32) -> (i32, i32) {
    %c0_i32 = arith.constant 0 : i32
    %c0_i32_0 = arith.constant 0 : i32
    %c0_i32_1 = arith.constant 0 : i32
    return %c0_i32, %c0_i32_0 : i32, i32
  }
  func.func @transform_5(%arg0: i32, %arg1: i32) -> (i32, i32) {
    %c0_i32 = arith.constant 0 : i32
    %c0_i32_0 = arith.constant 0 : i32
    %c0_i32_1 = arith.constant 0 : i32
    return %c0_i32, %c0_i32_0 : i32, i32
  }
  func.func @transform_6(%arg0: i32, %arg1: i32) -> (i32, i32) {
    %c0_i32 = arith.constant 0 : i32
    %c0_i32_0 = arith.constant 0 : i32
    return %arg0, %c0_i32 : i32, i32
  }
}

module attributes {stable_mosaic.version = 11 : i64} {
  func.func @_linear_kernel(%arg0: i32, %arg1: i32, %arg2: i32, %arg3: memref<16x96xbf16, #tpu.memory_space<vmem>>, %arg4: memref<96x128xbf16, #tpu.memory_space<vmem>>, %arg5: memref<1x128xf32, #tpu.memory_space<vmem>>, %arg6: memref<16x128xbf16, #tpu.memory_space<vmem>>, %arg7: memref<16x128xf32, #tpu.memory_space<vmem>>) attributes {dimension_semantics = [#tpu.dimension_semantics<parallel>, #tpu.dimension_semantics<parallel>, #tpu.dimension_semantics<arbitrary>], iteration_bounds = array<i64: 1, 3, 1>, scalar_prefetch = 0 : i64, scratch_operands = 1 : i64, tpu.core_type = #tpu.core_type<tc>, window_params = [{transform_indices = @transform_0, window_bounds = array<i64: 16, 96>}, {transform_indices = @transform_1, window_bounds = array<i64: 96, 128>}, {transform_indices = @transform_2, window_bounds = array<i64: 1, 128>}, {transform_indices = @transform_3, window_bounds = array<i64: 16, 128>}]} {
    %c0_i32 = arith.constant 0 : i32
    %0 = arith.cmpi eq, %arg2, %c0_i32 : i32
    %1 = arith.extui %0 : i1 to i32
    %c0_i32_0 = arith.constant 0 : i32
    %2 = arith.cmpi ne, %1, %c0_i32_0 : i32
    scf.if %2 {
      %cst_10 = arith.constant 0.000000e+00 : f32
      %12 = vector.broadcast %cst_10 : f32 to vector<16x128xf32>
      %c0_11 = arith.constant 0 : index
      %c0_12 = arith.constant 0 : index
      %13 = vector.load %arg7[%c0_11, %c0_12] : memref<16x128xf32, #tpu.memory_space<vmem>>, vector<16x128xf32>
      tpu.vector_store %arg7[%c0_11, %c0_12], %12 {strides = array<i32>} : memref<16x128xf32, #tpu.memory_space<vmem>>, vector<16x128xf32>,
    } else {
    }
    %c0 = arith.constant 0 : index
    %c0_1 = arith.constant 0 : index
    %3 = vector.load %arg7[%c0, %c0_1] : memref<16x128xf32, #tpu.memory_space<vmem>>, vector<16x128xf32>
    %c0_2 = arith.constant 0 : index
    %c0_3 = arith.constant 0 : index
    %4 = vector.load %arg3[%c0_2, %c0_3] : memref<16x96xbf16, #tpu.memory_space<vmem>>, vector<16x96xbf16>
    %c0_4 = arith.constant 0 : index
    %c0_5 = arith.constant 0 : index
    %5 = vector.load %arg4[%c0_4, %c0_5] : memref<96x128xbf16, #tpu.memory_space<vmem>>, vector<96x128xbf16>
    %cst = arith.constant dense<0.000000e+00> : vector<16x128xf32>
    %6 = tpu.matmul %4, %5, %cst {dimension_numbers = #tpu.dot_dimension_numbers<[1], [0], [0], [1], [0, 0, 1, 1], [], []>} : vector<16x96xbf16>, vector<96x128xbf16>, vector<16x128xf32> -> vector<16x128xf32>
    %7 = arith.addf %3, %6 : vector<16x128xf32>
    %c0_6 = arith.constant 0 : index
    %c0_7 = arith.constant 0 : index
    %8 = vector.load %arg7[%c0_6, %c0_7] : memref<16x128xf32, #tpu.memory_space<vmem>>, vector<16x128xf32>
    tpu.vector_store %arg7[%c0_6, %c0_7], %7 {strides = array<i32>} : memref<16x128xf32, #tpu.memory_space<vmem>>, vector<16x128xf32>,
    %c0_i32_8 = arith.constant 0 : i32
    %9 = arith.cmpi eq, %arg2, %c0_i32_8 : i32
    %10 = arith.extui %9 : i1 to i32
    %c0_i32_9 = arith.constant 0 : i32
    %11 = arith.cmpi ne, %10, %c0_i32_9 : i32
    scf.if %11 {
      %c0_10 = arith.constant 0 : index
      %c0_11 = arith.constant 0 : index
      %12 = vector.load %arg7[%c0_10, %c0_11] : memref<16x128xf32, #tpu.memory_space<vmem>>, vector<16x128xf32>
      %c0_12 = arith.constant 0 : index
      %c0_13 = arith.constant 0 : index
      %13 = vector.load %arg5[%c0_12, %c0_13] : memref<1x128xf32, #tpu.memory_space<vmem>>, vector<1x128xf32>
      %14 = vector.broadcast %13 : vector<1x128xf32> to vector<16x128xf32>
      %15 = arith.addf %12, %14 : vector<16x128xf32>
      %cst_14 = arith.constant 5.000000e-01 : f32
      %16 = vector.broadcast %cst_14 : f32 to vector<16x128xf32>
      %17 = arith.mulf %16, %15 : vector<16x128xf32>
      %cst_15 = arith.constant 4.471500e-02 : f32
      %18 = vector.broadcast %cst_15 : f32 to vector<16x128xf32>
      %19 = arith.mulf %18, %15 : vector<16x128xf32>
      %20 = arith.mulf %19, %15 : vector<16x128xf32>
      %21 = arith.mulf %20, %15 : vector<16x128xf32>
      %22 = arith.addf %15, %21 : vector<16x128xf32>
      %cst_16 = arith.constant 0.797884583 : f32
      %23 = vector.broadcast %cst_16 : f32 to vector<16x128xf32>
      %24 = arith.mulf %23, %22 : vector<16x128xf32>
      %25 = math.tanh %24 : vector<16x128xf32>
      %cst_17 = arith.constant 1.000000e+00 : f32
      %26 = vector.broadcast %cst_17 : f32 to vector<16x128xf32>
      %27 = arith.addf %26, %25 : vector<16x128xf32>
      %28 = arith.mulf %17, %27 : vector<16x128xf32>
      %29 = arith.truncf %28 : vector<16x128xf32> to vector<16x128xbf16>
      %c0_18 = arith.constant 0 : index
      %c0_19 = arith.constant 0 : index
      %30 = vector.load %arg6[%c0_18, %c0_19] : memref<16x128xbf16, #tpu.memory_space<vmem>>, vector<16x128xbf16>
      tpu.vector_store %arg6[%c0_18, %c0_19], %29 {strides = array<i32>} : memref<16x128xbf16, #tpu.memory_space<vmem>>, vector<16x128xbf16>,
    } else {
    }
    return
  }
  func.func @transform_0(%arg0: i32, %arg1: i32, %arg2: i32) -> (i32, i32) {
    %c0_i32 = arith.constant 0 : i32
    return %arg0, %arg2 : i32, i32
  }
  func.func @transform_1(%arg0: i32, %arg1: i32, %arg2: i32) -> (i32, i32) {
    %c0_i32 = arith.constant 0 : i32
    return %arg2, %arg1 : i32, i32
  }
  func.func @transform_2(%arg0: i32, %arg1: i32, %arg2: i32) -> (i32, i32) {
    %c0_i32 = arith.constant 0 : i32
    %c0_i32_0 = arith.constant 0 : i32
    return %c0_i32, %arg1 : i32, i32
  }
  func.func @transform_3(%arg0: i32, %arg1: i32, %arg2: i32) -> (i32, i32) {
    %c0_i32 = arith.constant 0 : i32
    return %arg0, %arg1 : i32, i32
  }
}

module attributes {stable_mosaic.version = 11 : i64} {
  func.func @_pooler_cls_kernel(%arg0: i32, %arg1: memref<2x96xbf16, #tpu.memory_space<vmem>>, %arg2: memref<96x96xf32, #tpu.memory_space<vmem>>, %arg3: memref<1x96xf32, #tpu.memory_space<vmem>>, %arg4: memref<96x2xf32, #tpu.memory_space<vmem>>, %arg5: memref<1x2xf32, #tpu.memory_space<vmem>>, %arg6: memref<2x2xf32, #tpu.memory_space<vmem>>) attributes {dimension_semantics = [#tpu.dimension_semantics<arbitrary>], iteration_bounds = array<i64: 1>, scalar_prefetch = 0 : i64, scratch_operands = 0 : i64, tpu.core_type = #tpu.core_type<tc>, window_params = [{pipeline_mode = #tpu.pipeline_mode<synchronous>, transform_indices = @transform_0, window_bounds = array<i64: 2, 96>}, {pipeline_mode = #tpu.pipeline_mode<synchronous>, transform_indices = @transform_1, window_bounds = array<i64: 96, 96>}, {pipeline_mode = #tpu.pipeline_mode<synchronous>, transform_indices = @transform_2, window_bounds = array<i64: 1, 96>}, {pipeline_mode = #tpu.pipeline_mode<synchronous>, transform_indices = @transform_3, window_bounds = array<i64: 96, 2>}, {pipeline_mode = #tpu.pipeline_mode<synchronous>, transform_indices = @transform_4, window_bounds = array<i64: 1, 2>}, {pipeline_mode = #tpu.pipeline_mode<synchronous>, transform_indices = @transform_5, window_bounds = array<i64: 2, 2>}]} {
    %c0 = arith.constant 0 : index
    %c0_0 = arith.constant 0 : index
    %0 = vector.load %arg1[%c0, %c0_0] : memref<2x96xbf16, #tpu.memory_space<vmem>>, vector<2x96xbf16>
    %1 = arith.extf %0 : vector<2x96xbf16> to vector<2x96xf32>
    %c0_1 = arith.constant 0 : index
    %c0_2 = arith.constant 0 : index
    %2 = vector.load %arg2[%c0_1, %c0_2] : memref<96x96xf32, #tpu.memory_space<vmem>>, vector<96x96xf32>
    %cst = arith.constant dense<0.000000e+00> : vector<2x96xf32>
    %3 = tpu.matmul %1, %2, %cst {dimension_numbers = #tpu.dot_dimension_numbers<[1], [0], [0], [1], [0, 0, 1, 1], [], []>} : vector<2x96xf32>, vector<96x96xf32>, vector<2x96xf32> -> vector<2x96xf32>
    %c0_3 = arith.constant 0 : index
    %c0_4 = arith.constant 0 : index
    %4 = vector.load %arg3[%c0_3, %c0_4] : memref<1x96xf32, #tpu.memory_space<vmem>>, vector<1x96xf32>
    %5 = vector.broadcast %4 : vector<1x96xf32> to vector<2x96xf32>
    %6 = arith.addf %3, %5 : vector<2x96xf32>
    %7 = math.tanh %6 : vector<2x96xf32>
    %c0_5 = arith.constant 0 : index
    %c0_6 = arith.constant 0 : index
    %8 = vector.load %arg4[%c0_5, %c0_6] : memref<96x2xf32, #tpu.memory_space<vmem>>, vector<96x2xf32>
    %cst_7 = arith.constant dense<0.000000e+00> : vector<2x2xf32>
    %9 = tpu.matmul %7, %8, %cst_7 {dimension_numbers = #tpu.dot_dimension_numbers<[1], [0], [0], [1], [0, 0, 1, 1], [], []>} : vector<2x96xf32>, vector<96x2xf32>, vector<2x2xf32> -> vector<2x2xf32>
    %c0_8 = arith.constant 0 : index
    %c0_9 = arith.constant 0 : index
    %10 = vector.load %arg5[%c0_8, %c0_9] : memref<1x2xf32, #tpu.memory_space<vmem>>, vector<1x2xf32>
    %11 = vector.broadcast %10 : vector<1x2xf32> to vector<2x2xf32>
    %12 = arith.addf %9, %11 : vector<2x2xf32>
    %c0_10 = arith.constant 0 : index
    %c0_11 = arith.constant 0 : index
    %13 = vector.load %arg6[%c0_10, %c0_11] : memref<2x2xf32, #tpu.memory_space<vmem>>, vector<2x2xf32>
    tpu.vector_store %arg6[%c0_10, %c0_11], %12 {strides = array<i32>} : memref<2x2xf32, #tpu.memory_space<vmem>>, vector<2x2xf32>,
    return
  }
  func.func @transform_0(%arg0: i32) -> (i32, i32) {
    %c0_i32 = arith.constant 0 : i32
    %c0_i32_0 = arith.constant 0 : i32
    %c0_i32_1 = arith.constant 0 : i32
    return %c0_i32, %c0_i32_0 : i32, i32
  }
  func.func @transform_1(%arg0: i32) -> (i32, i32) {
    %c0_i32 = arith.constant 0 : i32
    %c0_i32_0 = arith.constant 0 : i32
    %c0_i32_1 = arith.constant 0 : i32
    return %c0_i32, %c0_i32_0 : i32, i32
  }
  func.func @transform_2(%arg0: i32) -> (i32, i32) {
    %c0_i32 = arith.constant 0 : i32
    %c0_i32_0 = arith.constant 0 : i32
    %c0_i32_1 = arith.constant 0 : i32
    return %c0_i32, %c0_i32_0 : i32, i32
  }
  func.func @transform_3(%arg0: i32) -> (i32, i32) {
    %c0_i32 = arith.constant 0 : i32
    %c0_i32_0 = arith.constant 0 : i32
    %c0_i32_1 = arith.constant 0 : i32
    return %c0_i32, %c0_i32_0 : i32, i32
  }
  func.func @transform_4(%arg0: i32) -> (i32, i32) {
    %c0_i32 = arith.constant 0 : i32
    %c0_i32_0 = arith.constant 0 : i32
    %c0_i32_1 = arith.constant 0 : i32
    return %c0_i32, %c0_i32_0 : i32, i32
  }
  func.func @transform_5(%arg0: i32) -> (i32, i32) {
    %c0_i32 = arith.constant 0 : i32
    %c0_i32_0 = arith.constant 0 : i32
    %c0_i32_1 = arith.constant 0 : i32
    return %c0_i32, %c0_i32_0 : i32, i32
  }
}

module attributes {stable_mosaic.version = 11 : i64} {
  func.func @_linear_res_ln_kernel(%arg0: i32, %arg1: i32, %arg2: memref<16x128xbf16, #tpu.memory_space<vmem>>, %arg3: memref<128x96xbf16, #tpu.memory_space<vmem>>, %arg4: memref<1x96xf32, #tpu.memory_space<vmem>>, %arg5: memref<16x96xbf16, #tpu.memory_space<vmem>>, %arg6: memref<1x96xf32, #tpu.memory_space<vmem>>, %arg7: memref<1x96xf32, #tpu.memory_space<vmem>>, %arg8: memref<16x96xbf16, #tpu.memory_space<vmem>>, %arg9: memref<16x96xf32, #tpu.memory_space<vmem>>) attributes {dimension_semantics = [#tpu.dimension_semantics<parallel>, #tpu.dimension_semantics<arbitrary>], iteration_bounds = array<i64: 1, 3>, scalar_prefetch = 0 : i64, scratch_operands = 1 : i64, tpu.core_type = #tpu.core_type<tc>, window_params = [{transform_indices = @transform_0, window_bounds = array<i64: 16, 128>}, {transform_indices = @transform_1, window_bounds = array<i64: 128, 96>}, {pipeline_mode = #tpu.pipeline_mode<synchronous>, transform_indices = @transform_2, window_bounds = array<i64: 1, 96>}, {transform_indices = @transform_3, window_bounds = array<i64: 16, 96>}, {pipeline_mode = #tpu.pipeline_mode<synchronous>, transform_indices = @transform_4, window_bounds = array<i64: 1, 96>}, {pipeline_mode = #tpu.pipeline_mode<synchronous>, transform_indices = @transform_5, window_bounds = array<i64: 1, 96>}, {transform_indices = @transform_6, window_bounds = array<i64: 16, 96>}]} {
    %c0_i32 = arith.constant 0 : i32
    %0 = arith.cmpi eq, %arg1, %c0_i32 : i32
    %1 = arith.extui %0 : i1 to i32
    %c0_i32_0 = arith.constant 0 : i32
    %2 = arith.cmpi ne, %1, %c0_i32_0 : i32
    scf.if %2 {
      %cst_9 = arith.constant 0.000000e+00 : f32
      %12 = vector.broadcast %cst_9 : f32 to vector<16x96xf32>
      %c0_10 = arith.constant 0 : index
      %c0_11 = arith.constant 0 : index
      %13 = vector.load %arg9[%c0_10, %c0_11] : memref<16x96xf32, #tpu.memory_space<vmem>>, vector<16x96xf32>
      tpu.vector_store %arg9[%c0_10, %c0_11], %12 {strides = array<i32>} : memref<16x96xf32, #tpu.memory_space<vmem>>, vector<16x96xf32>,
    } else {
    }
    %c0 = arith.constant 0 : index
    %c0_1 = arith.constant 0 : index
    %3 = vector.load %arg9[%c0, %c0_1] : memref<16x96xf32, #tpu.memory_space<vmem>>, vector<16x96xf32>
    %c0_2 = arith.constant 0 : index
    %c0_3 = arith.constant 0 : index
    %4 = vector.load %arg2[%c0_2, %c0_3] : memref<16x128xbf16, #tpu.memory_space<vmem>>, vector<16x128xbf16>
    %c0_4 = arith.constant 0 : index
    %c0_5 = arith.constant 0 : index
    %5 = vector.load %arg3[%c0_4, %c0_5] : memref<128x96xbf16, #tpu.memory_space<vmem>>, vector<128x96xbf16>
    %cst = arith.constant dense<0.000000e+00> : vector<16x96xf32>
    %6 = tpu.matmul %4, %5, %cst {dimension_numbers = #tpu.dot_dimension_numbers<[1], [0], [0], [1], [0, 0, 1, 1], [], []>} : vector<16x128xbf16>, vector<128x96xbf16>, vector<16x96xf32> -> vector<16x96xf32>
    %7 = arith.addf %3, %6 : vector<16x96xf32>
    %c0_6 = arith.constant 0 : index
    %c0_7 = arith.constant 0 : index
    %8 = vector.load %arg9[%c0_6, %c0_7] : memref<16x96xf32, #tpu.memory_space<vmem>>, vector<16x96xf32>
    tpu.vector_store %arg9[%c0_6, %c0_7], %7 {strides = array<i32>} : memref<16x96xf32, #tpu.memory_space<vmem>>, vector<16x96xf32>,
    %c2_i32 = arith.constant 2 : i32
    %9 = arith.cmpi eq, %arg1, %c2_i32 : i32
    %10 = arith.extui %9 : i1 to i32
    %c0_i32_8 = arith.constant 0 : i32
    %11 = arith.cmpi ne, %10, %c0_i32_8 : i32
    scf.if %11 {
      %c0_9 = arith.constant 0 : index
      %c0_10 = arith.constant 0 : index
      %12 = vector.load %arg9[%c0_9, %c0_10] : memref<16x96xf32, #tpu.memory_space<vmem>>, vector<16x96xf32>
      %c0_11 = arith.constant 0 : index
      %c0_12 = arith.constant 0 : index
      %13 = vector.load %arg4[%c0_11, %c0_12] : memref<1x96xf32, #tpu.memory_space<vmem>>, vector<1x96xf32>
      %14 = vector.broadcast %13 : vector<1x96xf32> to vector<16x96xf32>
      %15 = arith.addf %12, %14 : vector<16x96xf32>
      %c0_13 = arith.constant 0 : index
      %c0_14 = arith.constant 0 : index
      %16 = vector.load %arg5[%c0_13, %c0_14] : memref<16x96xbf16, #tpu.memory_space<vmem>>, vector<16x96xbf16>
      %17 = arith.extf %16 : vector<16x96xbf16> to vector<16x96xf32>
      %18 = arith.addf %15, %17 : vector<16x96xf32>
      %cst_15 = arith.constant dense<0.000000e+00> : vector<16xf32>
      %19 = vector.multi_reduction <add>, %18, %cst_15 [1] : vector<16x96xf32> to vector<16xf32>
      %20 = vector.shape_cast %19 : vector<16xf32> to vector<16x1xf32>
      %cst_16 = arith.constant 9.600000e+01 : f32
      %21 = vector.broadcast %cst_16 : f32 to vector<16x1xf32>
      %22 = arith.divf %20, %21 : vector<16x1xf32>
      %23 = vector.broadcast %22 : vector<16x1xf32> to vector<16x96xf32>
      %24 = arith.subf %18, %23 : vector<16x96xf32>
      %25 = arith.mulf %24, %24 : vector<16x96xf32>
      %cst_17 = arith.constant dense<0.000000e+00> : vector<16xf32>
      %26 = vector.multi_reduction <add>, %25, %cst_17 [1] : vector<16x96xf32> to vector<16xf32>
      %27 = vector.shape_cast %26 : vector<16xf32> to vector<16x1xf32>
      %cst_18 = arith.constant 9.600000e+01 : f32
      %28 = vector.broadcast %cst_18 : f32 to vector<16x1xf32>
      %29 = arith.divf %27, %28 : vector<16x1xf32>
      %cst_19 = arith.constant 9.99999996E-13 : f32
      %30 = vector.broadcast %cst_19 : f32 to vector<16x1xf32>
      %31 = arith.addf %29, %30 : vector<16x1xf32>
      %32 = math.rsqrt %31 : vector<16x1xf32>
      %33 = vector.broadcast %32 : vector<16x1xf32> to vector<16x96xf32>
      %34 = arith.mulf %24, %33 : vector<16x96xf32>
      %c0_20 = arith.constant 0 : index
      %c0_21 = arith.constant 0 : index
      %35 = vector.load %arg6[%c0_20, %c0_21] : memref<1x96xf32, #tpu.memory_space<vmem>>, vector<1x96xf32>
      %36 = vector.broadcast %35 : vector<1x96xf32> to vector<16x96xf32>
      %37 = arith.mulf %34, %36 : vector<16x96xf32>
      %c0_22 = arith.constant 0 : index
      %c0_23 = arith.constant 0 : index
      %38 = vector.load %arg7[%c0_22, %c0_23] : memref<1x96xf32, #tpu.memory_space<vmem>>, vector<1x96xf32>
      %39 = vector.broadcast %38 : vector<1x96xf32> to vector<16x96xf32>
      %40 = arith.addf %37, %39 : vector<16x96xf32>
      %41 = arith.truncf %40 : vector<16x96xf32> to vector<16x96xbf16>
      %c0_24 = arith.constant 0 : index
      %c0_25 = arith.constant 0 : index
      %42 = vector.load %arg8[%c0_24, %c0_25] : memref<16x96xbf16, #tpu.memory_space<vmem>>, vector<16x96xbf16>
      tpu.vector_store %arg8[%c0_24, %c0_25], %41 {strides = array<i32>} : memref<16x96xbf16, #tpu.memory_space<vmem>>, vector<16x96xbf16>,
    } else {
    }
    return
  }
  func.func @transform_0(%arg0: i32, %arg1: i32) -> (i32, i32) {
    %c0_i32 = arith.constant 0 : i32
    return %arg0, %arg1 : i32, i32
  }
  func.func @transform_1(%arg0: i32, %arg1: i32) -> (i32, i32) {
    %c0_i32 = arith.constant 0 : i32
    %c0_i32_0 = arith.constant 0 : i32
    return %arg1, %c0_i32 : i32, i32
  }
  func.func @transform_2(%arg0: i32, %arg1: i32) -> (i32, i32) {
    %c0_i32 = arith.constant 0 : i32
    %c0_i32_0 = arith.constant 0 : i32
    %c0_i32_1 = arith.constant 0 : i32
    return %c0_i32, %c0_i32_0 : i32, i32
  }
  func.func @transform_3(%arg0: i32, %arg1: i32) -> (i32, i32) {
    %c0_i32 = arith.constant 0 : i32
    %c0_i32_0 = arith.constant 0 : i32
    return %arg0, %c0_i32 : i32, i32
  }
  func.func @transform_4(%arg0: i32, %arg1: i32) -> (i32, i32) {
    %c0_i32 = arith.constant 0 : i32
    %c0_i32_0 = arith.constant 0 : i32
    %c0_i32_1 = arith.constant 0 : i32
    return %c0_i32, %c0_i32_0 : i32, i32
  }
  func.func @transform_5(%arg0: i32, %arg1: i32) -> (i32, i32) {
    %c0_i32 = arith.constant 0 : i32
    %c0_i32_0 = arith.constant 0 : i32
    %c0_i32_1 = arith.constant 0 : i32
    return %c0_i32, %c0_i32_0 : i32, i32
  }
  func.func @transform_6(%arg0: i32, %arg1: i32) -> (i32, i32) {
    %c0_i32 = arith.constant 0 : i32
    %c0_i32_0 = arith.constant 0 : i32
    return %arg0, %c0_i32 : i32, i32
  }
}

</mosaic_0001>

<bundles_post_ra>
// kernel: kmer_bert_forward.15
= control target key start
LH: loop header
LB: loop body
LE: loop exit
PB: predicated region body
PF: predicated region fallthrough
CT: control target
= control target key end

     0   :  { %vm19_vm0 = vcmask 785408   ;;  %v202_v0 = vmov 0.0   ;;  %vm203_vm1 = vmmov 0   ;;  %vm150_vm2 = vcmask 781312   ;;  %s259_s1 = inlined_call_operand.vmem [shape: bf16[96,96], index: 1, kind: input, shape index: {}]   ;;  %s260_s0 = inlined_call_operand.vmem [shape: bf16[16,96], index: 0, kind: input, shape index: {}]   ;;  %s261_s2 = inlined_call_operand.vmem [shape: f32[1,96], index: 2, kind: input, shape index: {}]   ;;  %s262_s3 = inlined_call_operand.vmem [shape: bf16[16,96], index: 3, kind: output, shape index: {}]  }
   0x1   :  { %177 = vmatprep.subr.bf16.mxu0 %v202_v0  ;;  %v195_v1 = vld [vmem:[%s259_s1 + $0x28] sm:$0xff]   ;;  %189 = vmatprep.mubr.msk.bf16.mxu0 %vm203_vm1, %v202_v0  ;;  %20 = vst.msk [vmem:[#allocation2] sm:$0xff] %vm19_vm0, %v202_v0  ;;  %21 = vst.msk [vmem:[#allocation2 + $0x8] sm:$0xff] %vm19_vm0, %v202_v0  ;;  %v196_v2 = vld [vmem:[%s259_s1 + $0x20] sm:$0xff]  }
   0x2   :  { %178 = vmatpush3.bf16.msra.mxu0 %v195_v1  ;;  %v197_v3 = vld [vmem:[%s259_s1 + $0x18] sm:$0xff]   ;;  %v198_v4 = vld [vmem:[%s259_s1 + $0x10] sm:$0xff]   ;;  %v199_v5 = vld [vmem:[%s259_s1 + $0x8] sm:$0xff]  }
   0x3   :  { %179 = vmatprep.subr.bf16.mxu0 %v202_v0  ;;  %v200_v6 = vld [vmem:[%s259_s1] sm:$0xff]  }
   0x4   :  { %v201_v7 = vld [vmem:[%s260_s0] sm:$0xff]  }
   0x5   :  { %v165_v16 = vld [vmem:[%s261_s2] ss:$0 sm:$0xff] }
   0x6   :  { %180 = vmatpush3.bf16.msra.mxu0 %v196_v2 }
   0x7   :  { %181 = vmatprep.subr.bf16.mxu0 %v202_v0 }
   0x8   :  { %v22_v8 = vld [vmem:[#allocation2] sm:$0xff]  ;;  %v23_v12 = vld [vmem:[#allocation2 + $0x8] sm:$0xff] }
   0xa   :  { %182 = vmatpush3.bf16.msra.mxu0 %v197_v3 }
   0xb   :  { %183 = vmatprep.subr.bf16.mxu0 %v202_v0 }
   0xe   :  { %184 = vmatpush3.bf16.msra.mxu0 %v198_v4 }
   0xf   :  { %185 = vmatprep.subr.bf16.mxu0 %v202_v0 }
  0x12   :  { %186 = vmatpush3.bf16.msra.mxu0 %v199_v5 }
  0x13   :  { %187 = vmatprep.subr.bf16.mxu0 %v202_v0 }
  0x16   :  { %188 = vmatpush3.bf16.msra.mxu0 %v200_v6 }
  0x19   :  { %190 = vmatmul.mubr.msk.bf16.vlgmr.msra.gmra.mxu0 %vm19_vm0, %v201_v7 }
  0xd9   :  { %v117_v9 = vpop.f32.mrf.mxu0 }
  0xda   :  { %v124_v10 = vadd.f32 %v117_v9, %v22_v8 }
  0xdb   :  { %v191_v11 = vpop.f32.mrf.mxu0 }
  0xdc   :  { %126 = vst.msk [vmem:[#allocation2] sm:$0xff] %vm19_vm0, %v124_v10 }
  0xdd   :  { %v120_v13 = vpop.f32.mrf.mxu0 }
  0xde   :  { %v125_v14 = vadd.f32 %v120_v13, %v23_v12 }
  0xdf   :  { %v192_v15 = vpop.f32.mrf.mxu0 }
  0xe0   :  { %127 = vst.msk [vmem:[#allocation2 + $0x8] sm:$0xff] %vm19_vm0, %v125_v14 }
  0xe3   :  { %v131_v17 = vld [vmem:[#allocation2] sm:$0xff] }
  0xe4   :  { %v140_v18 = vadd.f32 %v165_v16, %v131_v17 }
  0xe6   :  { %v168_v19 = vpack.c.bf16 %v140_v18, %v140_v18 }
  0xe7   :  { %v132_v20 = vld [vmem:[#allocation2 + $0x8] sm:$0xff] }
  0xe8   :  { %151 = vst.msk [vmem:[%s262_s3] sm:$0xf] %vm150_vm2, %v168_v19  ;;  %v141_v21 = vadd.f32 %v165_v16, %v132_v20 }
  0xea   :  { %v169_v22 = vpack.c.bf16 %v141_v21, %v141_v21 }
  0xec   :  { %152 = vst.msk [vmem:[%s262_s3 + $0x4] sm:$0xf] %vm150_vm2, %v169_v22 }

// kernel: kmer_bert_forward.16
= control target key start
LH: loop header
LB: loop body
LE: loop exit
PB: predicated region body
PF: predicated region fallthrough
CT: control target
= control target key end

     0   :  { %v246_v1 = vmov 0   ;;  %vm107_vm0 = vcmask 785408   ;;  %vm20_vm1 = vcmask 523264   ;;  %v247_v14 = vmov 0.0   ;;  %s320_s1 = inlined_call_operand.vmem [shape: bf16[96,192], index: 1, kind: input, shape index: {}]   ;;  %s321_s0 = inlined_call_operand.vmem [shape: bf16[16,96], index: 0, kind: input, shape index: {}]   ;;  %s322_s2 = inlined_call_operand.vmem [shape: f32[1,192], index: 2, kind: input, shape index: {}]   ;;  %s323_s3 = inlined_call_operand.vmem [shape: bf16[16,192], index: 3, kind: output, shape index: {}]  }
   0x1   :  { %v227_v0 = vld [vmem:[%s320_s1 + $0x54] ss:$8 sps:$4 sm:$0xff]   ;;  %143 = vmatprep.mubr.bf16.mxu0 %v246_v1  ;;  %v229_v2 = vld [vmem:[%s320_s1 + $0x50] ss:$8 sps:$4 sm:$0xff]   ;;  %v230_v3 = vld [vmem:[%s320_s1 + $0x44] ss:$8 sps:$4 sm:$0xff]   ;;  %v172_v15 = vlaneseq }
   0x2   :  { %115 = vmatprep.subr.bf16.mxu0 %v227_v0  ;;  %v232_v4 = vld [vmem:[%s320_s1 + $0x40] ss:$8 sps:$4 sm:$0xff]   ;;  %v233_v5 = vld [vmem:[%s320_s1 + $0x34] ss:$8 sps:$4 sm:$0xff]   ;;  %v235_v6 = vld [vmem:[%s320_s1 + $0x30] ss:$8 sps:$4 sm:$0xff]  }
   0x3   :  { %116 = vmatpush1.bf16.msra.mxu0 %v229_v2  ;;  %v236_v7 = vld [vmem:[%s320_s1 + $0x24] ss:$8 sps:$4 sm:$0xff]   ;;  %v238_v8 = vld [vmem:[%s320_s1 + $0x20] ss:$8 sps:$4 sm:$0xff]   ;;  %v239_v9 = vld [vmem:[%s320_s1 + $0x14] ss:$8 sps:$4 sm:$0xff]  }
   0x4   :  { %117 = vmatprep.subr.bf16.mxu0 %v230_v3  ;;  %v241_v10 = vld [vmem:[%s320_s1 + $0x10] ss:$8 sps:$4 sm:$0xff]   ;;  %v242_v11 = vld [vmem:[%s320_s1 + $0x4] ss:$8 sps:$4 sm:$0xff]   ;;  %v244_v12 = vld [vmem:[%s320_s1] ss:$8 sps:$4 sm:$0xff]  }
   0x5   :  { %v245_v13 = vld [vmem:[%s321_s0] sm:$0xff]   ;;  %21 = vst.msk [vmem:[#allocation2 + $0x8] sm:$0xff] %vm20_vm1, %v247_v14  ;;  %23 = vst.msk [vmem:[#allocation2 + $0x18] sm:$0xff] %vm20_vm1, %v247_v14  ;;  %v173_v18 = vshrl.u32 %v172_v15, 7  ;;  %vm198_vm2 = vcmask 1043456   ;;  %vm199_vm3 = vcmask 523268  }
   0x6   :  { %v170_v25 = vld [vmem:[%s322_s2] sm:$0x3]  ;;  %vm200_vm4 = vmor %vm199_vm3, %vm198_vm2 }
   0x7   :  { %118 = vmatpush1.bf16.msra.mxu0 %v232_v4  ;;  %v174_v23 = vsub.s32 0, %v173_v18  ;;  %v178_v24 = vsub.s32 1, %v173_v18 }
   0x8   :  { %119 = vmatprep.subr.bf16.mxu0 %v233_v5 }
   0x9   :  { %v175_v28 = vrot.slane %v170_v25, %v174_v23  ;;  %v179_v29 = vrot.slane %v170_v25, %v178_v24 }
   0xb   :  { %120 = vmatpush1.bf16.msra.mxu0 %v235_v6 }
   0xc   :  { %121 = vmatprep.subr.bf16.mxu0 %v236_v7  ;;  %v25_v17 = vld [vmem:[#allocation2 + $0x8] sm:$0xff]  ;;  %v27_v22 = vld [vmem:[#allocation2 + $0x18] sm:$0xff] }
   0xf   :  { %122 = vmatpush1.bf16.msra.mxu0 %v238_v8 }
  0x10   :  { %123 = vmatprep.subr.bf16.mxu0 %v239_v9 }
  0x13   :  { %124 = vmatpush1.bf16.msra.mxu0 %v241_v10 }
  0x14   :  { %125 = vmatprep.subr.bf16.mxu0 %v242_v11 }
  0x17   :  { %126 = vmatpush1.bf16.msra.mxu0 %v244_v12 }
  0x1a   :  { %220 = vmatmul.mubr.msk.bf16.vlgmr.msra.gmra.mxu0 %vm107_vm0, %v245_v13 }
  0xda   :  { %v145_v16 = vpop.f32.mrf.mxu0 }
  0xdb   :  { %v182_v31 = vadd.f32 %v175_v28, %v145_v16 }
  0xdc   :  { %v147_v19 = vpop.f32.mrf.mxu0 }
  0xdd   :  { %v155_v20 = vadd.f32 %v147_v19, %v25_v17 }
  0xde   :  { %v149_v21 = vpop.f32.mrf.mxu0 }
  0xdf   :  { %160 = vst.msk [vmem:[#allocation2 + $0x8] sm:$0xff] %vm20_vm1, %v155_v20  ;;  %v184_v35 = vadd.f32 %v175_v28, %v149_v21 }
  0xe0   :  { %v151_v26 = vpop.f32.mrf.mxu0 }
  0xe1   :  { %v157_v27 = vadd.f32 %v151_v26, %v27_v22 }
  0xe3   :  { %162 = vst.msk [vmem:[#allocation2 + $0x18] sm:$0xff] %vm20_vm1, %v157_v27 }
  0xe6   :  { %v167_v30 = vld [vmem:[#allocation2 + $0x8] sm:$0xff] }
  0xe7   :  { %v183_v32 = vadd.f32 %v179_v29, %v167_v30 }
  0xe9   :  { %v223_v33 = vpack.c.bf16 %v183_v32, %v182_v31 }
  0xea   :  { %v169_v34 = vld [vmem:[#allocation2 + $0x18] sm:$0xff] }
  0xeb   :  { %201 = vst.msk [vmem:[%s323_s3] sm:$0xff] %vm200_vm4, %v223_v33  ;;  %v185_v36 = vadd.f32 %v179_v29, %v169_v34 }
  0xed   :  { %v224_v37 = vpack.c.bf16 %v185_v36, %v184_v35 }
  0xef   :  { %202 = vst.msk [vmem:[%s323_s3 + $0x8] sm:$0xff] %vm200_vm4, %v224_v37 }

// kernel: kmer_bert_forward.14
= control target key start
LH: loop header
LB: loop body
LE: loop exit
PB: predicated region body
PF: predicated region fallthrough
CT: control target
= control target key end

     0   :  { %vm16_vm0 = vcmask 785408   ;;  %vm70_vm1 = vcmask 781312   ;;  %s129_s0 = inlined_call_operand.vmem [shape: f32[16,96], index: 0, kind: input, shape index: {}]   ;;  %s130_s1 = inlined_call_operand.vmem [shape: f32[1,96], index: 1, kind: input, shape index: {}]   ;;  %s131_s2 = inlined_call_operand.vmem [shape: f32[1,96], index: 2, kind: input, shape index: {}]   ;;  %s132_s3 = inlined_call_operand.vmem [shape: bf16[16,96], index: 3, kind: output, shape index: {}]  }
   0x1   :  { %v14_v0 = vld [vmem:[%s129_s0] sm:$0xff]  ;;  %v15_v1 = vld [vmem:[%s129_s0 + $0x8] sm:$0xff] }
   0x2   :  { %v17_v2 = vsel %vm16_vm0, %v14_v0, 0.0  ;;  %v20_v3 = vsel %vm16_vm0, %v15_v1, 0.0  ;;  %v77_v21 = vld [vmem:[%s130_s1] ss:$0 sm:$0xff] }
   0x3   :  { %18 = vadd.xlane.f32.xlu0 %v17_v2  ;;  %v78_v23 = vld [vmem:[%s131_s2] ss:$0 sm:$0xff] }
   0x7   :  { %21 = vadd.xlane.f32.xlu0 %v20_v3 }
  0x8c   :  { %v19_v4 = vpop.xlane.xlu0 %18 }
  0x8d   :  { %v24_v5 = vmul.f32 0.010416667, %v19_v4 }
  0x8f   :  { %v26_v6 = vsub.f32 %v14_v0, %v24_v5 }
  0x90   :  { %v22_v7 = vpop.xlane.xlu0 %21 }
  0x91   :  { %v25_v8 = vmul.f32 0.010416667, %v22_v7  ;;  %v28_v9 = vmul.f32 %v26_v6, %v26_v6 }
  0x93   :  { %v27_v10 = vsub.f32 %v15_v1, %v25_v8  ;;  %v30_v11 = vsel %vm16_vm0, %v28_v9, 0.0 }
  0x94   :  { %31 = vadd.xlane.f32.xlu1 %v30_v11 }
  0x95   :  { %v29_v12 = vmul.f32 %v27_v10, %v27_v10 }
  0x97   :  { %v33_v13 = vsel %vm16_vm0, %v29_v12, 0.0 }
  0x98   :  { %34 = vadd.xlane.f32.xlu1 %v33_v13 }
 0x11d   :  { %v32_v14 = vpop.xlane.xlu1 %31 }
 0x11e   :  { %v36_v15 = vmul.f32 0.010416667, %v32_v14 }
 0x120   :  { %v38_v16 = vadd.f32 1e-12, %v36_v15 }
 0x121   :  { %v35_v17 = vpop.xlane.xlu1 %34 }
 0x122   :  { %83 = vrsqrt.f32 %v38_v16  ;;  %v37_v18 = vmul.f32 0.010416667, %v35_v17 }
 0x124   :  { %v39_v19 = vadd.f32 1e-12, %v37_v18 }
 0x126   :  { %85 = vrsqrt.f32 %v39_v19 }
 0x12f   :  { %v84_v20 = vpop.eup %83 }
 0x130   :  { %v42_v22 = vmul.f32 %v84_v20, %v26_v6 }
 0x132   :  { %v51_v24 = vmul.f32 %v77_v21, %v42_v22 }
 0x133   :  { %v86_v25 = vpop.eup %85 }
 0x134   :  { %v60_v26 = vadd.f32 %v78_v23, %v51_v24  ;;  %v43_v27 = vmul.f32 %v86_v25, %v27_v10 }
 0x136   :  { %v81_v28 = vpack.c.bf16 %v60_v26, %v60_v26  ;;  %v52_v29 = vmul.f32 %v77_v21, %v43_v27 }
 0x138   :  { %71 = vst.msk [vmem:[%s132_s3] sm:$0xf] %vm70_vm1, %v81_v28  ;;  %v61_v30 = vadd.f32 %v78_v23, %v52_v29 }
 0x13a   :  { %v82_v31 = vpack.c.bf16 %v61_v30, %v61_v30 }
 0x13c   :  { %72 = vst.msk [vmem:[%s132_s3 + $0x4] sm:$0xf] %vm70_vm1, %v82_v31 }

// kernel: kmer_bert_forward.17
= control target key start
LH: loop header
LB: loop body
LE: loop exit
PB: predicated region body
PF: predicated region fallthrough
CT: control target
= control target key end

     0   :  { %s2114_s12 = smov 0   ;;  %s2116_s13 = smov 0   ;;  %s2492_s0 = inlined_call_operand.vmem [shape: bf16[2,8,96], index: 0, kind: input, shape index: {}]   ;;  %s2493_s1 = inlined_call_operand.vmem [shape: bf16[2,8,192], index: 1, kind: input, shape index: {}]   ;;  %s2494_s2 = inlined_call_operand.vmem [shape: f32[2,1,8], index: 2, kind: input, shape index: {}]   ;;  %s2495_s3 = inlined_call_operand.vmem [shape: bf16[2,8,96], index: 3, kind: output, shape index: {}]  }
   0x1   :  { %s2118_s14 = smov 0  }
   0x2 LB: > { %s25_s15 = sadd.s32 1, %s2071_s13  ;;  %p1734_p0 = scmp.ge.s32.totalorder %s2075_s14, 1  ;;  %s2075_s14 = sphi %s2118_s14, %s13_s14   ;;  %s2071_s13 = sphi %s2116_s13, %s2497_s13   ;;  %s2067_s12 = sphi %s2114_s12, %s2496_s12  }
   0x3   : > { %p27_p1 = scmp.ge.s32.totalorder %s25_s15, 2  ;;  %p173_p2 = scmp.lt.s32.totalorder %s2075_s14, 3 }
   0x5   : > { %s2499_s15 = smov (%p27_p1, %s25_s15), 0  ;;  %p174_p3 = pnand %p1734_p0, %p173_p2 }
   0x6   : > { %p209_p4 = scmp.lt.s32.totalorder (!%p174_p3), %s2067_s12, 1  ;;  %s2079_s27 = smov (!%p174_p3), 32  }
   0x7   : > { %177 = sbr.rel (%p174_p3) target bundleno = 1512 (0x5e8), region = 32  ;;  %s2080_s28 = smov (!%p174_p3), 120  }
   0x8   : > { %s2081_s29 = smov (!%p174_p3), 112   ;;  %s2082_s30 = smov (!%p174_p3), 104  }
   0x9   : > { %s2083_s4 = smov (!%p174_p3), 96   ;;  %s2084_s5 = smov (!%p174_p3), 88  }
   0xa   : > { %s2085_s6 = smov (!%p174_p3), 80   ;;  %s2086_s7 = smov (!%p174_p3), 72  }
   0xb   : > { %s2087_s8 = smov (!%p174_p3), 64   ;;  %s2088_s9 = smov (!%p174_p3), 56  }
   0xc   : > { %v2077_v0 = vmov 0.0   ;;  %vm2078_vm0 = vmmov 0   ;;  %s2501_s12 = smov (!%p209_p4, %s2067_s12), 1  ;;  %vm243_vm1 = vcmask 64512   ;;  %s2089_s10 = smov 48   ;;  %vm310_vm2 = vcmask 1043456  }
   0xd   : > { %1818 = vmatprep.subr.bf16.mxu0 %v2077_v0  ;;  %1820 = vmatprep.mubr.msk.bf16.mxu0 %vm2078_vm0, %v2077_v0  ;;  %s1769_s16 = sshll.u32 %s2501_s12, 3  ;;  %s1735_s20 = sshll.u32 %s2501_s12, 2  ;;  %vm1612_vm3 = vcmask 130048   ;;  %vm1614_vm4 = vcmask 195584   ;;  %vm1616_vm5 = vcmask 261120   ;;  %vm1618_vm6 = vcmask 326656  }
   0xe   : > { %1824 = vmatprep.subr.bf16.mxu1 %v2077_v0  ;;  %1826 = vmatprep.mubr.msk.bf16.mxu1 %vm2078_vm0, %v2077_v0  ;;  %s220_s19 = scalar_lea.vmem %s2493_s1, %s1769_s16  ;;  %s215_s23 = scalar_lea.vmem %s2492_s0, %s1735_s20  ;;  %vm1620_vm7 = vcmask 392192   ;;  %vm1622_vm8 = vcmask 457728   ;;  %vm1624_vm9 = vcmask 523264   ;;  %vm1626_vm10 = vcmask 588800  }
   0xf   : > { %v2145_v1 = vld [vmem:[%s220_s19] sm:$0xff]  ;;  %s223_s26 = scalar_lea.vmem %s2494_s2, %s2501_s12  ;;  %s2090_s11 = smov 40   ;;  %vm1628_vm11 = vcmask 654336   ;;  %vm1630_vm12 = vcmask 719872   ;;  %vm1633_vm13 = vcmask 781312  }
  0x10   : > { %v248_v2 = vsel %vm243_vm1, %v2145_v1, 0  ;;  %v233_v3 = vld [vmem:[%s215_s23] sm:$0xf]  ;;  %v2168_v12 = vcombine.low %v2145_v1, %v2145_v1  ;;  %s2091_s16 = smov 16   ;;  %s2092_s17 = smov 8  }
  0x11   : > { %1819 = vmatpush3.bf16.xpose.msra.mxu0 %v248_v2  ;;  %v234_v4 = vmul.bf16 1052065461, %v233_v3  ;;  %v2162_v5 = vld [vmem:[%s223_s26] ss:$0 sm:$0xff]  ;;  %s2093_s18 = smov 24   ;;  %s230_s22 = scalar_lea.vmem %s2495_s3, %s1735_s20 }
  0x12   : > { %1836 = vmatprep.subr.bf16.mxu0 %v2077_v0  ;;  %305 = vrot.lane.b32.xlu1 %v2168_v12, %s2079_s27 }
  0x13   : > { %v1743_v13 = vcombine.low %v234_v4, %v234_v4 }
  0x16   : > { %359 = vrot.lane.b32.xlu1 %v2168_v12, %s2080_s28 }
  0x18   : > { %1821 = vmatmul.mubr.msk.bf16.vlgmr.msra.gmra.mxu0 %vm243_vm1, %v234_v4 }
  0x19   : > { %1838 = vmatprep.mubr.msk.bf16.mxu0 %vm2078_vm0, %v2077_v0 }
  0x1a   : > { %469 = vrot.lane.b32.xlu1 %v2168_v12, %s2081_s29 }
  0x1e   : > { %467 = vrot.lane.b32.xlu1 %v1743_v13, %s2081_s29 }
  0x22   : > { %579 = vrot.lane.b32.xlu1 %v2168_v12, %s2082_s30 }
  0x26   : > { %577 = vrot.lane.b32.xlu1 %v1743_v13, %s2082_s30 }
  0x2a   : > { %689 = vrot.lane.b32.xlu1 %v2168_v12, %s2083_s4 }
  0x2e   : > { %687 = vrot.lane.b32.xlu1 %v1743_v13, %s2083_s4 }
  0x32   : > { %797 = vrot.lane.b32.xlu1 %v1743_v13, %s2084_s5 }
  0x36   : > { %907 = vrot.lane.b32.xlu1 %v1743_v13, %s2085_s6 }
  0x3a   : > { %1017 = vrot.lane.b32.xlu1 %v1743_v13, %s2086_s7 }
  0x3e   : > { %1127 = vrot.lane.b32.xlu1 %v1743_v13, %s2087_s8 }
  0x42   : > { %1237 = vrot.lane.b32.xlu1 %v1743_v13, %s2088_s9 }
  0x46   : > { %1347 = vrot.lane.b32.xlu1 %v1743_v13, %s2089_s10 }
  0x4a   : > { %1457 = vrot.lane.b32.xlu1 %v1743_v13, %s2090_s11 }
  0x84   : > { %v306_v19 = vpop.permute.xlu1 %305 }
  0x85   : > { %v312_v20 = vsel %vm310_vm2, %v306_v19, 0 }
  0x86   : > { %1825 = vmatpush3.bf16.msra.mxu1 %v312_v20 }
  0x87   : > { %1830 = vmatprep.subr.bf16.mxu1 %v2077_v0 }
  0x88   : > { %v360_v22 = vpop.permute.xlu1 %359 }
  0x89   : > { %v365_v26 = vsel %vm243_vm1, %v360_v22, 0 }
  0x8c   : > { %v470_v24 = vpop.permute.xlu1 %469 }
  0x8d   : > { %v475_v30 = vsel %vm243_vm1, %v470_v24, 0 }
  0x90   : > { %v468_v28 = vpop.permute.xlu1 %467 }
  0x94   : > { %v580_v31 = vpop.permute.xlu1 %579 }
  0x95   : > { %v585_v33 = vsel %vm243_vm1, %v580_v31, 0 }
  0x98   : > { %v578_v32 = vpop.permute.xlu1 %577 }
  0x9c   : > { %v690_v34 = vpop.permute.xlu1 %689 }
  0x9d   : > { %v695_v35 = vsel %vm243_vm1, %v690_v34, 0 }
  0xa0   : > { %v688_v37 = vpop.permute.xlu1 %687 }
  0xa4   : > { %v798_v40 = vpop.permute.xlu1 %797 }
  0xa8   : > { %v908_v43 = vpop.permute.xlu1 %907 }
  0xac   : > { %v1018_v46 = vpop.permute.xlu1 %1017 }
  0xb0   : > { %v1128_v49 = vpop.permute.xlu1 %1127 }
  0xb4   : > { %v1238_v52 = vpop.permute.xlu1 %1237 }
  0xb8   : > { %v1348_v55 = vpop.permute.xlu1 %1347 }
  0xbc   : > { %v1458_v57 = vpop.permute.xlu1 %1457 }
  0xd8   : > { %v284_v6 = vpop.f32.mrf.mxu0 }
  0xd9   : > { %v285_v7 = vadd.f32 %v2162_v5, %v284_v6 }
  0xda   : > { %v1822_v8 = vpop.f32.mrf.mxu0 }
  0xdb   : > { %v290_v9 = vsel %vm243_vm1, %v285_v7, -inf }
  0xdc   : > { %291 = vmax.xlane.f32.xlu0 %v290_v9  ;;  %v287_v10 = vpop.f32.mrf.mxu0 }
  0xde   : > { %v1823_v11 = vpop.f32.mrf.mxu0 }
 0x165   : > { %v292_v14 = vpop.xlane.xlu0 %291 }
 0x166   : > { %v293_v15 = vsub.f32 %v285_v7, %v292_v14 }
 0x168   : > { %v294_v16 = vmul.f32 1.442695, %v293_v15 }
 0x16a   : > { %2005 = vpow2.f32 %v294_v16 }
 0x177   : > { %v2006_v17 = vpop.eup %2005 }
 0x178   : > { %v296_v18 = vsel %vm243_vm1, %v2006_v17, 0.0 }
 0x179   : > { %297 = vadd.xlane.f32.xlu0 %v296_v18 }
 0x18f   : > { %357 = vrot.lane.b32.xlu0 %v1743_v13, %s2080_s28 }
 0x193   : > { %799 = vrot.lane.b32.xlu0 %v2168_v12, %s2084_s5 }
 0x197   : > { %909 = vrot.lane.b32.xlu0 %v2168_v12, %s2085_s6 }
 0x19b   : > { %1019 = vrot.lane.b32.xlu0 %v2168_v12, %s2086_s7 }
 0x19f   : > { %1129 = vrot.lane.b32.xlu0 %v2168_v12, %s2087_s8 }
 0x1a3   : > { %1239 = vrot.lane.b32.xlu0 %v2168_v12, %s2088_s9 }
 0x1a7   : > { %1349 = vrot.lane.b32.xlu0 %v2168_v12, %s2089_s10 }
 0x1ab   : > { %1459 = vrot.lane.b32.xlu0 %v2168_v12, %s2090_s11 }
 0x202   : > { %v298_v21 = vpop.xlane.xlu0 %297 }
 0x203   : > { %2007 = vrcp.f32 %v298_v21 }
 0x206   : > { %v358_v29 = vpop.permute.xlu0 %357 }
 0x20a   : > { %v800_v36 = vpop.permute.xlu0 %799 }
 0x20b   : > { %v805_v38 = vsel %vm243_vm1, %v800_v36, 0 }
 0x20e   : > { %v910_v39 = vpop.permute.xlu0 %909 }
 0x20f   : > { %v915_v41 = vsel %vm243_vm1, %v910_v39, 0 }
 0x210   : > { %v2008_v23 = vpop.eup %2007 }
 0x211   : > { %v300_v25 = vmul.f32 %v2008_v23, %v2006_v17 }
 0x212   : > { %v1020_v42 = vpop.permute.xlu0 %1019 }
 0x213   : > { %v301_v27 = vpack.c.bf16 %v300_v25, %v300_v25  ;;  %v1025_v44 = vsel %vm243_vm1, %v1020_v42, 0 }
 0x215   : > { %1827 = vmatmul.mubr.msk.bf16.vlgmr.msra.gmra.mxu1 %vm243_vm1, %v301_v27 }
 0x216   : > { %1831 = vmatpush3.bf16.xpose.msra.mxu1 %v365_v26  ;;  %1832 = vmatprep.mubr.msk.bf16.mxu1 %vm2078_vm0, %v2077_v0  ;;  %v1130_v45 = vpop.permute.xlu0 %1129 }
 0x217   : > { %1842 = vmatprep.subr.bf16.mxu1 %v2077_v0  ;;  %v1135_v47 = vsel %vm243_vm1, %v1130_v45, 0 }
 0x21a   : > { %v1240_v48 = vpop.permute.xlu0 %1239 }
 0x21b   : > { %v1245_v50 = vsel %vm243_vm1, %v1240_v48, 0 }
 0x21d   : > { %1833 = vmatmul.mubr.msk.bf16.vlgmr.msra.gmra.mxu1 %vm243_vm1, %v358_v29 }
 0x21e   : > { %1843 = vmatpush3.bf16.xpose.msra.mxu1 %v475_v30  ;;  %1844 = vmatprep.mubr.msk.bf16.mxu1 %vm2078_vm0, %v2077_v0  ;;  %v1350_v51 = vpop.permute.xlu0 %1349 }
 0x21f   : > { %1854 = vmatprep.subr.bf16.mxu1 %v2077_v0  ;;  %v1355_v53 = vsel %vm243_vm1, %v1350_v51, 0 }
 0x222   : > { %v1460_v54 = vpop.permute.xlu0 %1459 }
 0x223   : > { %v1465_v56 = vsel %vm243_vm1, %v1460_v54, 0 }
 0x225   : > { %1845 = vmatmul.mubr.msk.bf16.vlgmr.msra.gmra.mxu1 %vm243_vm1, %v468_v28 }
 0x226   : > { %1855 = vmatpush3.bf16.xpose.msra.mxu1 %v585_v33  ;;  %1856 = vmatprep.mubr.msk.bf16.mxu1 %vm2078_vm0, %v2077_v0 }
 0x227   : > { %1866 = vmatprep.subr.bf16.mxu1 %v2077_v0 }
 0x22d   : > { %1857 = vmatmul.mubr.msk.bf16.vlgmr.msra.gmra.mxu1 %vm243_vm1, %v578_v32 }
 0x22e   : > { %1867 = vmatpush3.bf16.xpose.msra.mxu1 %v695_v35  ;;  %1868 = vmatprep.mubr.msk.bf16.mxu1 %vm2078_vm0, %v2077_v0 }
 0x22f   : > { %1878 = vmatprep.subr.bf16.mxu1 %v2077_v0 }
 0x235   : > { %1869 = vmatmul.mubr.msk.bf16.vlgmr.msra.gmra.mxu1 %vm243_vm1, %v688_v37 }
 0x236   : > { %1879 = vmatpush3.bf16.xpose.msra.mxu1 %v805_v38  ;;  %1880 = vmatprep.mubr.msk.bf16.mxu1 %vm2078_vm0, %v2077_v0 }
 0x237   : > { %1890 = vmatprep.subr.bf16.mxu1 %v2077_v0 }
 0x23d   : > { %1881 = vmatmul.mubr.msk.bf16.vlgmr.msra.gmra.mxu1 %vm243_vm1, %v798_v40 }
 0x23e   : > { %1891 = vmatpush3.bf16.xpose.msra.mxu1 %v915_v41  ;;  %1892 = vmatprep.mubr.msk.bf16.mxu1 %vm2078_vm0, %v2077_v0 }
 0x23f   : > { %1902 = vmatprep.subr.bf16.mxu1 %v2077_v0 }
 0x245   : > { %1893 = vmatmul.mubr.msk.bf16.vlgmr.msra.gmra.mxu1 %vm243_vm1, %v908_v43 }
 0x246   : > { %1903 = vmatpush3.bf16.xpose.msra.mxu1 %v1025_v44  ;;  %1904 = vmatprep.mubr.msk.bf16.mxu1 %vm2078_vm0, %v2077_v0 }
 0x247   : > { %1914 = vmatprep.subr.bf16.mxu1 %v2077_v0 }
 0x24d   : > { %1905 = vmatmul.mubr.msk.bf16.vlgmr.msra.gmra.mxu1 %vm243_vm1, %v1018_v46 }
 0x24e   : > { %1915 = vmatpush3.bf16.xpose.msra.mxu1 %v1135_v47  ;;  %1916 = vmatprep.mubr.msk.bf16.mxu1 %vm2078_vm0, %v2077_v0 }
 0x24f   : > { %1926 = vmatprep.subr.bf16.mxu1 %v2077_v0 }
 0x255   : > { %1917 = vmatmul.mubr.msk.bf16.vlgmr.msra.gmra.mxu1 %vm243_vm1, %v1128_v49 }
 0x256   : > { %1927 = vmatpush3.bf16.xpose.msra.mxu1 %v1245_v50  ;;  %1928 = vmatprep.mubr.msk.bf16.mxu1 %vm2078_vm0, %v2077_v0 }
 0x257   : > { %1938 = vmatprep.subr.bf16.mxu1 %v2077_v0 }
 0x25d   : > { %1929 = vmatmul.mubr.msk.bf16.vlgmr.msra.gmra.mxu1 %vm243_vm1, %v1238_v52 }
 0x25e   : > { %1939 = vmatpush3.bf16.xpose.msra.mxu1 %v1355_v53  ;;  %1940 = vmatprep.mubr.msk.bf16.mxu1 %vm2078_vm0, %v2077_v0 }
 0x25f   : > { %1950 = vmatprep.subr.bf16.mxu1 %v2077_v0 }
 0x265   : > { %1941 = vmatmul.mubr.msk.bf16.vlgmr.msra.gmra.mxu1 %vm243_vm1, %v1348_v55 }
 0x266   : > { %1951 = vmatpush3.bf16.xpose.msra.mxu1 %v1465_v56  ;;  %1952 = vmatprep.mubr.msk.bf16.mxu1 %vm2078_vm0, %v2077_v0 }
 0x26d   : > { %1953 = vmatmul.mubr.msk.bf16.vlgmr.msra.gmra.mxu1 %vm243_vm1, %v1458_v57 }
 0x2d5   : > { %v2263_v58 = vpop.f32.mrf.mxu1 }
 0x2d7   : > { %v1828_v59 = vpop.f32.mrf.mxu1 }
 0x2d9   : > { %v351_v60 = vpop.f32.mrf.mxu1 }
 0x2db   : > { %v1829_v61 = vpop.f32.mrf.mxu1 }
 0x2dd   : > { %v401_v62 = vpop.f32.mrf.mxu1 }
 0x2de   : > { %v2266_v63 = vadd.f32 %v2162_v5, %v401_v62 }
 0x2df   : > { %v1834_v2 = vpop.f32.mrf.mxu1 }
 0x2e0   : > { %v407_v3 = vsel %vm243_vm1, %v2266_v63, -inf }
 0x2e1   : > { %408 = vmax.xlane.f32.xlu0 %v407_v3  ;;  %v404_v4 = vpop.f32.mrf.mxu1 }
 0x2e3   : > { %v1835_v6 = vpop.f32.mrf.mxu1 }
 0x2e5   : > { %v511_v7 = vpop.f32.mrf.mxu1 }
 0x2e6   : > { %v2271_v8 = vadd.f32 %v2162_v5, %v511_v7 }
 0x2e7   : > { %v1846_v9 = vpop.f32.mrf.mxu1 }
 0x2e8   : > { %v517_v10 = vsel %vm243_vm1, %v2271_v8, -inf  ;;  %v2325_v9 = vcombine.high %v2145_v1, %v2145_v1 }
 0x2e9   : > { %518 = vmax.xlane.f32.xlu1 %v517_v10  ;;  %v514_v11 = vpop.f32.mrf.mxu1 }
 0x2eb   : > { %v1847_v13 = vpop.f32.mrf.mxu1 }
 0x2ed   : > { %v621_v14 = vpop.f32.mrf.mxu1 }
 0x2ee   : > { %v2276_v15 = vadd.f32 %v2162_v5, %v621_v14 }
 0x2ef   : > { %v1858_v16 = vpop.f32.mrf.mxu1 }
 0x2f0   : > { %v627_v17 = vsel %vm243_vm1, %v2276_v15, -inf }
 0x2f1   : > { %628 = vmax.xlane.f32.xlu0 %v627_v17  ;;  %v624_v18 = vpop.f32.mrf.mxu1 }
 0x2f3   : > { %v1859_v19 = vpop.f32.mrf.mxu1 }
 0x2f5   : > { %v731_v20 = vpop.f32.mrf.mxu1 }
 0x2f6   : > { %v2281_v21 = vadd.f32 %v2162_v5, %v731_v20 }
 0x2f7   : > { %v1870_v22 = vpop.f32.mrf.mxu1 }
 0x2f8   : > { %v737_v23 = vsel %vm243_vm1, %v2281_v21, -inf }
 0x2f9   : > { %738 = vmax.xlane.f32.xlu0 %v737_v23  ;;  %v734_v24 = vpop.f32.mrf.mxu1 }
 0x2fa   : > { %529 = vrot.lane.b32.xlu1 %v2168_v12, %s2091_s16 }
 0x2fb   : > { %v1871_v25 = vpop.f32.mrf.mxu1 }
 0x2fd   : > { %v841_v26 = vpop.f32.mrf.mxu1 }
 0x2fe   : > { %639 = vrot.lane.b32.xlu1 %v2168_v12, %s2092_s17  ;;  %v2292_v41 = vadd.f32 %v2162_v5, %v841_v26 }
 0x2ff   : > { %v1882_v27 = vpop.f32.mrf.mxu1 }
 0x300   : > { %v847_v46 = vsel %vm243_vm1, %v2292_v41, -inf }
 0x301   : > { %v844_v28 = vpop.f32.mrf.mxu1 }
 0x303   : > { %v1883_v29 = vpop.f32.mrf.mxu1 }
 0x305   : > { %v951_v30 = vpop.f32.mrf.mxu1 }
 0x306   : > { %v952_v53 = vadd.f32 %v2162_v5, %v951_v30 }
 0x307   : > { %v1894_v31 = vpop.f32.mrf.mxu1 }
 0x308   : > { %v957_v59 = vsel %vm243_vm1, %v952_v53, -inf }
 0x309   : > { %v954_v32 = vpop.f32.mrf.mxu1 }
 0x30b   : > { %v1895_v33 = vpop.f32.mrf.mxu1 }
 0x30d   : > { %v1061_v34 = vpop.f32.mrf.mxu1 }
 0x30e   : > { %v2295_v44 = vadd.f32 %v2162_v5, %v1061_v34 }
 0x30f   : > { %419 = vrot.lane.b32.xlu0 %v2168_v12, %s2093_s18  ;;  %v1906_v35 = vpop.f32.mrf.mxu1 }
 0x310   : > { %v1067_v49 = vsel %vm243_vm1, %v2295_v44, -inf }
 0x311   : > { %v1064_v36 = vpop.f32.mrf.mxu1 }
 0x313   : > { %v1907_v37 = vpop.f32.mrf.mxu1 }
 0x315   : > { %v1171_v38 = vpop.f32.mrf.mxu1 }
 0x316   : > { %v2308_v55 = vadd.f32 %v2162_v5, %v1171_v38 }
 0x317   : > { %v1918_v39 = vpop.f32.mrf.mxu1 }
 0x318   : > { %v1177_v62 = vsel %vm243_vm1, %v2308_v55, -inf }
 0x319   : > { %v1174_v40 = vpop.f32.mrf.mxu1 }
 0x31b   : > { %v1919_v42 = vpop.f32.mrf.mxu1 }
 0x31d   : > { %v1281_v43 = vpop.f32.mrf.mxu1 }
 0x31e   : > { %v2300_v12 = vadd.f32 %v2162_v5, %v1281_v43 }
 0x31f   : > { %v1930_v45 = vpop.f32.mrf.mxu1 }
 0x320   : > { %v1287_v52 = vsel %vm243_vm1, %v2300_v12, -inf }
 0x321   : > { %v1284_v47 = vpop.f32.mrf.mxu1 }
 0x322   : > { %848 = vmax.xlane.f32.xlu1 %v847_v46 }
 0x323   : > { %v1931_v48 = vpop.f32.mrf.mxu1 }
 0x325   : > { %v1391_v50 = vpop.f32.mrf.mxu1 }
 0x326   : > { %1068 = vmax.xlane.f32.xlu1 %v1067_v49  ;;  %v2315_v61 = vadd.f32 %v2162_v5, %v1391_v50 }
 0x327   : > { %v1942_v51 = vpop.f32.mrf.mxu1 }
 0x328   : > { %v1397_v6 = vsel %vm243_vm1, %v2315_v61, -inf }
 0x329   : > { %v1394_v54 = vpop.f32.mrf.mxu1 }
 0x32a   : > { %1288 = vmax.xlane.f32.xlu1 %v1287_v52 }
 0x32b   : > { %v1943_v56 = vpop.f32.mrf.mxu1 }
 0x32d   : > { %v1501_v57 = vpop.f32.mrf.mxu1 }
 0x32e   : > { %v2312_v60 = vadd.f32 %v2162_v5, %v1501_v57  ;;  %958 = vmax.xlane.f32.xlu0 %v957_v59 }
 0x32f   : > { %v1954_v2 = vpop.f32.mrf.mxu1 }
 0x330   : > { %v1507_v3 = vsel %vm243_vm1, %v2312_v60, -inf }
 0x331   : > { %1508 = vmax.xlane.f32.xlu1 %v1507_v3  ;;  %v1504_v4 = vpop.f32.mrf.mxu1 }
 0x332   : > { %1178 = vmax.xlane.f32.xlu0 %v1177_v62 }
 0x333   : > { %v1955_v7 = vpop.f32.mrf.mxu1 }
 0x336   : > { %1398 = vmax.xlane.f32.xlu0 %v1397_v6 }
 0x342   : > { %969 = vrot.lane.b32.xlu1 %v2325_v9, %s2081_s29 }
 0x36a   : > { %v409_v5 = vpop.xlane.xlu0 %408 }
 0x36b   : > { %v410_v10 = vsub.f32 %v2266_v63, %v409_v5 }
 0x36d   : > { %v411_v11 = vmul.f32 1.442695, %v410_v10 }
 0x36f   : > { %2009 = vpow2.f32 %v411_v11 }
 0x372   : > { %v519_v13 = vpop.xlane.xlu1 %518 }
 0x373   : > { %v520_v14 = vsub.f32 %v2271_v8, %v519_v13 }
 0x375   : > { %v521_v16 = vmul.f32 1.442695, %v520_v14 }
 0x376   : > { %v2349_v28 = vpop.permute.xlu1 %529 }
 0x377   : > { %2011 = vpow2.f32 %v521_v16  ;;  %v535_v14 = vsel %vm310_vm2, %v2349_v28, 0 }
 0x37a   : > { %v629_v1 = vpop.xlane.xlu0 %628  ;;  %v2351_v29 = vpop.permute.xlu1 %639 }
 0x37b   : > { %v630_v26 = vsub.f32 %v2276_v15, %v629_v1  ;;  %v645_v1 = vsel %vm310_vm2, %v2351_v29, 0 }
 0x37c   : > { %v2331_v17 = vpop.eup %2009 }
 0x37d   : > { %v413_v18 = vsel %vm243_vm1, %v2331_v17, 0.0  ;;  %v631_v27 = vmul.f32 1.442695, %v630_v26 }
 0x37e   : > { %414 = vadd.xlane.f32.xlu0 %v413_v18 }
 0x382   : > { %v739_v19 = vpop.xlane.xlu0 %738 }
 0x383   : > { %v740_v20 = vsub.f32 %v2281_v21, %v739_v19 }
 0x384   : > { %v2336_v22 = vpop.eup %2011 }
 0x385   : > { %v741_v63 = vmul.f32 1.442695, %v740_v20  ;;  %v523_v23 = vsel %vm243_vm1, %v2336_v22, 0.0 }
 0x386   : > { %524 = vadd.xlane.f32.xlu1 %v523_v23  ;;  %v420_v8 = vpop.permute.xlu0 %419 }
 0x387   : > { %2013 = vpow2.f32 %v741_v63  ;;  %v425_v24 = vsel %vm310_vm2, %v420_v8, 0 }
 0x388   : > { %1837 = vmatpush3.bf16.msra.mxu0 %v425_v24  ;;  %2015 = vpow2.f32 %v631_v27 }
 0x389   : > { %1848 = vmatprep.subr.bf16.mxu0 %v2077_v0 }
 0x394   : > { %v2342_v25 = vpop.eup %2013  ;;  %859 = vrot.lane.b32.xlu0 %v2325_v9, %s2080_s28 }
 0x395   : > { %v743_v21 = vsel %vm243_vm1, %v2342_v25, 0.0  ;;  %v2354_v33 = vpop.eup %2015 }
 0x396   : > { %744 = vadd.xlane.f32.xlu1 %v743_v21  ;;  %v633_v34 = vsel %vm243_vm1, %v2354_v33, 0.0  ;;  %v755_v21 = vsel %vm310_vm2, %v2325_v9, 0 }
 0x3ab   : > { %v849_v30 = vpop.xlane.xlu1 %848 }
 0x3ac   : > { %v850_v31 = vsub.f32 %v2292_v41, %v849_v30 }
 0x3ae   : > { %v851_v32 = vmul.f32 1.442695, %v850_v31 }
 0x3af   : > { %v1069_v47 = vpop.xlane.xlu1 %1068 }
 0x3b0   : > { %2017 = vpow2.f32 %v851_v32  ;;  %v1070_v48 = vsub.f32 %v2295_v44, %v1069_v47 }
 0x3b2   : > { %v1071_v50 = vmul.f32 1.442695, %v1070_v48 }
 0x3b3   : > { %634 = vadd.xlane.f32.xlu0 %v633_v34  ;;  %v1289_v49 = vpop.xlane.xlu1 %1288 }
 0x3b4   : > { %v1290_v51 = vsub.f32 %v2300_v12, %v1289_v49 }
 0x3b7   : > { %v959_v35 = vpop.xlane.xlu0 %958 }
 0x3b8   : > { %v960_v36 = vsub.f32 %v952_v53, %v959_v35  ;;  %v1291_v53 = vmul.f32 1.442695, %v1290_v51 }
 0x3ba   : > { %v961_v15 = vmul.f32 1.442695, %v960_v36  ;;  %v1509_v52 = vpop.xlane.xlu1 %1508 }
 0x3bb   : > { %v1179_v37 = vpop.xlane.xlu0 %1178  ;;  %v1510_v54 = vsub.f32 %v2312_v60, %v1509_v52 }
 0x3bc   : > { %2019 = vpow2.f32 %v961_v15  ;;  %v1180_v38 = vsub.f32 %v2308_v55, %v1179_v37 }
 0x3bd   : > { %v2359_v39 = vpop.eup %2017  ;;  %v1511_v55 = vmul.f32 1.442695, %v1510_v54 }
 0x3be   : > { %v1181_v40 = vmul.f32 1.442695, %v1180_v38  ;;  %v853_v41 = vsel %vm243_vm1, %v2359_v39, 0.0  ;;  %v970_v7 = vpop.permute.xlu1 %969 }
 0x3bf   : > { %854 = vadd.xlane.f32.xlu1 %v853_v41  ;;  %v1399_v56 = vpop.xlane.xlu0 %1398 }
 0x3c0   : > { %2021 = vpow2.f32 %v1181_v40  ;;  %v1400_v57 = vsub.f32 %v2315_v61, %v1399_v56 }
 0x3c1   : > { %2023 = vpow2.f32 %v1071_v50 }
 0x3c2   : > { %2025 = vpow2.f32 %v1291_v53  ;;  %v1401_v59 = vmul.f32 1.442695, %v1400_v57 }
 0x3c3   : > { %2027 = vpow2.f32 %v1511_v55 }
 0x3c4   : > { %2029 = vpow2.f32 %v1401_v59 }
 0x3c9   : > { %v2363_v42 = vpop.eup %2019 }
 0x3ca   : > { %v963_v43 = vsel %vm243_vm1, %v2363_v42, 0.0 }
 0x3cb   : > { %964 = vadd.xlane.f32.xlu0 %v963_v43 }
 0x3cd   : > { %v2367_v45 = vpop.eup %2021 }
 0x3ce   : > { %v1183_v46 = vsel %vm243_vm1, %v2367_v45, 0.0  ;;  %v2379_v44 = vpop.eup %2023 }
 0x3cf   : > { %1184 = vadd.xlane.f32.xlu0 %v1183_v46  ;;  %v1073_v12 = vsel %vm243_vm1, %v2379_v44, 0.0  ;;  %v2383_v62 = vpop.eup %2025 }
 0x3d0   : > { %1079 = vrot.lane.b32.xlu1 %v2325_v9, %s2082_s30  ;;  %v1293_v60 = vsel %vm243_vm1, %v2383_v62, 0.0  ;;  %v2387_v2 = vpop.eup %2027 }
 0x3d1   : > { %v1513_v3 = vsel %vm243_vm1, %v2387_v2, 0.0  ;;  %v2391_v61 = vpop.eup %2029 }
 0x3d2   : > { %v1403_v4 = vsel %vm243_vm1, %v2391_v61, 0.0 }
 0x3e5   : > { %1189 = vrot.lane.b32.xlu0 %v2325_v9, %s2083_s4 }
 0x3f4   : > { %1074 = vadd.xlane.f32.xlu1 %v1073_v12 }
 0x3f8   : > { %1294 = vadd.xlane.f32.xlu1 %v1293_v60 }
 0x3fc   : > { %1514 = vadd.xlane.f32.xlu1 %v1513_v3 }
 0x404   : > { %1404 = vadd.xlane.f32.xlu0 %v1403_v4 }
 0x407   : > { %v415_v6 = vpop.xlane.xlu0 %414 }
 0x408   : > { %2031 = vrcp.f32 %v415_v6 }
 0x40b   : > { %v860_v19 = vpop.permute.xlu0 %859 }
 0x40c   : > { %v865_v31 = vsel %vm310_vm2, %v860_v19, 0 }
 0x40d   : > { %1299 = vrot.lane.b32.xlu1 %v2325_v9, %s2084_s5 }
 0x40f   : > { %v525_v5 = vpop.xlane.xlu1 %524 }
 0x410   : > { %2033 = vrcp.f32 %v525_v5 }
 0x415   : > { %v2032_v10 = vpop.eup %2031 }
 0x416   : > { %v417_v11 = vmul.f32 %v2032_v10, %v2331_v17 }
 0x418   : > { %v418_v13 = vpack.c.bf16 %v417_v11, %v417_v11 }
 0x41a   : > { %1839 = vmatmul.mubr.msk.bf16.vlgmr.msra.gmra.mxu0 %vm243_vm1, %v418_v13  ;;  %1409 = vrot.lane.b32.xlu0 %v2325_v9, %s2085_s6 }
 0x41b   : > { %1849 = vmatpush3.bf16.msra.mxu0 %v535_v14  ;;  %1850 = vmatprep.mubr.msk.bf16.mxu0 %vm2078_vm0, %v2077_v0 }
 0x41c   : > { %1860 = vmatprep.subr.bf16.mxu0 %v2077_v0 }
 0x41d   : > { %v2034_v16 = vpop.eup %2033 }
 0x41e   : > { %v527_v18 = vmul.f32 %v2034_v16, %v2336_v22  ;;  %1519 = vrot.lane.b32.xlu0 %v2325_v9, %s2086_s7 }
 0x41f   : > { %v745_v63 = vpop.xlane.xlu1 %744 }
 0x420   : > { %v528_v17 = vpack.c.bf16 %v527_v18, %v527_v18 }
 0x422   : > { %1851 = vmatmul.mubr.msk.bf16.vlgmr.msra.gmra.mxu0 %vm243_vm1, %v528_v17 }
 0x423   : > { %1861 = vmatpush3.bf16.msra.mxu0 %v645_v1  ;;  %1862 = vmatprep.mubr.msk.bf16.mxu0 %vm2078_vm0, %v2077_v0 }
 0x424   : > { %1872 = vmatprep.subr.bf16.mxu0 %v2077_v0 }
 0x43c   : > { %v635_v20 = vpop.xlane.xlu0 %634 }
 0x43d   : > { %2035 = vrcp.f32 %v635_v20 }
 0x43e   : > { %2037 = vrcp.f32 %v745_v63 }
 0x448   : > { %v855_v22 = vpop.xlane.xlu1 %854 }
 0x449   : > { %2039 = vrcp.f32 %v855_v22 }
 0x44a   : > { %v2036_v23 = vpop.eup %2035 }
 0x44b   : > { %v637_v8 = vmul.f32 %v2036_v23, %v2354_v33  ;;  %v2038_v26 = vpop.eup %2037  ;;  %v975_v33 = vsel %vm310_vm2, %v970_v7, 0 }
 0x44c   : > { %v747_v27 = vmul.f32 %v2038_v26, %v2342_v25  ;;  %v1080_v35 = vpop.permute.xlu1 %1079 }
 0x44d   : > { %v638_v24 = vpack.c.bf16 %v637_v8, %v637_v8  ;;  %v1085_v15 = vsel %vm310_vm2, %v1080_v35, 0 }
 0x44e   : > { %v748_v29 = vpack.c.bf16 %v747_v27, %v747_v27 }
 0x44f   : > { %1863 = vmatmul.mubr.msk.bf16.vlgmr.msra.gmra.mxu0 %vm243_vm1, %v638_v24 }
 0x450   : > { %1873 = vmatpush3.bf16.msra.mxu0 %v755_v21  ;;  %1874 = vmatprep.mubr.msk.bf16.mxu0 %vm2078_vm0, %v2077_v0 }
 0x451   : > { %1884 = vmatprep.subr.bf16.mxu0 %v2077_v0 }
 0x454   : > { %v965_v28 = vpop.xlane.xlu0 %964 }
 0x455   : > { %2041 = vrcp.f32 %v965_v28 }
 0x456   : > { %v2040_v30 = vpop.eup %2039 }
 0x457   : > { %1875 = vmatmul.mubr.msk.bf16.vlgmr.msra.gmra.mxu0 %vm243_vm1, %v748_v29  ;;  %v857_v9 = vmul.f32 %v2040_v30, %v2359_v39 }
 0x458   : > { %1885 = vmatpush3.bf16.msra.mxu0 %v865_v31  ;;  %1886 = vmatprep.mubr.msk.bf16.mxu0 %vm2078_vm0, %v2077_v0  ;;  %v1185_v38 = vpop.xlane.xlu0 %1184 }
 0x459   : > { %1896 = vmatprep.subr.bf16.mxu0 %v2077_v0  ;;  %v858_v32 = vpack.c.bf16 %v857_v9, %v857_v9 }
 0x45c   : > { %v1190_v41 = vpop.permute.xlu0 %1189 }
 0x45d   : > { %v1195_v49 = vsel %vm310_vm2, %v1190_v41, 0 }
 0x45f   : > { %1887 = vmatmul.mubr.msk.bf16.vlgmr.msra.gmra.mxu0 %vm243_vm1, %v858_v32 }
 0x460   : > { %1897 = vmatpush3.bf16.msra.mxu0 %v975_v33  ;;  %1898 = vmatprep.mubr.msk.bf16.mxu0 %vm2078_vm0, %v2077_v0 }
 0x461   : > { %1908 = vmatprep.subr.bf16.mxu0 %v2077_v0 }
 0x462   : > { %v2042_v25 = vpop.eup %2041 }
 0x463   : > { %v967_v34 = vmul.f32 %v2042_v25, %v2363_v42 }
 0x465   : > { %v968_v36 = vpack.c.bf16 %v967_v34, %v967_v34 }
 0x467   : > { %1899 = vmatmul.mubr.msk.bf16.vlgmr.msra.gmra.mxu0 %vm243_vm1, %v968_v36 }
 0x468   : > { %1909 = vmatpush3.bf16.msra.mxu0 %v1085_v15  ;;  %1910 = vmatprep.mubr.msk.bf16.mxu0 %vm2078_vm0, %v2077_v0 }
 0x469   : > { %1920 = vmatprep.subr.bf16.mxu0 %v2077_v0 }
 0x47d   : > { %v1075_v37 = vpop.xlane.xlu1 %1074 }
 0x47e   : > { %2043 = vrcp.f32 %v1075_v37 }
 0x47f   : > { %2045 = vrcp.f32 %v1185_v38 }
 0x481   : > { %v1295_v39 = vpop.xlane.xlu1 %1294 }
 0x482   : > { %2047 = vrcp.f32 %v1295_v39 }
 0x485   : > { %v1515_v47 = vpop.xlane.xlu1 %1514 }
 0x489   : > { %v1300_v51 = vpop.permute.xlu1 %1299 }
 0x48a   : > { %v1305_v52 = vsel %vm310_vm2, %v1300_v51, 0 }
 0x48b   : > { %v2044_v40 = vpop.eup %2043 }
 0x48c   : > { %v1077_v42 = vmul.f32 %v2044_v40, %v2379_v44  ;;  %v2046_v46 = vpop.eup %2045 }
 0x48d   : > { %v1405_v48 = vpop.xlane.xlu0 %1404  ;;  %v1187_v50 = vmul.f32 %v2046_v46, %v2367_v45 }
 0x48e   : > { %v1078_v43 = vpack.c.bf16 %v1077_v42, %v1077_v42  ;;  %2049 = vrcp.f32 %v1405_v48 }
 0x48f   : > { %v1188_v53 = vpack.c.bf16 %v1187_v50, %v1187_v50  ;;  %v2048_v54 = vpop.eup %2047  ;;  %2051 = vrcp.f32 %v1515_v47 }
 0x490   : > { %1911 = vmatmul.mubr.msk.bf16.vlgmr.msra.gmra.mxu0 %vm243_vm1, %v1078_v43  ;;  %v1297_v55 = vmul.f32 %v2048_v54, %v2383_v62 }
 0x491   : > { %1921 = vmatpush3.bf16.msra.mxu0 %v1195_v49  ;;  %1922 = vmatprep.mubr.msk.bf16.mxu0 %vm2078_vm0, %v2077_v0  ;;  %v1410_v56 = vpop.permute.xlu0 %1409 }
 0x492   : > { %1932 = vmatprep.subr.bf16.mxu0 %v2077_v0  ;;  %v1415_v57 = vsel %vm310_vm2, %v1410_v56, 0  ;;  %v1298_v45 = vpack.c.bf16 %v1297_v55, %v1297_v55 }
 0x495   : > { %v1520_v12 = vpop.permute.xlu0 %1519 }
 0x496   : > { %v1525_v60 = vsel %vm310_vm2, %v1520_v12, 0 }
 0x498   : > { %1923 = vmatmul.mubr.msk.bf16.vlgmr.msra.gmra.mxu0 %vm243_vm1, %v1188_v53 }
 0x499   : > { %1933 = vmatpush3.bf16.msra.mxu0 %v1305_v52  ;;  %1934 = vmatprep.mubr.msk.bf16.mxu0 %vm2078_vm0, %v2077_v0 }
 0x49a   : > { %1944 = vmatprep.subr.bf16.mxu0 %v2077_v0 }
 0x49b   : > { %v2050_v59 = vpop.eup %2049 }
 0x49c   : > { %v1407_v44 = vmul.f32 %v2050_v59, %v2391_v61  ;;  %v2052_v62 = vpop.eup %2051 }
 0x49d   : > { %v1517_v4 = vmul.f32 %v2052_v62, %v2387_v2 }
 0x49e   : > { %v1408_v3 = vpack.c.bf16 %v1407_v44, %v1407_v44 }
 0x49f   : > { %v1518_v6 = vpack.c.bf16 %v1517_v4, %v1517_v4 }
 0x4a0   : > { %1935 = vmatmul.mubr.msk.bf16.vlgmr.msra.gmra.mxu0 %vm243_vm1, %v1298_v45 }
 0x4a1   : > { %1945 = vmatpush3.bf16.msra.mxu0 %v1415_v57  ;;  %1946 = vmatprep.mubr.msk.bf16.mxu0 %vm2078_vm0, %v2077_v0 }
 0x4a2   : > { %1956 = vmatprep.subr.bf16.mxu0 %v2077_v0 }
 0x4a8   : > { %1947 = vmatmul.mubr.msk.bf16.vlgmr.msra.gmra.mxu0 %vm243_vm1, %v1408_v3 }
 0x4a9   : > { %1957 = vmatpush3.bf16.msra.mxu0 %v1525_v60  ;;  %1958 = vmatprep.mubr.msk.bf16.mxu0 %vm2078_vm0, %v2077_v0 }
 0x4b0   : > { %1959 = vmatmul.mubr.msk.bf16.vlgmr.msra.gmra.mxu0 %vm243_vm1, %v1518_v6 }
 0x4da   : > { %v461_v7 = vpop.f32.mrf.mxu0 }
 0x4db   : > { %1568 = vrot.lane.b32.xlu0 %v461_v7, %s2092_s17 }
 0x4dc   : > { %v1840_v61 = vpop.f32.mrf.mxu0 }
 0x4de   : > { %v464_v5 = vpop.f32.mrf.mxu0 }
 0x4e0   : > { %v1841_v10 = vpop.f32.mrf.mxu0 }
 0x4e2   : > { %v571_v11 = vpop.f32.mrf.mxu0 }
 0x4e3   : > { %1572 = vrot.lane.b32.xlu1 %v571_v11, %s2091_s16 }
 0x4e4   : > { %v1852_v13 = vpop.f32.mrf.mxu0 }
 0x4e6   : > { %v574_v14 = vpop.f32.mrf.mxu0 }
 0x4e8   : > { %v1853_v16 = vpop.f32.mrf.mxu0 }
 0x50f   : > { %v681_v18 = vpop.f32.mrf.mxu0 }
 0x510   : > { %1576 = vrot.lane.b32.xlu0 %v681_v18, %s2093_s18 }
 0x511   : > { %v1864_v0 = vpop.f32.mrf.mxu0 }
 0x513   : > { %v684_v2 = vpop.f32.mrf.mxu0 }
 0x515   : > { %v1865_v17 = vpop.f32.mrf.mxu0 }
 0x517   : > { %v791_v1 = vpop.f32.mrf.mxu0 }
 0x518   : > { %1580 = vrot.lane.b32.xlu1 %v791_v1, %s2079_s27 }
 0x519   : > { %v1876_v19 = vpop.f32.mrf.mxu0 }
 0x51b   : > { %v794_v20 = vpop.f32.mrf.mxu0 }
 0x51d   : > { %v1877_v63 = vpop.f32.mrf.mxu0 }
 0x51f   : > { %v901_v22 = vpop.f32.mrf.mxu0 }
 0x520   : > { %1584 = vrot.lane.b32.xlu0 %v901_v22, %s2090_s11 }
 0x521   : > { %v1888_v23 = vpop.f32.mrf.mxu0 }
 0x523   : > { %v904_v8 = vpop.f32.mrf.mxu0 }
 0x525   : > { %v1889_v24 = vpop.f32.mrf.mxu0 }
 0x527   : > { %v1011_v21 = vpop.f32.mrf.mxu0 }
 0x528   : > { %1588 = vrot.lane.b32.xlu1 %v1011_v21, %s2089_s10 }
 0x529   : > { %v1900_v26 = vpop.f32.mrf.mxu0 }
 0x52b   : > { %v1014_v27 = vpop.f32.mrf.mxu0 }
 0x52d   : > { %v1901_v28 = vpop.f32.mrf.mxu0 }
 0x54d   : > { %v1569_v48 = vpop.permute.xlu0 %1568 }
 0x54e   : > { %v1611_v54 = vsel %vm243_vm1, %v2263_v58, %v1569_v48 }
 0x550   : > { %v1121_v29 = vpop.f32.mrf.mxu0 }
 0x551   : > { %1592 = vrot.lane.b32.xlu0 %v1121_v29, %s2088_s9 }
 0x552   : > { %v1912_v30 = vpop.f32.mrf.mxu0 }
 0x554   : > { %v1124_v31 = vpop.f32.mrf.mxu0 }
 0x555   : > { %v1573_v49 = vpop.permute.xlu1 %1572 }
 0x556   : > { %v1913_v9 = vpop.f32.mrf.mxu0  ;;  %v1613_v55 = vsel %vm1612_vm3, %v1611_v54, %v1573_v49 }
 0x558   : > { %v1231_v32 = vpop.f32.mrf.mxu0 }
 0x559   : > { %1596 = vrot.lane.b32.xlu1 %v1231_v32, %s2087_s8 }
 0x55a   : > { %v1924_v33 = vpop.f32.mrf.mxu0 }
 0x55c   : > { %v1234_v25 = vpop.f32.mrf.mxu0 }
 0x55e   : > { %v1925_v34 = vpop.f32.mrf.mxu0 }
 0x560   : > { %v1341_v35 = vpop.f32.mrf.mxu0 }
 0x561   : > { %1600 = vrot.lane.b32.xlu0 %v1341_v35, %s2086_s7 }
 0x562   : > { %v1936_v36 = vpop.f32.mrf.mxu0 }
 0x564   : > { %v1344_v15 = vpop.f32.mrf.mxu0 }
 0x566   : > { %v1937_v37 = vpop.f32.mrf.mxu0 }
 0x568   : > { %v1451_v38 = vpop.f32.mrf.mxu0 }
 0x569   : > { %1604 = vrot.lane.b32.xlu1 %v1451_v38, %s2085_s6 }
 0x56a   : > { %v1948_v39 = vpop.f32.mrf.mxu0 }
 0x56c   : > { %v1454_v40 = vpop.f32.mrf.mxu0 }
 0x56e   : > { %v1949_v41 = vpop.f32.mrf.mxu0 }
 0x570   : > { %v1561_v42 = vpop.f32.mrf.mxu0 }
 0x571   : > { %1608 = vrot.lane.b32.xlu0 %v1561_v42, %s2084_s5 }
 0x572   : > { %v1960_v43 = vpop.f32.mrf.mxu0 }
 0x574   : > { %v1564_v46 = vpop.f32.mrf.mxu0 }
 0x576   : > { %v1961_v47 = vpop.f32.mrf.mxu0 }
 0x582   : > { %v1577_v50 = vpop.permute.xlu0 %1576 }
 0x583   : > { %v1615_v57 = vsel %vm1614_vm4, %v1613_v55, %v1577_v50 }
 0x58a   : > { %v1581_v51 = vpop.permute.xlu1 %1580 }
 0x58b   : > { %v1617_v59 = vsel %vm1616_vm5, %v1615_v57, %v1581_v51 }
 0x592   : > { %v1585_v52 = vpop.permute.xlu0 %1584 }
 0x593   : > { %v1619_v44 = vsel %vm1618_vm6, %v1617_v59, %v1585_v52 }
 0x59a   : > { %v1589_v53 = vpop.permute.xlu1 %1588 }
 0x59b   : > { %v1621_v12 = vsel %vm1620_vm7, %v1619_v44, %v1589_v53 }
 0x5c3   : > { %v1593_v56 = vpop.permute.xlu0 %1592 }
 0x5c4   : > { %v1623_v3 = vsel %vm1622_vm8, %v1621_v12, %v1593_v56 }
 0x5cb   : > { %v1597_v45 = vpop.permute.xlu1 %1596 }
 0x5cc   : > { %v1625_v4 = vsel %vm1624_vm9, %v1623_v3, %v1597_v45 }
 0x5d3   : > { %v1601_v60 = vpop.permute.xlu0 %1600 }
 0x5d4   : > { %v1627_v58 = vsel %vm1626_vm10, %v1625_v4, %v1601_v60 }
 0x5db   : > { %v1605_v62 = vpop.permute.xlu1 %1604 }
 0x5dc   : > { %v1629_v6 = vsel %vm1628_vm11, %v1627_v58, %v1605_v62 }
 0x5e3   : > { %v1609_v7 = vpop.permute.xlu0 %1608 }
 0x5e4   : > { %v1631_v61 = vsel %vm1630_vm12, %v1629_v6, %v1609_v7 }
 0x5e5   : > { %v1632_v5 = vpack.c.bf16 %v1631_v61, %v1631_v61 }
 0x5e7   : > { %1634 = vst.msk [vmem:[%s230_s22] sm:$0xf] %vm1633_vm13, %v1632_v5 }
 0x5e8 PF: > { %s13_s14 = sadd.s32 1, %s2075_s14   ;;  %s2496_s12 = smov %s2071_s13 }
 0x5e9   : > { %p10_p5 = scmp.ge.s32.totalorder %s13_s14, 4   ;;  %s2497_s13 = smov %s2499_s15 }
 0x5eb   :  { %12 = sbr.rel (!%p10_p5) target bundleno = 2 (0x2), region = 68 }

// kernel: kmer_bert_forward.19
= control target key start
LH: loop header
LB: loop body
LE: loop exit
PB: predicated region body
PF: predicated region fallthrough
CT: control target
= control target key end

     0   :  { %s808_s12 = smov 0   ;;  %s810_s13 = smov 0   ;;  %s892_s0 = inlined_call_operand.vmem [shape: bf16[16,96], index: 0, kind: input, shape index: {}]   ;;  %s893_s1 = inlined_call_operand.vmem [shape: bf16[96,384], index: 1, kind: input, shape index: {}]   ;;  %s894_s2 = inlined_call_operand.vmem [shape: f32[1,384], index: 2, kind: input, shape index: {}]   ;;  %s895_s3 = inlined_call_operand.vmem [shape: bf16[16,384], index: 3, kind: output, shape index: {}]  }
   0x1   :  { %s812_s14 = smov 0   ;;  %s814_s15 = smov 0  }
   0x2   :  { %s816_s16 = smov 0  }
   0x3 LB: > { %s28_s17 = sadd.s32 1, %s780_s15  ;;  %s638_s18 = sadd.s32 4294967295, %s784_s16   ;;  %s784_s16 = sphi %s816_s16, %s13_s16   ;;  %s780_s15 = sphi %s814_s15, %s900_s15   ;;  %s776_s14 = sphi %s812_s14, %s899_s14   ;;  %s772_s13 = sphi %s810_s13, %s898_s13   ;;  %s768_s12 = sphi %s808_s12, %s897_s12  }
   0x4   : > { %p30_p0 = scmp.ge.s32.totalorder %s28_s17, 3  ;;  %p76_p1 = scmp.ne.s32.totalorder %s772_s13, %s768_s12 }
   0x5   : > { %p77_p2 = scmp.eq.s32.totalorder %s784_s16, 0  ;;  %p134_p4 = scmp.eq.s32.totalorder %s638_s18, 2 }
   0x6   : > { %s902_s17 = smov (%p30_p0, %s28_s17), 0  ;;  %s69_s20 = sadd.s32 1, %s772_s13 }
   0x7   : > { %p78_p3 = por %p77_p2, %p76_p1  ;;  %s65_s19 = ssub.s32 %s780_s15, %s902_s17 }
   0x8   : > { %p67_p5 = scmp.eq.s32.totalorder %s65_s19, 0  ;;  %p843_p6 = por %p134_p4, %p76_p1 }
   0x9   : > { %p642_p7 = scmp.ge.s32.totalorder %s784_s16, 3 }
   0xa   : > { %s848_s22 = scalar_select %p67_p5, %s772_s13, %s69_s20  }
   0xb   : > { %168 = sbr.rel (%p642_p7) target bundleno = 28 (0x1c), region = 20 }
  0x10   : > { %171 = sbr.rel (!%p78_p3) target bundleno = 28 (0x1c), region = 24  ;;  %s173_s23 = sand.u32 (%p78_p3), 1, %s772_s13  }
  0x11   : > { %s643_s24 = sshll.u32 (%p78_p3), %s780_s15, 2  ;;  %s691_s25 = smul.u32 (%p78_p3), 48, %s173_s23 }
  0x12   : > { %s180_s28 = scalar_lea.vmem (%p78_p3), %s893_s1, %s643_s24 }
  0x13   : > { %v197_v0 = vld [vmem:[%s180_s28] sm:$0xf] (%p78_p3)  ;;  %v199_v1 = vld [vmem:[%s180_s28 + $0xc] sm:$0xf] (%p78_p3)  ;;  %v201_v2 = vld [vmem:[%s180_s28 + $0x18] sm:$0xf] (%p78_p3) }
  0x14   : > { %v203_v3 = vld [vmem:[%s180_s28 + $0x24] sm:$0xf] (%p78_p3)  ;;  %v205_v4 = vld [vmem:[%s180_s28 + $0x30] sm:$0xf] (%p78_p3)  ;;  %s175_s29 = scalar_lea.vmem (%p78_p3), [#allocation3], %s691_s25 }
  0x15   : > { %198 = vst [vmem:[%s175_s29] sm:$0xf] %v197_v0  ;;  %200 = vst [vmem:[%s175_s29 + $0x4] sm:$0xf] %v199_v1  ;;  %v207_v5 = vld [vmem:[%s180_s28 + $0x3c] sm:$0xf] }
  0x16   : > { %202 = vst [vmem:[%s175_s29 + $0x8] sm:$0xf] %v201_v2  ;;  %204 = vst [vmem:[%s175_s29 + $0xc] sm:$0xf] %v203_v3  ;;  %v209_v6 = vld [vmem:[%s180_s28 + $0x48] sm:$0xf] }
  0x17   : > { %206 = vst [vmem:[%s175_s29 + $0x10] sm:$0xf] %v205_v4  ;;  %v211_v7 = vld [vmem:[%s180_s28 + $0x54] sm:$0xf]  ;;  %208 = vst [vmem:[%s175_s29 + $0x14] sm:$0xf] %v207_v5 }
  0x18   : > { %210 = vst [vmem:[%s175_s29 + $0x18] sm:$0xf] %v209_v6  ;;  %212 = vst [vmem:[%s175_s29 + $0x1c] sm:$0xf] %v211_v7  ;;  %v213_v8 = vld [vmem:[%s180_s28 + $0x60] sm:$0xf] }
  0x19   : > { %v215_v9 = vld [vmem:[%s180_s28 + $0x6c] sm:$0xf]  ;;  %v217_v10 = vld [vmem:[%s180_s28 + $0x78] sm:$0xf]  ;;  %214 = vst [vmem:[%s175_s29 + $0x20] sm:$0xf] %v213_v8 }
  0x1a   : > { %216 = vst [vmem:[%s175_s29 + $0x24] sm:$0xf] %v215_v9  ;;  %218 = vst [vmem:[%s175_s29 + $0x28] sm:$0xf] %v217_v10  ;;  %v219_v11 = vld [vmem:[%s180_s28 + $0x84] sm:$0xf] }
  0x1b   : > { %220 = vst [vmem:[%s175_s29 + $0x2c] sm:$0xf] %v219_v11 }
  0x1c PF: > { %p644_p8 = scmp.ge.s32.totalorder %s784_s16, 1  ;;  %p273_p9 = scmp.lt.s32.totalorder %s784_s16, 4 }
  0x1e   : > { %p274_p10 = pnand %p644_p8, %p273_p9 }
  0x1f   : > { %s280_s30 = sand.u32 (!%p274_p10), 1, %s768_s12   ;;  %p323_p11 = scmp.lt.s32.totalorder (!%p274_p10), %s776_s14, 2 }
  0x20   : > { %277 = sbr.rel (%p274_p10) target bundleno = 300 (0x12c), region = 69  ;;  %s645_s18 = sshll.u32 (!%p274_p10), %s280_s30, 3 }
  0x21   : > { %s692_s4 = smul.u32 (!%p274_p10), 48, %s280_s30  ;;  %s312_s19 = scalar_lea.vmem (!%p274_p10), [#allocation4], %s645_s18 }
  0x23   : > { %s282_s5 = scalar_lea.vmem (!%p274_p10), [#allocation3], %s692_s4 }
  0x25   : > { %v786_v12 = vmov 0.0   ;;  %vm787_vm0 = vmmov 0   ;;  %v735_v13 = vld [vmem:[%s282_s5 + $0x28] sm:$0xff]   ;;  %v736_v14 = vld [vmem:[%s282_s5 + $0x20] sm:$0xff]   ;;  %v737_v15 = vld [vmem:[%s282_s5 + $0x18] sm:$0xff]   ;;  %vm391_vm1 = vcmask 785408  }
  0x26   : > { %675 = vmatprep.subr.bf16.mxu0 %v786_v12  ;;  %687 = vmatprep.mubr.msk.bf16.mxu0 %vm787_vm0, %v786_v12  ;;  %v738_v16 = vld [vmem:[%s282_s5 + $0x10] sm:$0xff]   ;;  %v739_v17 = vld [vmem:[%s282_s5 + $0x8] sm:$0xff]   ;;  %v740_v18 = vld [vmem:[%s282_s5] sm:$0xff]   ;;  %s324_s8 = scalar_select %p323_p11, %s776_s14, 2 }
  0x27   : > { %676 = vmatpush3.bf16.msra.mxu0 %v735_v13  ;;  %v741_v19 = vld [vmem:[%s892_s0] sm:$0xff]   ;;  %s658_s20 = sshll.u32 (%p843_p6), %s776_s14, 2 }
  0x28   : > { %677 = vmatprep.subr.bf16.mxu0 %v786_v12  ;;  %s325_s11 = scalar_lea.vmem %s894_s2, %s324_s8  ;;  %s493_s25 = scalar_lea.vmem (%p843_p6), %s895_s3, %s658_s20 }
  0x29   : > { %v654_v20 = vld [vmem:[%s325_s11] ss:$0 sm:$0xff] }
  0x2b   : > { %678 = vmatpush3.bf16.msra.mxu0 %v736_v14 }
  0x2c   : > { %679 = vmatprep.subr.bf16.mxu0 %v786_v12 }
  0x2f   : > { %680 = vmatpush3.bf16.msra.mxu0 %v737_v15 }
  0x30   : > { %681 = vmatprep.subr.bf16.mxu0 %v786_v12 }
  0x33   : > { %682 = vmatpush3.bf16.msra.mxu0 %v738_v16 }
  0x34   : > { %683 = vmatprep.subr.bf16.mxu0 %v786_v12 }
  0x37   : > { %684 = vmatpush3.bf16.msra.mxu0 %v739_v17 }
  0x38   : > { %685 = vmatprep.subr.bf16.mxu0 %v786_v12 }
  0x3b   : > { %686 = vmatpush3.bf16.msra.mxu0 %v740_v18 }
  0x3e   : > { %688 = vmatmul.mubr.msk.bf16.vlgmr.msra.gmra.mxu0 %vm391_vm1, %v741_v19 }
  0xfe   : > { %v429_v21 = vpop.f32.mrf.mxu0 }
  0xff   : > { %v452_v22 = vadd.f32 %v654_v20, %v429_v21 }
 0x100   : > { %v689_v23 = vpop.f32.mrf.mxu0 }
 0x101   : > { %v456_v24 = vmul.f32 0.044715, %v452_v22  ;;  %v454_v40 = vmul.f32 0.5, %v452_v22 }
 0x102   : > { %v432_v25 = vpop.f32.mrf.mxu0 }
 0x103   : > { %v458_v26 = vmul.f32 %v456_v24, %v452_v22  ;;  %v453_v27 = vadd.f32 %v654_v20, %v432_v25 }
 0x104   : > { %v690_v28 = vpop.f32.mrf.mxu0 }
 0x105   : > { %v460_v29 = vmul.f32 %v458_v26, %v452_v22  ;;  %v457_v30 = vmul.f32 0.044715, %v453_v27  ;;  %v455_v41 = vmul.f32 0.5, %v453_v27 }
 0x107   : > { %v462_v31 = vadd.f32 %v460_v29, %v452_v22  ;;  %v459_v32 = vmul.f32 %v457_v30, %v453_v27 }
 0x109   : > { %v464_v33 = vmul.f32 0.7978846, %v462_v31  ;;  %v461_v34 = vmul.f32 %v459_v32, %v453_v27 }
 0x10b   : > { %742 = vtanh.f32 %v464_v33  ;;  %v463_v35 = vadd.f32 %v461_v34, %v453_v27 }
 0x10d   : > { %v465_v36 = vmul.f32 0.7978846, %v463_v35 }
 0x10f   : > { %744 = vtanh.f32 %v465_v36 }
 0x118   : > { %v743_v37 = vpop.eup %742 }
 0x119   : > { %v468_v38 = vadd.f32 1.0, %v743_v37 }
 0x11b   : > { %v470_v43 = vmul.f32 %v468_v38, %v454_v40 }
 0x11c   : > { %v745_v39 = vpop.eup %744 }
 0x11d   : > { %v469_v42 = vadd.f32 1.0, %v745_v39 }
 0x11f   : > { %v471_v44 = vmul.f32 %v469_v42, %v455_v41  ;;  %488 = sbr.rel (!%p843_p6) target bundleno = 300 (0x12c), region = 85 }
 0x121   : > { %v666_v45 = vpack.c.bf16 %v471_v44, %v470_v43 }
 0x123   : > { %667 = vst [vmem:[%s312_s19] sm:$0xff] %v666_v45  }
 0x12a   : > { %v510_v46 = vld [vmem:[%s312_s19] sm:$0xf]  ;;  %v512_v47 = vld [vmem:[%s312_s19 + $0x4] sm:$0xf] }
 0x12b   : > { %511 = vst [vmem:[%s493_s25] sm:$0xf] %v510_v46  ;;  %513 = vst [vmem:[%s493_s25 + $0xc] sm:$0xf] %v512_v47 }
 0x12c PF: > { %s13_s16 = sadd.s32 1, %s784_s16   ;;  %s897_s12 = smov %s772_s13 }
 0x12d   : > { %p10_p12 = scmp.ge.s32.totalorder %s13_s16, 5   ;;  %s898_s13 = smov %s848_s22 }
 0x12e   : > { %s899_s14 = smov %s780_s15  ;;  %s900_s15 = smov %s902_s17 }
 0x12f   :  { %12 = sbr.rel (!%p10_p12) target bundleno = 3 (0x3), region = 163 }

// kernel: kmer_bert_forward.18
= control target key start
LH: loop header
LB: loop body
LE: loop exit
PB: predicated region body
PF: predicated region fallthrough
CT: control target
= control target key end

     0   :  { %vm28_vm0 = vcmask 785408   ;;  %v272_v0 = vmov 0.0   ;;  %vm273_vm1 = vmmov 0   ;;  %vm210_vm2 = vcmask 781312   ;;  %s357_s1 = inlined_call_operand.vmem [shape: bf16[96,96], index: 1, kind: input, shape index: {}]   ;;  %s358_s0 = inlined_call_operand.vmem [shape: bf16[16,96], index: 0, kind: input, shape index: {}]   ;;  %s359_s3 = inlined_call_operand.vmem [shape: bf16[16,96], index: 3, kind: input, shape index: {}]   ;;  %s360_s2 = inlined_call_operand.vmem [shape: f32[1,96], index: 2, kind: input, shape index: {}]   ;;  %s361_s4 = inlined_call_operand.vmem [shape: f32[1,96], index: 4, kind: input, shape index: {}]   ;;  %s362_s5 = inlined_call_operand.vmem [shape: f32[1,96], index: 5, kind: input, shape index: {}]   ;;  %s363_s6 = inlined_call_operand.vmem [shape: bf16[16,96], index: 6, kind: output, shape index: {}]  }
   0x1   :  { %243 = vmatprep.subr.bf16.mxu0 %v272_v0  ;;  %v261_v1 = vld [vmem:[%s357_s1 + $0x28] sm:$0xff]   ;;  %255 = vmatprep.mubr.msk.bf16.mxu0 %vm273_vm1, %v272_v0  ;;  %29 = vst.msk [vmem:[#allocation2] sm:$0xff] %vm28_vm0, %v272_v0  ;;  %30 = vst.msk [vmem:[#allocation2 + $0x8] sm:$0xff] %vm28_vm0, %v272_v0  ;;  %v262_v2 = vld [vmem:[%s357_s1 + $0x20] sm:$0xff]  }
   0x2   :  { %244 = vmatpush3.bf16.msra.mxu0 %v261_v1  ;;  %v263_v3 = vld [vmem:[%s357_s1 + $0x18] sm:$0xff]   ;;  %v264_v4 = vld [vmem:[%s357_s1 + $0x10] sm:$0xff]   ;;  %v265_v5 = vld [vmem:[%s357_s1 + $0x8] sm:$0xff]  }
   0x3   :  { %245 = vmatprep.subr.bf16.mxu0 %v272_v0  ;;  %v266_v6 = vld [vmem:[%s357_s1] sm:$0xff]  }
   0x4   :  { %v267_v7 = vld [vmem:[%s358_s0] sm:$0xff]  }
   0x5   :  { %v233_v16 = vld [vmem:[%s359_s3] sm:$0xff]  }
   0x6   :  { %246 = vmatpush3.bf16.msra.mxu0 %v262_v2  ;;  %v225_v17 = vld [vmem:[%s360_s2] ss:$0 sm:$0xff]  ;;  %v234_v18 = vunpack.c.l.bf16 %v233_v16  ;;  %v235_v22 = vunpack.c.h.bf16 %v233_v16 }
   0x7   :  { %247 = vmatprep.subr.bf16.mxu0 %v272_v0  ;;  %v226_v45 = vld [vmem:[%s361_s4] ss:$0 sm:$0xff] }
   0x8   :  { %v31_v8 = vld [vmem:[#allocation2] sm:$0xff]  ;;  %v32_v12 = vld [vmem:[#allocation2 + $0x8] sm:$0xff] }
   0x9   :  { %v227_v47 = vld [vmem:[%s362_s5] ss:$0 sm:$0xff] }
   0xa   :  { %248 = vmatpush3.bf16.msra.mxu0 %v263_v3 }
   0xb   :  { %249 = vmatprep.subr.bf16.mxu0 %v272_v0 }
   0xe   :  { %250 = vmatpush3.bf16.msra.mxu0 %v264_v4 }
   0xf   :  { %251 = vmatprep.subr.bf16.mxu0 %v272_v0 }
  0x12   :  { %252 = vmatpush3.bf16.msra.mxu0 %v265_v5 }
  0x13   :  { %253 = vmatprep.subr.bf16.mxu0 %v272_v0 }
  0x16   :  { %254 = vmatpush3.bf16.msra.mxu0 %v266_v6 }
  0x19   :  { %256 = vmatmul.mubr.msk.bf16.vlgmr.msra.gmra.mxu0 %vm28_vm0, %v267_v7 }
  0xd9   :  { %v126_v9 = vpop.f32.mrf.mxu0 }
  0xda   :  { %v133_v10 = vadd.f32 %v126_v9, %v31_v8 }
  0xdb   :  { %v257_v11 = vpop.f32.mrf.mxu0 }
  0xdc   :  { %135 = vst.msk [vmem:[#allocation2] sm:$0xff] %vm28_vm0, %v133_v10 }
  0xdd   :  { %v129_v13 = vpop.f32.mrf.mxu0 }
  0xde   :  { %v134_v14 = vadd.f32 %v129_v13, %v32_v12 }
  0xdf   :  { %v258_v15 = vpop.f32.mrf.mxu0 }
  0xe0   :  { %136 = vst.msk [vmem:[#allocation2 + $0x8] sm:$0xff] %vm28_vm0, %v134_v14 }
  0xe3   :  { %v140_v19 = vld [vmem:[#allocation2] sm:$0xff] }
  0xe4   :  { %v149_v20 = vadd.f32 %v225_v17, %v140_v19 }
  0xe6   :  { %v155_v21 = vadd.f32 %v234_v18, %v149_v20 }
  0xe7   :  { %v141_v23 = vld [vmem:[#allocation2 + $0x8] sm:$0xff] }
  0xe8   :  { %v157_v24 = vsel %vm28_vm0, %v155_v21, 0.0  ;;  %v150_v25 = vadd.f32 %v225_v17, %v141_v23 }
  0xe9   :  { %158 = vadd.xlane.f32.xlu0 %v157_v24 }
  0xea   :  { %v156_v26 = vadd.f32 %v235_v22, %v150_v25 }
  0xec   :  { %v160_v27 = vsel %vm28_vm0, %v156_v26, 0.0 }
  0xed   :  { %161 = vadd.xlane.f32.xlu0 %v160_v27 }
 0x172   :  { %v159_v28 = vpop.xlane.xlu0 %158 }
 0x173   :  { %v164_v29 = vmul.f32 0.010416667, %v159_v28 }
 0x175   :  { %v166_v30 = vsub.f32 %v155_v21, %v164_v29 }
 0x176   :  { %v162_v31 = vpop.xlane.xlu0 %161 }
 0x177   :  { %v165_v32 = vmul.f32 0.010416667, %v162_v31  ;;  %v168_v33 = vmul.f32 %v166_v30, %v166_v30 }
 0x179   :  { %v167_v34 = vsub.f32 %v156_v26, %v165_v32  ;;  %v170_v35 = vsel %vm28_vm0, %v168_v33, 0.0 }
 0x17a   :  { %171 = vadd.xlane.f32.xlu1 %v170_v35 }
 0x17b   :  { %v169_v36 = vmul.f32 %v167_v34, %v167_v34 }
 0x17d   :  { %v173_v37 = vsel %vm28_vm0, %v169_v36, 0.0 }
 0x17e   :  { %174 = vadd.xlane.f32.xlu1 %v173_v37 }
 0x203   :  { %v172_v38 = vpop.xlane.xlu1 %171 }
 0x204   :  { %v176_v39 = vmul.f32 0.010416667, %v172_v38 }
 0x206   :  { %v178_v40 = vadd.f32 1e-12, %v176_v39 }
 0x207   :  { %v175_v41 = vpop.xlane.xlu1 %174 }
 0x208   :  { %268 = vrsqrt.f32 %v178_v40  ;;  %v177_v42 = vmul.f32 0.010416667, %v175_v41 }
 0x20a   :  { %v179_v43 = vadd.f32 1e-12, %v177_v42 }
 0x20c   :  { %270 = vrsqrt.f32 %v179_v43 }
 0x215   :  { %v269_v44 = vpop.eup %268 }
 0x216   :  { %v182_v46 = vmul.f32 %v269_v44, %v166_v30 }
 0x218   :  { %v191_v48 = vmul.f32 %v226_v45, %v182_v46 }
 0x219   :  { %v271_v49 = vpop.eup %270 }
 0x21a   :  { %v200_v50 = vadd.f32 %v227_v47, %v191_v48  ;;  %v183_v51 = vmul.f32 %v271_v49, %v167_v34 }
 0x21c   :  { %v230_v52 = vpack.c.bf16 %v200_v50, %v200_v50  ;;  %v192_v53 = vmul.f32 %v226_v45, %v183_v51 }
 0x21e   :  { %211 = vst.msk [vmem:[%s363_s6] sm:$0xf] %vm210_vm2, %v230_v52  ;;  %v201_v54 = vadd.f32 %v227_v47, %v192_v53 }
 0x220   :  { %v231_v55 = vpack.c.bf16 %v201_v54, %v201_v54 }
 0x222   :  { %212 = vst.msk [vmem:[%s363_s6 + $0x4] sm:$0xf] %vm210_vm2, %v231_v55 }

// kernel: kmer_bert_forward.27
= control target key start
LH: loop header
LB: loop body
LE: loop exit
PB: predicated region body
PF: predicated region fallthrough
CT: control target
= control target key end

     0   :  { %v336_v1 = vmov 0.0   ;;  %vm337_vm0 = vmmov 0   ;;  %s481_s0 = inlined_call_operand.vmem [shape: bf16[2,96], index: 0, kind: input, shape index: {}]   ;;  %s482_s1 = inlined_call_operand.vmem [shape: f32[96,96], index: 1, kind: input, shape index: {}]   ;;  %s483_s2 = inlined_call_operand.vmem [shape: f32[1,96], index: 2, kind: input, shape index: {}]   ;;  %s484_s3 = inlined_call_operand.vmem [shape: f32[96,2], index: 3, kind: input, shape index: {}]   ;;  %s485_s4 = inlined_call_operand.vmem [shape: f32[1,2], index: 4, kind: input, shape index: {}]   ;;  %s486_s5 = inlined_call_operand.hbm [shape: f32[2,2], index: 5, kind: output, shape index: {}]  }
   0x1   :  { %v34_v0 = vld [vmem:[%s482_s1 + $0x58] sm:$0xff]  ;;  %255 = vmatprep.subr.mxu0 %v336_v1  ;;  %v33_v2 = vld [vmem:[%s482_s1 + $0x50] sm:$0xff]  ;;  %279 = vmatprep.mubr.msk.f32.mxu0 %vm337_vm0, %v336_v1  ;;  %v32_v3 = vld [vmem:[%s482_s1 + $0x48] sm:$0xff] }
   0x2   :  { %256 = vmatpush3.msra.mxu0 %v34_v0  ;;  %282 = vmatprep.subr.mxu1 %v336_v1  ;;  %v128_v4 = vld [vmem:[%s484_s3 + $0x58] sm:$0xff]  ;;  %v127_v5 = vld [vmem:[%s484_s3 + $0x50] sm:$0xff]  ;;  %v31_v6 = vld [vmem:[%s482_s1 + $0x40] sm:$0xff] }
   0x3   :  { %257 = vmatprep.subr.mxu0 %v336_v1  ;;  %306 = vmatprep.mubr.msk.f32.mxu1 %vm337_vm0, %v336_v1 }
   0x4   :  { %258 = vmatpush3.msra.mxu0 %v33_v2  ;;  %283 = vmatpush3.msra.mxu1 %v128_v4 }
   0x5   :  { %259 = vmatprep.subr.mxu0 %v336_v1 }
   0x6   :  { %10 = vsyncpa [#allocation3], 0  ;;  %260 = vmatpush3.msra.mxu0 %v32_v3  ;;  %284 = vmatprep.subr.mxu1 %v336_v1  ;;  %v126_v7 = vld [vmem:[%s484_s3 + $0x48] sm:$0xff]  ;;  %v30_v8 = vld [vmem:[%s482_s1 + $0x38] sm:$0xff]  ;;  %vm42_vm1 = vcmask 785408   ;;  %vm209_vm2 = vcmask 9216  }
   0x7   :  { %261 = vmatprep.subr.mxu0 %v336_v1  ;;  %285 = vmatpush3.msra.mxu1 %v127_v5  ;;  %v29_v9 = vld [vmem:[%s482_s1 + $0x30] sm:$0xff]  ;;  %v28_v10 = vld [vmem:[%s482_s1 + $0x28] sm:$0xff]  ;;  %v27_v11 = vld [vmem:[%s482_s1 + $0x20] sm:$0xff] }
   0x8   :  { %262 = vmatpush3.msra.mxu0 %v31_v6  ;;  %286 = vmatprep.subr.mxu1 %v336_v1  ;;  %v26_v12 = vld [vmem:[%s482_s1 + $0x18] sm:$0xff]  ;;  %v25_v13 = vld [vmem:[%s482_s1 + $0x10] sm:$0xff]  ;;  %v21_v14 = vld [vmem:[%s481_s0] sm:$0x1] }
   0x9   :  { %263 = vmatprep.subr.mxu0 %v336_v1  ;;  %287 = vmatpush3.msra.mxu1 %v126_v7  ;;  %v24_v15 = vld [vmem:[%s482_s1 + $0x8] sm:$0xff]  ;;  %v23_v16 = vld [vmem:[%s482_s1] sm:$0xff]  ;;  %v22_v17 = vunpack.c.l.bf16 %v21_v14  ;;  %v124_v19 = vld [vmem:[%s484_s3 + $0x38] sm:$0xff] }
   0xa   :  { %264 = vmatpush3.msra.mxu0 %v30_v8  ;;  %288 = vmatprep.subr.mxu1 %v336_v1  ;;  %v125_v18 = vld [vmem:[%s484_s3 + $0x40] sm:$0xff]  ;;  %v123_v20 = vld [vmem:[%s484_s3 + $0x30] sm:$0xff]  ;;  %v122_v21 = vld [vmem:[%s484_s3 + $0x28] sm:$0xff] }
   0xb   :  { %265 = vmatprep.subr.mxu0 %v336_v1  ;;  %289 = vmatpush3.msra.mxu1 %v125_v18  ;;  %v121_v22 = vld [vmem:[%s484_s3 + $0x20] sm:$0xff]  ;;  %v120_v23 = vld [vmem:[%s484_s3 + $0x18] sm:$0xff]  ;;  %v119_v24 = vld [vmem:[%s484_s3 + $0x10] sm:$0xff] }
   0xc   :  { %266 = vmatpush3.msra.mxu0 %v29_v9  ;;  %290 = vmatprep.subr.mxu1 %v336_v1  ;;  %v118_v25 = vld [vmem:[%s484_s3 + $0x8] sm:$0xff]  ;;  %v117_v26 = vld [vmem:[%s484_s3] sm:$0xff]  ;;  %s338_s3 = smov [#allocation2]  }
   0xd   :  { %267 = vmatprep.subr.mxu0 %v336_v1  ;;  %291 = vmatpush3.msra.mxu1 %v124_v19  ;;  %v225_v27 = vld [vmem:[%s483_s2] ss:$0 sm:$0xff]  ;;  %s217_s20 = sshll.u32 %s338_s3, 4  ;;  %s218_s20 = int_to_ptr.vmem [resolvable:$true] %s217_s20 }
   0xe   :  { %268 = vmatpush3.msra.mxu0 %v28_v10  ;;  %292 = vmatprep.subr.mxu1 %v336_v1  ;;  %v227_v32 = vld [vmem:[%s485_s4] ss:$0 sm:$0xff]  ;;  %s314_s2 = scalar_lea.vmem %s218_s20, 32  ;;  %p319_p1 = scmp.lt.s32.totalorder %s218_s20, %s218_s20 }
   0xf   :  { %269 = vmatprep.subr.mxu0 %v336_v1  ;;  %293 = vmatpush3.msra.mxu1 %v123_v20  ;;  %p315_p0 = scmp.ne.s32.totalorder %s218_s20, %s314_s2  ;;  %p320_p2 = scmp.lt.s32.totalorder %s314_s2, %s314_s2 }
  0x10   :  { %270 = vmatpush3.msra.mxu0 %v27_v11  ;;  %294 = vmatprep.subr.mxu1 %v336_v1 }
  0x11   :  { %271 = vmatprep.subr.mxu0 %v336_v1  ;;  %295 = vmatpush3.msra.mxu1 %v122_v21  ;;  %p321_p3 = por %p320_p2, %p319_p1 }
  0x12   :  { %272 = vmatpush3.msra.mxu0 %v26_v12  ;;  %296 = vmatprep.subr.mxu1 %v336_v1 }
  0x13   :  { %273 = vmatprep.subr.mxu0 %v336_v1  ;;  %297 = vmatpush3.msra.mxu1 %v121_v22  ;;  %p322_p4 = pnand %p321_p3, %p315_p0 }
  0x14   :  { %274 = vmatpush3.msra.mxu0 %v25_v13  ;;  %298 = vmatprep.subr.mxu1 %v336_v1 }
  0x15   :  { %275 = vmatprep.subr.mxu0 %v336_v1  ;;  %299 = vmatpush3.msra.mxu1 %v120_v23 }
  0x16   :  { %276 = vmatpush3.msra.mxu0 %v24_v15  ;;  %300 = vmatprep.subr.mxu1 %v336_v1 }
  0x17   :  { %277 = vmatprep.subr.mxu0 %v336_v1  ;;  %301 = vmatpush3.msra.mxu1 %v119_v24 }
  0x18   :  { %278 = vmatpush3.msra.mxu0 %v23_v16  ;;  %302 = vmatprep.subr.mxu1 %v336_v1 }
  0x19   :  { %280 = vmatmul.mubr.msk.f32.vlgmr.msra.gmra.mxu0 %vm42_vm1, %v22_v17  ;;  %303 = vmatpush3.msra.mxu1 %v118_v25 }
  0x1a   :  { %304 = vmatprep.subr.mxu1 %v336_v1 }
  0x1b   :  { %305 = vmatpush3.msra.mxu1 %v117_v26 }
  0xd9   :  { %v112_v28 = vpop.f32.mrf.mxu0 }
  0xda   :  { %v113_v29 = vadd.f32 %v225_v27, %v112_v28 }
  0xdb   :  { %v281_v30 = vpop.f32.mrf.mxu0 }
  0xdc   :  { %312 = vtanh.f32 %v113_v29 }
  0xe9   :  { %v313_v31 = vpop.eup %312 }
  0xea   :  { %307 = vmatmul.mubr.msk.f32.vlgmr.msra.gmra.mxu1 %vm42_vm1, %v313_v31 }
 0x1aa   :  { %v205_v33 = vpop.f32.mrf.mxu1 }
 0x1ab   :  { %v206_v34 = vadd.f32 %v227_v32, %v205_v33 }
 0x1ac   :  { %v308_v35 = vpop.f32.mrf.mxu1 }
 0x1ad   :  { %210 = vst.msk [vmem:[#allocation2] sm:$0x3] %vm209_vm2, %v206_v34 }
 0x1ae   :  { %325 = shalt.err (!%p322_p4)
}
 0x1af   :  { %220 = dma.vmem_to_hbm [thread:$0]  %s218_s20, 32, %s486_s5, [#allocation3]  }
 0x1b0   :  { %334 = dma.done.wait [#allocation3], 32  }
 0x1b1   :  { %335 = vsyncadd [#allocation3], 4294967264 }
 0x1b2   :  { %224 = vsyncpa [#allocation3], 1 }

// kernel: kmer_bert_forward.20
= control target key start
LH: loop header
LB: loop body
LE: loop exit
PB: predicated region body
PF: predicated region fallthrough
CT: control target
= control target key end

     0   :  { %s863_s21 = smov 0   ;;  %s865_s22 = smov 0   ;;  %s969_s0 = inlined_call_operand.vmem [shape: bf16[16,384], index: 0, kind: input, shape index: {}]   ;;  %s970_s1 = inlined_call_operand.vmem [shape: bf16[384,96], index: 1, kind: input, shape index: {}]   ;;  %s971_s2 = inlined_call_operand.vmem [shape: f32[1,96], index: 2, kind: input, shape index: {}]   ;;  %s972_s3 = inlined_call_operand.vmem [shape: bf16[16,96], index: 3, kind: input, shape index: {}]   ;;  %s973_s4 = inlined_call_operand.vmem [shape: f32[1,96], index: 4, kind: input, shape index: {}]   ;;  %s974_s5 = inlined_call_operand.vmem [shape: f32[1,96], index: 5, kind: input, shape index: {}]   ;;  %s975_s6 = inlined_call_operand.vmem [shape: bf16[16,96], index: 6, kind: output, shape index: {}]  }
   0x1   :  { %s867_s23 = smov 0   ;;  %s869_s24 = smov 0  }
   0x2   :  { %s871_s25 = smov 0  }
   0x3 LB: > { %s25_s26 = sadd.s32 1, %s819_s24  ;;  %p44_p1 = scmp.ne.s32.totalorder %s811_s22, %s807_s21  ;;  %s823_s25 = sphi %s871_s25, %s16_s25   ;;  %s819_s24 = sphi %s869_s24, %s979_s24   ;;  %s815_s23 = sphi %s867_s23, %s978_s23   ;;  %s811_s22 = sphi %s865_s22, %s977_s22   ;;  %s807_s21 = sphi %s863_s21, %s976_s21  }
   0x4   : > { %p26_p0 = scmp.ge.s32.totalorder %s25_s26, 3  ;;  %p45_p2 = scmp.eq.s32.totalorder %s823_s25, 0 }
   0x5   : > { %s37_s28 = sadd.s32 1, %s811_s22  ;;  %p667_p5 = scmp.ge.s32.totalorder %s823_s25, 3 }
   0x6   : > { %s981_s26 = smov (%p26_p0, %s25_s26), 0  ;;  %p46_p3 = por %p45_p2, %p44_p1 }
   0x7   : > { %s33_s27 = ssub.s32 %s819_s24, %s981_s26  ;;  %229 = sbr.rel (%p667_p5) target bundleno = 17 (0x11), region = 32 }
   0x8   : > { %p35_p4 = scmp.eq.s32.totalorder %s33_s27, 0 }
   0xa   : > { %s898_s29 = scalar_select %p35_p4, %s811_s22, %s37_s28  }
   0xc   : > { %232 = sbr.rel (!%p46_p3) target bundleno = 17 (0x11), region = 36  ;;  %s234_s30 = sand.u32 (%p46_p3), 1, %s811_s22  }
   0xd   : > { %s669_s7 = sshll.u32 (%p46_p3), %s819_s24, 2  ;;  %s668_s8 = sshll.u32 (%p46_p3), %s234_s30, 3 }
   0xe   : > { %s241_s11 = scalar_lea.vmem (%p46_p3), %s969_s0, %s669_s7  ;;  %s236_s12 = scalar_lea.vmem (%p46_p3), [#allocation3], %s668_s8 }
   0xf   : > { %v258_v0 = vld [vmem:[%s241_s11] sm:$0xf] (%p46_p3)  ;;  %v260_v1 = vld [vmem:[%s241_s11 + $0xc] sm:$0xf] (%p46_p3) }
  0x10   : > { %259 = vst [vmem:[%s236_s12] sm:$0xf] (%p46_p3), %v258_v0  ;;  %261 = vst [vmem:[%s236_s12 + $0x4] sm:$0xf] (%p46_p3), %v260_v1 }
  0x11 PF: > { %p670_p6 = scmp.ge.s32.totalorder %s823_s25, 1  ;;  %p297_p7 = scmp.lt.s32.totalorder %s823_s25, 4 }
  0x13   : > { %p298_p8 = pnand %p670_p6, %p297_p7 }
  0x14   : > { %s304_s13 = sand.u32 (!%p298_p8), 1, %s807_s21   ;;  %s672_s14 = sshll.u32 (!%p298_p8), %s815_s23, 4 }
  0x15   : > { %301 = sbr.rel (%p298_p8) target bundleno = 588 (0x24c), region = 81  ;;  %s910_s15 = sshll.u32 (!%p298_p8), %s304_s13, 3 }
  0x16   : > { %p345_p9 = scmp.lt.s32.totalorder (!%p298_p8), %s672_s14, 47  ;;  %s306_s20 = scalar_lea.vmem (!%p298_p8), [#allocation3], %s910_s15 }
  0x17   : > { %p674_p10 = scmp.ne.s32.totalorder (!%p298_p8), %s815_s23, 0 }
  0x1a   : > { %s983_s14 = smov (!%p345_p9, %s672_s14), 47  ;;  %366 = sbr.rel (%p674_p10) target bundleno = 33 (0x21), region = 89 }
  0x1b   : > { %s673_s16 = sshll.u32 %s983_s14, 2 }
  0x1c   : > { %s915_s19 = scalar_lea.vmem %s970_s1, %s673_s16 }
  0x1f   : > { %vm367_vm0 = vcmask 785408   ;;  %v825_v2 = vmov 0.0  }
  0x20   : > { %368 = vst.msk [vmem:[#allocation2] sm:$0xff] %vm367_vm0, %v825_v2  ;;  %369 = vst.msk [vmem:[#allocation2 + $0x8] sm:$0xff] %vm367_vm0, %v825_v2 }
  0x21 PF: > { %v772_v3 = vld [vmem:[%s915_s19 + $0x38] sm:$0xff]   ;;  %v826_v4 = vmov 0.0   ;;  %v773_v5 = vld [vmem:[%s915_s19 + $0x30] sm:$0xff]   ;;  %vm827_vm1 = vmmov 0   ;;  %v774_v6 = vld [vmem:[%s915_s19 + $0x28] sm:$0xff]   ;;  %vm487_vm2 = vcmask 785408  }
  0x22   : > { %709 = vmatprep.subr.bf16.mxu0 %v826_v4  ;;  %725 = vmatprep.mubr.msk.bf16.mxu0 %vm827_vm1, %v826_v4  ;;  %v775_v7 = vld [vmem:[%s915_s19 + $0x20] sm:$0xff]   ;;  %v776_v8 = vld [vmem:[%s915_s19 + $0x18] sm:$0xff]   ;;  %v777_v9 = vld [vmem:[%s915_s19 + $0x10] sm:$0xff]   ;;  %p684_p11 = scmp.ne.s32.totalorder %s815_s23, 2 }
  0x23   : > { %710 = vmatpush3.bf16.msra.mxu0 %v772_v3  ;;  %v778_v10 = vld [vmem:[%s915_s19 + $0x8] sm:$0xff]   ;;  %v779_v11 = vld [vmem:[%s915_s19] sm:$0xff]   ;;  %v780_v12 = vld [vmem:[%s306_s20] sm:$0xff]  }
  0x24   : > { %711 = vmatprep.subr.bf16.mxu0 %v826_v4 }
  0x27   : > { %712 = vmatpush3.bf16.msra.mxu0 %v773_v5  ;;  %v370_v13 = vld [vmem:[#allocation2] sm:$0xff]  ;;  %v371_v17 = vld [vmem:[#allocation2 + $0x8] sm:$0xff] }
  0x28   : > { %713 = vmatprep.subr.bf16.mxu0 %v826_v4 }
  0x2b   : > { %714 = vmatpush3.bf16.msra.mxu0 %v774_v6 }
  0x2c   : > { %715 = vmatprep.subr.bf16.mxu0 %v826_v4 }
  0x2f   : > { %716 = vmatpush3.bf16.msra.mxu0 %v775_v7 }
  0x30   : > { %717 = vmatprep.subr.bf16.mxu0 %v826_v4 }
  0x33   : > { %718 = vmatpush3.bf16.msra.mxu0 %v776_v8 }
  0x34   : > { %719 = vmatprep.subr.bf16.mxu0 %v826_v4 }
  0x37   : > { %720 = vmatpush3.bf16.msra.mxu0 %v777_v9 }
  0x38   : > { %721 = vmatprep.subr.bf16.mxu0 %v826_v4 }
  0x3b   : > { %722 = vmatpush3.bf16.msra.mxu0 %v778_v10 }
  0x3c   : > { %723 = vmatprep.subr.bf16.mxu0 %v826_v4 }
  0x3f   : > { %724 = vmatpush3.bf16.msra.mxu0 %v779_v11 }
  0x42   : > { %726 = vmatmul.mubr.bf16.vlgmr.msra.gmra.mxu0 %v780_v12 }
 0x102   : > { %v478_v14 = vpop.f32.mrf.mxu0 }
 0x103   : > { %v485_v15 = vadd.f32 %v478_v14, %v370_v13 }
 0x104   : > { %v727_v16 = vpop.f32.mrf.mxu0 }
 0x105   : > { %488 = vst.msk [vmem:[#allocation2] sm:$0xff] %vm487_vm2, %v485_v15  ;;  %493 = sbr.rel (%p684_p11) target bundleno = 588 (0x24c), region = 93 }
 0x106   : > { %v481_v18 = vpop.f32.mrf.mxu0 }
 0x107   : > { %v486_v19 = vadd.f32 %v481_v18, %v371_v17 }
 0x108   : > { %v728_v20 = vpop.f32.mrf.mxu0 }
 0x109   : > { %489 = vst.msk [vmem:[#allocation2 + $0x8] sm:$0xff] %vm487_vm2, %v486_v19 }
 0x10a   : > { %v685_v22 = vld [vmem:[%s971_s2] ss:$0 sm:$0xff]  ;;  %vm564_vm3 = vcmask 781312  }
 0x10b   : > { %v697_v23 = vld [vmem:[%s972_s3] sm:$0xff]  }
 0x10c   : > { %v494_v21 = vld [vmem:[#allocation2] sm:$0xff]  ;;  %v698_v25 = vunpack.c.l.bf16 %v697_v23  ;;  %v699_v27 = vunpack.c.h.bf16 %v697_v23 }
 0x10d   : > { %v503_v24 = vadd.f32 %v685_v22, %v494_v21  ;;  %v686_v50 = vld [vmem:[%s973_s4] ss:$0 sm:$0xff] }
 0x10e   : > { %v687_v52 = vld [vmem:[%s974_s5] ss:$0 sm:$0xff] }
 0x10f   : > { %v509_v29 = vadd.f32 %v698_v25, %v503_v24 }
 0x110   : > { %v495_v26 = vld [vmem:[#allocation2 + $0x8] sm:$0xff] }
 0x111   : > { %v504_v28 = vadd.f32 %v685_v22, %v495_v26  ;;  %v511_v31 = vsel %vm487_vm2, %v509_v29, 0.0 }
 0x112   : > { %512 = vadd.xlane.f32.xlu0 %v511_v31 }
 0x113   : > { %v510_v30 = vadd.f32 %v699_v27, %v504_v28 }
 0x115   : > { %v514_v32 = vsel %vm487_vm2, %v510_v30, 0.0 }
 0x116   : > { %515 = vadd.xlane.f32.xlu0 %v514_v32 }
 0x19b   : > { %v513_v33 = vpop.xlane.xlu0 %512 }
 0x19c   : > { %v518_v34 = vmul.f32 0.010416667, %v513_v33 }
 0x19e   : > { %v520_v35 = vsub.f32 %v509_v29, %v518_v34 }
 0x19f   : > { %v516_v36 = vpop.xlane.xlu0 %515 }
 0x1a0   : > { %v519_v37 = vmul.f32 0.010416667, %v516_v36  ;;  %v522_v38 = vmul.f32 %v520_v35, %v520_v35 }
 0x1a2   : > { %v521_v39 = vsub.f32 %v510_v30, %v519_v37  ;;  %v524_v40 = vsel %vm487_vm2, %v522_v38, 0.0 }
 0x1a3   : > { %525 = vadd.xlane.f32.xlu1 %v524_v40 }
 0x1a4   : > { %v523_v41 = vmul.f32 %v521_v39, %v521_v39 }
 0x1a6   : > { %v527_v42 = vsel %vm487_vm2, %v523_v41, 0.0 }
 0x1a7   : > { %528 = vadd.xlane.f32.xlu1 %v527_v42 }
 0x22c   : > { %v526_v43 = vpop.xlane.xlu1 %525 }
 0x22d   : > { %v530_v44 = vmul.f32 0.010416667, %v526_v43 }
 0x22f   : > { %v532_v45 = vadd.f32 1e-12, %v530_v44 }
 0x230   : > { %v529_v46 = vpop.xlane.xlu1 %528 }
 0x231   : > { %781 = vrsqrt.f32 %v532_v45  ;;  %v531_v47 = vmul.f32 0.010416667, %v529_v46 }
 0x233   : > { %v533_v48 = vadd.f32 1e-12, %v531_v47 }
 0x235   : > { %783 = vrsqrt.f32 %v533_v48 }
 0x23e   : > { %v782_v49 = vpop.eup %781 }
 0x23f   : > { %v536_v51 = vmul.f32 %v782_v49, %v520_v35 }
 0x241   : > { %v545_v53 = vmul.f32 %v686_v50, %v536_v51 }
 0x242   : > { %v784_v54 = vpop.eup %783 }
 0x243   : > { %v554_v55 = vadd.f32 %v687_v52, %v545_v53  ;;  %v537_v56 = vmul.f32 %v784_v54, %v521_v39 }
 0x245   : > { %v694_v57 = vpack.c.bf16 %v554_v55, %v554_v55  ;;  %v546_v58 = vmul.f32 %v686_v50, %v537_v56 }
 0x247   : > { %565 = vst.msk [vmem:[%s975_s6] sm:$0xf] %vm564_vm3, %v694_v57  ;;  %v555_v59 = vadd.f32 %v687_v52, %v546_v58 }
 0x249   : > { %v695_v60 = vpack.c.bf16 %v555_v59, %v555_v59 }
 0x24b   : > { %566 = vst.msk [vmem:[%s975_s6 + $0x4] sm:$0xf] %vm564_vm3, %v695_v60 }
 0x24c PF: > { %s16_s25 = sadd.s32 1, %s823_s25   ;;  %s976_s21 = smov %s811_s22 }
 0x24d   : > { %p13_p12 = scmp.ge.s32.totalorder %s16_s25, 5   ;;  %s977_s22 = smov %s898_s29 }
 0x24e   : > { %s978_s23 = smov %s819_s24  ;;  %s979_s24 = smov %s981_s26 }
 0x24f   :  { %15 = sbr.rel (!%p13_p12) target bundleno = 3 (0x3), region = 134 }

</bundles_post_ra>
